<compile_context>
chip_gen: v7x
topology: tpu7x:2x2x1
jax: 0.10.0
libtpu: 0.0.40
codegen_flags: <defaults>
</compile_context>

<pallas_src>
import jax
import jax.numpy as jnp
from jax import lax
from jax.experimental import pallas as pl
from jax.experimental.pallas import tpu as pltpu

# ----- problem sizes (small, TPU-friendly) -----
N = 128            # number of nodes
M = 16             # number of hyperedges
F = 32             # in_channels
C = 32             # out_channels
H = 2              # heads
OUT = H * C        # real output width (64)
OUT_PAD = 128      # lane-dense padded output width
TN = 64            # node rows per grid step (grid width 2 -> both v7x TCs)
NEG_SLOPE = 0.2
HI = lax.Precision.HIGHEST   # full-f32 MXU matmuls (bf16 default drifts through exp)


# ---------------- single fused kernel ----------------------------------------
def hmagat3_kernel(x_ref, b_ref, bt_ref, wg_ref, bg_ref, watt_ref, wsrc_ref,
                   wres_ref, bias_ref, out_ref):
    # node-row block handled by this grid step
    r0 = pl.multiple_of(pl.program_id(0) * TN, TN)
    x_all = x_ref[...]                       # (N, F)  resident across grid steps
    x_blk = x_ref[pl.ds(r0, TN), :]          # (TN, F)
    inc = b_ref[pl.ds(r0, TN), :]            # (TN, M) incidence 0/1

    # ---- Phase 1: hyperedge feats he = B^T (x W_gcn) + b_gcn  -> (M, F) ----
    xw = jnp.dot(x_all, wg_ref[...], precision=HI,
                 preferred_element_type=jnp.float32)                     # (N, F)
    he = jnp.dot(bt_ref[...], xw, precision=HI,
                 preferred_element_type=jnp.float32) + bg_ref[...]       # (M, F)

    # residual + bias start the lane-dense accumulator (TN, 128)
    acc = jnp.dot(x_blk, wres_ref[...], precision=HI,
                  preferred_element_type=jnp.float32) + bias_ref[...]

    # ---- Phase 2: per-head multiplicative attention (MXU only, no concats) ----
    for h in range(H):                        # H = 2, unrolled at trace time
        att_h = jnp.dot(he, watt_ref[h], precision=HI,
                        preferred_element_type=jnp.float32)              # (M, F)
        # raw[n, m] = <x[n], att_h[m]>   (A @ B^T form)
        raw = lax.dot_general(x_blk, att_h, (((1,), (1,)), ((), ())),
                              precision=HI,
                              preferred_element_type=jnp.float32)        # (TN, M)
        logit = jnp.maximum(raw, NEG_SLOPE * raw)                        # leaky relu
        ml = jnp.where(inc > 0, logit, jnp.float32(-1e30))
        mmax = jnp.max(ml, axis=1, keepdims=True)                        # (TN, 1)
        p = jnp.exp(ml - mmax) * inc
        den = jnp.maximum(jnp.sum(p, axis=1, keepdims=True), 1e-20)
        alpha = p / den                                                  # (TN, M)

        # per-head source feats already placed on their output lanes (host pad)
        xs_h = jnp.dot(he, wsrc_ref[h], precision=HI,
                       preferred_element_type=jnp.float32)               # (M, 128)
        acc = acc + jnp.dot(alpha, xs_h, precision=HI,
                            preferred_element_type=jnp.float32)          # (TN, 128)

    out_ref[...] = acc                       # unmasked full-lane (TN, 128) store


# ---------------- wrapper ----------------------------------------------------
def hmagat3_forward(x, B, params):
    W_gcn, b_gcn, W_att, W_src, W_res, b_out = params

    # host-side one-time weight re-layouts (per-head stacks, lane padding)
    Bt = B.T                                                    # (M, N)
    W_att_heads = W_att.reshape(F, H, F).transpose(1, 0, 2)     # (H, F_in, F)
    W_src_pad = jnp.zeros((H, F, OUT_PAD), jnp.float32)
    for h in range(H):
        W_src_pad = W_src_pad.at[h, :, h * C:(h + 1) * C].set(
            W_src[:, h * C:(h + 1) * C])
    W_res_pad = jnp.zeros((F, OUT_PAD), jnp.float32).at[:, :OUT].set(W_res)
    b_out_pad = jnp.zeros((1, OUT_PAD), jnp.float32).at[:, :OUT].set(b_out)
    b_gcn2 = b_gcn.reshape(1, F)

    cost = pl.CostEstimate(
        flops=2 * (N * F * F + M * N * F + N * F * OUT_PAD
                   + H * (M * F * F + N * F * M + M * F * OUT_PAD
                          + N * M * OUT_PAD)),
        transcendentals=H * N * M,
        bytes_accessed=4 * (N * F + N * M + M * N + F * F + F + H * F * F
                            + H * F * OUT_PAD + F * OUT_PAD + OUT_PAD
                            + N * OUT_PAD),
    )

    full2 = lambda i: (0, 0)
    full3 = lambda i: (0, 0, 0)
    out_pad = pl.pallas_call(
        hmagat3_kernel,
        out_shape=jax.ShapeDtypeStruct((N, OUT_PAD), jnp.float32),
        grid=(N // TN,),
        in_specs=[
            pl.BlockSpec((N, F), full2),             # x        (resident)
            pl.BlockSpec((N, M), full2),             # B        (mask)
            pl.BlockSpec((M, N), full2),             # B^T      (aggregation)
            pl.BlockSpec((F, F), full2),             # W_gcn
            pl.BlockSpec((1, F), full2),             # b_gcn
            pl.BlockSpec((H, F, F), full3),          # W_att per-head stack
            pl.BlockSpec((H, F, OUT_PAD), full3),    # W_src per-head, lane-padded
            pl.BlockSpec((F, OUT_PAD), full2),       # W_res, lane-padded
            pl.BlockSpec((1, OUT_PAD), full2),       # bias,  lane-padded
        ],
        out_specs=pl.BlockSpec((TN, OUT_PAD), lambda i: (i, 0)),
        compiler_params=pltpu.CompilerParams(dimension_semantics=("parallel",)),
        cost_estimate=cost,
    )(x, B, Bt, W_gcn, b_gcn2, W_att_heads, W_src_pad, W_res_pad, b_out_pad)
    # downstream consumers that accept the padded (N, 128) slab can skip this slice
    return out_pad[:, :OUT]


# ---------------- pure-JAX reference (same math, full f32 precision) ---------
def reference(x, B, params):
    W_gcn, b_gcn, W_att, W_src, W_res, b_out = params
    xw = jnp.dot(x, W_gcn, precision=HI)
    he = jnp.dot(B.T, xw, precision=HI) + b_gcn
    att = jnp.dot(he, W_att, precision=HI).reshape(M, H, F)
    logits = jnp.einsum('nf,mhf->nmh', x, att, precision=HI)
    logits = jnp.where(logits >= 0, logits, NEG_SLOPE * logits)
    mask = B[:, :, None]
    ml = jnp.where(mask > 0, logits, -1e30)
    p = jnp.exp(ml - jnp.max(ml, axis=1, keepdims=True)) * mask
    alpha = p / jnp.maximum(p.sum(axis=1, keepdims=True), 1e-20)
    xs = jnp.dot(he, W_src, precision=HI).reshape(M, H, C)
    out = jnp.einsum('nmh,mhc->nhc', alpha, xs, precision=HI).reshape(N, H * C)
    return out + jnp.dot(x, W_res, precision=HI) + b_out


if __name__ == "__main__":
    key = jax.random.PRNGKey(0)
    k = jax.random.split(key, 8)

    # deterministic synthetic inputs
    x = jax.random.normal(k[0], (N, F), dtype=jnp.float32)
    # random hypergraph incidence; ensure every hyperedge has >= 1 node so that
    # M == max(edge_index[1]) + 1 as the torch module computes it.
    B = jax.random.bernoulli(k[1], 0.3, (N, M)).astype(jnp.float32)
    B = B.at[0, :].set(1.0)

    # deterministic synthetic parameters (shapes from the module __init__)
    def glorot(key, shape):
        lim = (6.0 / (shape[0] + shape[1])) ** 0.5
        return jax.random.uniform(key, shape, jnp.float32, -lim, lim)

    W_gcn = glorot(k[2], (F, F))                 # BipartiteGCNConv.lin
    b_gcn = 0.1 * jax.random.normal(k[3], (F,), dtype=jnp.float32)
    W_att = glorot(k[4], (F, H * F))             # MAGAT lin_att
    W_src = glorot(k[5], (F, H * C))             # MAGAT lin_src
    W_res = glorot(k[6], (F, H * C))             # MAGAT res
    b_out = 0.1 * jax.random.normal(k[7], (H * C,), dtype=jnp.float32)
    params = (W_gcn, b_gcn, W_att, W_src, W_res, b_out)

    out = jax.block_until_ready(hmagat3_forward(x, B, params))
    ref = jax.block_until_ready(reference(x, B, params))
    err = float(jnp.max(jnp.abs(out - ref)))
    assert err < 1e-2, f"max abs err {err}"
    print("KERNEL_OK")
</pallas_src>

<mosaic_0001>
module attributes {stable_mosaic.version = 11 : i64} {
  func.func @hmagat3_kernel(%arg0: i32, %arg1: memref<128x32xf32, #tpu.memory_space<vmem>>, %arg2: memref<128x16xf32, #tpu.memory_space<vmem>>, %arg3: memref<16x128xf32, #tpu.memory_space<vmem>>, %arg4: memref<32x32xf32, #tpu.memory_space<vmem>>, %arg5: memref<1x32xf32, #tpu.memory_space<vmem>>, %arg6: memref<2x32x32xf32, #tpu.memory_space<vmem>>, %arg7: memref<2x32x128xf32, #tpu.memory_space<vmem>>, %arg8: memref<32x128xf32, #tpu.memory_space<vmem>>, %arg9: memref<1x128xf32, #tpu.memory_space<vmem>>, %arg10: memref<64x128xf32, #tpu.memory_space<vmem>>) attributes {dimension_semantics = [#tpu.dimension_semantics<parallel>], iteration_bounds = array<i64: 2>, scalar_prefetch = 0 : i64, scratch_operands = 0 : i64, tpu.core_type = #tpu.core_type<tc>, window_params = [{pipeline_mode = #tpu.pipeline_mode<synchronous>, transform_indices = @transform_0, window_bounds = array<i64: 128, 32>}, {pipeline_mode = #tpu.pipeline_mode<synchronous>, transform_indices = @transform_1, window_bounds = array<i64: 128, 16>}, {pipeline_mode = #tpu.pipeline_mode<synchronous>, transform_indices = @transform_2, window_bounds = array<i64: 16, 128>}, {pipeline_mode = #tpu.pipeline_mode<synchronous>, transform_indices = @transform_3, window_bounds = array<i64: 32, 32>}, {pipeline_mode = #tpu.pipeline_mode<synchronous>, transform_indices = @transform_4, window_bounds = array<i64: 1, 32>}, {pipeline_mode = #tpu.pipeline_mode<synchronous>, transform_indices = @transform_5, window_bounds = array<i64: 2, 32, 32>}, {pipeline_mode = #tpu.pipeline_mode<synchronous>, transform_indices = @transform_6, window_bounds = array<i64: 2, 32, 128>}, {pipeline_mode = #tpu.pipeline_mode<synchronous>, transform_indices = @transform_7, window_bounds = array<i64: 32, 128>}, {pipeline_mode = #tpu.pipeline_mode<synchronous>, transform_indices = @transform_8, window_bounds = array<i64: 1, 128>}, {transform_indices = @transform_9, window_bounds = array<i64: 64, 128>}]} {
    %c64_i32 = arith.constant 64 : i32
    %0 = arith.muli %arg0, %c64_i32 : i32
    %1 = tpu.assume_multiple %0, 64 : i32
    %c0 = arith.constant 0 : index
    %c0_0 = arith.constant 0 : index
    %2 = vector.load %arg1[%c0, %c0_0] : memref<128x32xf32, #tpu.memory_space<vmem>>, vector<128x32xf32>
    %3 = arith.index_cast %1 : i32 to index
    %c0_1 = arith.constant 0 : index
    %4 = vector.load %arg1[%3, %c0_1] : memref<128x32xf32, #tpu.memory_space<vmem>>, vector<64x32xf32>
    %5 = arith.index_cast %1 : i32 to index
    %c0_2 = arith.constant 0 : index
    %6 = vector.load %arg2[%5, %c0_2] : memref<128x16xf32, #tpu.memory_space<vmem>>, vector<64x16xf32>
    %c0_3 = arith.constant 0 : index
    %c0_4 = arith.constant 0 : index
    %7 = vector.load %arg4[%c0_3, %c0_4] : memref<32x32xf32, #tpu.memory_space<vmem>>, vector<32x32xf32>
    %cst = arith.constant dense<0.000000e+00> : vector<128x32xf32>
    %8 = tpu.matmul %2, %7, %cst {dimension_numbers = #tpu.dot_dimension_numbers<[1], [0], [0], [1], [0, 0, 1, 1], [], []>, precision = #tpu.contract_precision<fp32>} : vector<128x32xf32>, vector<32x32xf32>, vector<128x32xf32> -> vector<128x32xf32>
    %c0_5 = arith.constant 0 : index
    %c0_6 = arith.constant 0 : index
    %9 = vector.load %arg3[%c0_5, %c0_6] : memref<16x128xf32, #tpu.memory_space<vmem>>, vector<16x128xf32>
    %cst_7 = arith.constant dense<0.000000e+00> : vector<16x32xf32>
    %10 = tpu.matmul %9, %8, %cst_7 {dimension_numbers = #tpu.dot_dimension_numbers<[1], [0], [0], [1], [0, 0, 1, 1], [], []>, precision = #tpu.contract_precision<fp32>} : vector<16x128xf32>, vector<128x32xf32>, vector<16x32xf32> -> vector<16x32xf32>
    %c0_8 = arith.constant 0 : index
    %c0_9 = arith.constant 0 : index
    %11 = vector.load %arg5[%c0_8, %c0_9] : memref<1x32xf32, #tpu.memory_space<vmem>>, vector<1x32xf32>
    %12 = vector.broadcast %11 : vector<1x32xf32> to vector<16x32xf32>
    %13 = arith.addf %10, %12 : vector<16x32xf32>
    %c0_10 = arith.constant 0 : index
    %c0_11 = arith.constant 0 : index
    %14 = vector.load %arg8[%c0_10, %c0_11] : memref<32x128xf32, #tpu.memory_space<vmem>>, vector<32x128xf32>
    %cst_12 = arith.constant dense<0.000000e+00> : vector<64x128xf32>
    %15 = tpu.matmul %4, %14, %cst_12 {dimension_numbers = #tpu.dot_dimension_numbers<[1], [0], [0], [1], [0, 0, 1, 1], [], []>, precision = #tpu.contract_precision<fp32>} : vector<64x32xf32>, vector<32x128xf32>, vector<64x128xf32> -> vector<64x128xf32>
    %c0_13 = arith.constant 0 : index
    %c0_14 = arith.constant 0 : index
    %16 = vector.load %arg9[%c0_13, %c0_14] : memref<1x128xf32, #tpu.memory_space<vmem>>, vector<1x128xf32>
    %17 = vector.broadcast %16 : vector<1x128xf32> to vector<64x128xf32>
    %18 = arith.addf %15, %17 : vector<64x128xf32>
    %c0_15 = arith.constant 0 : index
    %c0_16 = arith.constant 0 : index
    %c0_17 = arith.constant 0 : index
    %19 = vector.load %arg6[%c0_15, %c0_16, %c0_17] : memref<2x32x32xf32, #tpu.memory_space<vmem>>, vector<1x32x32xf32>
    %20 = vector.shape_cast %19 : vector<1x32x32xf32> to vector<32x32xf32>
    %cst_18 = arith.constant dense<0.000000e+00> : vector<16x32xf32>
    %21 = tpu.matmul %13, %20, %cst_18 {dimension_numbers = #tpu.dot_dimension_numbers<[1], [0], [0], [1], [0, 0, 1, 1], [], []>, precision = #tpu.contract_precision<fp32>} : vector<16x32xf32>, vector<32x32xf32>, vector<16x32xf32> -> vector<16x32xf32>
    %cst_19 = arith.constant dense<0.000000e+00> : vector<64x16xf32>
    %22 = tpu.matmul %4, %21, %cst_19 {dimension_numbers = #tpu.dot_dimension_numbers<[1], [1], [0], [0], [0, 0, 1, 0], [], []>, precision = #tpu.contract_precision<fp32>} : vector<64x32xf32>, vector<16x32xf32>, vector<64x16xf32> -> vector<64x16xf32>
    %cst_20 = arith.constant 2.000000e-01 : f32
    %23 = vector.broadcast %cst_20 : f32 to vector<64x16xf32>
    %24 = arith.mulf %23, %22 : vector<64x16xf32>
    %25 = arith.maximumf %22, %24 : vector<64x16xf32>
    %cst_21 = arith.constant 0.000000e+00 : f32
    %26 = vector.broadcast %cst_21 : f32 to vector<64x16xf32>
    %27 = arith.cmpf ogt, %6, %26 : vector<64x16xf32>
    %cst_22 = arith.constant -1.000000e+30 : f32
    %28 = vector.broadcast %cst_22 : f32 to vector<64x16xf32>
    %29 = arith.select %27, %25, %28 : vector<64x16xi1>, vector<64x16xf32>
    %cst_23 = arith.constant dense<0xFF800000> : vector<64xf32>
    %30 = vector.multi_reduction <maximumf>, %29, %cst_23 [1] : vector<64x16xf32> to vector<64xf32>
    %31 = vector.shape_cast %30 : vector<64xf32> to vector<64x1xf32>
    %32 = vector.broadcast %31 : vector<64x1xf32> to vector<64x16xf32>
    %33 = arith.subf %29, %32 : vector<64x16xf32>
    %34 = math.exp %33 : vector<64x16xf32>
    %35 = arith.mulf %34, %6 : vector<64x16xf32>
    %cst_24 = arith.constant dense<0.000000e+00> : vector<64xf32>
    %36 = vector.multi_reduction <add>, %35, %cst_24 [1] : vector<64x16xf32> to vector<64xf32>
    %37 = vector.shape_cast %36 : vector<64xf32> to vector<64x1xf32>
    %cst_25 = arith.constant 9.99999968E-21 : f32
    %38 = vector.broadcast %cst_25 : f32 to vector<64x1xf32>
    %39 = arith.maximumf %37, %38 : vector<64x1xf32>
    %40 = vector.broadcast %39 : vector<64x1xf32> to vector<64x16xf32>
    %41 = arith.divf %35, %40 : vector<64x16xf32>
    %c0_26 = arith.constant 0 : index
    %c0_27 = arith.constant 0 : index
    %c0_28 = arith.constant 0 : index
    %42 = vector.load %arg7[%c0_26, %c0_27, %c0_28] : memref<2x32x128xf32, #tpu.memory_space<vmem>>, vector<1x32x128xf32>
    %43 = vector.shape_cast %42 : vector<1x32x128xf32> to vector<32x128xf32>
    %cst_29 = arith.constant dense<0.000000e+00> : vector<16x128xf32>
    %44 = tpu.matmul %13, %43, %cst_29 {dimension_numbers = #tpu.dot_dimension_numbers<[1], [0], [0], [1], [0, 0, 1, 1], [], []>, precision = #tpu.contract_precision<fp32>} : vector<16x32xf32>, vector<32x128xf32>, vector<16x128xf32> -> vector<16x128xf32>
    %cst_30 = arith.constant dense<0.000000e+00> : vector<64x128xf32>
    %45 = tpu.matmul %41, %44, %cst_30 {dimension_numbers = #tpu.dot_dimension_numbers<[1], [0], [0], [1], [0, 0, 1, 1], [], []>, precision = #tpu.contract_precision<fp32>} : vector<64x16xf32>, vector<16x128xf32>, vector<64x128xf32> -> vector<64x128xf32>
    %46 = arith.addf %18, %45 : vector<64x128xf32>
    %c1 = arith.constant 1 : index
    %c0_31 = arith.constant 0 : index
    %c0_32 = arith.constant 0 : index
    %47 = vector.load %arg6[%c1, %c0_31, %c0_32] : memref<2x32x32xf32, #tpu.memory_space<vmem>>, vector<1x32x32xf32>
    %48 = vector.shape_cast %47 : vector<1x32x32xf32> to vector<32x32xf32>
    %cst_33 = arith.constant dense<0.000000e+00> : vector<16x32xf32>
    %49 = tpu.matmul %13, %48, %cst_33 {dimension_numbers = #tpu.dot_dimension_numbers<[1], [0], [0], [1], [0, 0, 1, 1], [], []>, precision = #tpu.contract_precision<fp32>} : vector<16x32xf32>, vector<32x32xf32>, vector<16x32xf32> -> vector<16x32xf32>
    %cst_34 = arith.constant dense<0.000000e+00> : vector<64x16xf32>
    %50 = tpu.matmul %4, %49, %cst_34 {dimension_numbers = #tpu.dot_dimension_numbers<[1], [1], [0], [0], [0, 0, 1, 0], [], []>, precision = #tpu.contract_precision<fp32>} : vector<64x32xf32>, vector<16x32xf32>, vector<64x16xf32> -> vector<64x16xf32>
    %cst_35 = arith.constant 2.000000e-01 : f32
    %51 = vector.broadcast %cst_35 : f32 to vector<64x16xf32>
    %52 = arith.mulf %51, %50 : vector<64x16xf32>
    %53 = arith.maximumf %50, %52 : vector<64x16xf32>
    %cst_36 = arith.constant 0.000000e+00 : f32
    %54 = vector.broadcast %cst_36 : f32 to vector<64x16xf32>
    %55 = arith.cmpf ogt, %6, %54 : vector<64x16xf32>
    %cst_37 = arith.constant -1.000000e+30 : f32
    %56 = vector.broadcast %cst_37 : f32 to vector<64x16xf32>
    %57 = arith.select %55, %53, %56 : vector<64x16xi1>, vector<64x16xf32>
    %cst_38 = arith.constant dense<0xFF800000> : vector<64xf32>
    %58 = vector.multi_reduction <maximumf>, %57, %cst_38 [1] : vector<64x16xf32> to vector<64xf32>
    %59 = vector.shape_cast %58 : vector<64xf32> to vector<64x1xf32>
    %60 = vector.broadcast %59 : vector<64x1xf32> to vector<64x16xf32>
    %61 = arith.subf %57, %60 : vector<64x16xf32>
    %62 = math.exp %61 : vector<64x16xf32>
    %63 = arith.mulf %62, %6 : vector<64x16xf32>
    %cst_39 = arith.constant dense<0.000000e+00> : vector<64xf32>
    %64 = vector.multi_reduction <add>, %63, %cst_39 [1] : vector<64x16xf32> to vector<64xf32>
    %65 = vector.shape_cast %64 : vector<64xf32> to vector<64x1xf32>
    %cst_40 = arith.constant 9.99999968E-21 : f32
    %66 = vector.broadcast %cst_40 : f32 to vector<64x1xf32>
    %67 = arith.maximumf %65, %66 : vector<64x1xf32>
    %68 = vector.broadcast %67 : vector<64x1xf32> to vector<64x16xf32>
    %69 = arith.divf %63, %68 : vector<64x16xf32>
    %c1_41 = arith.constant 1 : index
    %c0_42 = arith.constant 0 : index
    %c0_43 = arith.constant 0 : index
    %70 = vector.load %arg7[%c1_41, %c0_42, %c0_43] : memref<2x32x128xf32, #tpu.memory_space<vmem>>, vector<1x32x128xf32>
    %71 = vector.shape_cast %70 : vector<1x32x128xf32> to vector<32x128xf32>
    %cst_44 = arith.constant dense<0.000000e+00> : vector<16x128xf32>
    %72 = tpu.matmul %13, %71, %cst_44 {dimension_numbers = #tpu.dot_dimension_numbers<[1], [0], [0], [1], [0, 0, 1, 1], [], []>, precision = #tpu.contract_precision<fp32>} : vector<16x32xf32>, vector<32x128xf32>, vector<16x128xf32> -> vector<16x128xf32>
    %cst_45 = arith.constant dense<0.000000e+00> : vector<64x128xf32>
    %73 = tpu.matmul %69, %72, %cst_45 {dimension_numbers = #tpu.dot_dimension_numbers<[1], [0], [0], [1], [0, 0, 1, 1], [], []>, precision = #tpu.contract_precision<fp32>} : vector<64x16xf32>, vector<16x128xf32>, vector<64x128xf32> -> vector<64x128xf32>
    %74 = arith.addf %46, %73 : vector<64x128xf32>
    %c0_46 = arith.constant 0 : index
    %c0_47 = arith.constant 0 : index
    %75 = vector.load %arg10[%c0_46, %c0_47] : memref<64x128xf32, #tpu.memory_space<vmem>>, vector<64x128xf32>
    tpu.vector_store %arg10[%c0_46, %c0_47], %74 {strides = array<i32>} : memref<64x128xf32, #tpu.memory_space<vmem>>, vector<64x128xf32>,
    return
  }
  func.func @transform_0(%arg0: i32) -> (i32, i32) {
    %c0_i32 = arith.constant 0 : i32
    %c0_i32_0 = arith.constant 0 : i32
    %c0_i32_1 = arith.constant 0 : i32
    return %c0_i32, %c0_i32_0 : i32, i32
  }
  func.func @transform_1(%arg0: i32) -> (i32, i32) {
    %c0_i32 = arith.constant 0 : i32
    %c0_i32_0 = arith.constant 0 : i32
    %c0_i32_1 = arith.constant 0 : i32
    return %c0_i32, %c0_i32_0 : i32, i32
  }
  func.func @transform_2(%arg0: i32) -> (i32, i32) {
    %c0_i32 = arith.constant 0 : i32
    %c0_i32_0 = arith.constant 0 : i32
    %c0_i32_1 = arith.constant 0 : i32
    return %c0_i32, %c0_i32_0 : i32, i32
  }
  func.func @transform_3(%arg0: i32) -> (i32, i32) {
    %c0_i32 = arith.constant 0 : i32
    %c0_i32_0 = arith.constant 0 : i32
    %c0_i32_1 = arith.constant 0 : i32
    return %c0_i32, %c0_i32_0 : i32, i32
  }
  func.func @transform_4(%arg0: i32) -> (i32, i32) {
    %c0_i32 = arith.constant 0 : i32
    %c0_i32_0 = arith.constant 0 : i32
    %c0_i32_1 = arith.constant 0 : i32
    return %c0_i32, %c0_i32_0 : i32, i32
  }
  func.func @transform_5(%arg0: i32) -> (i32, i32, i32) {
    %c0_i32 = arith.constant 0 : i32
    %c0_i32_0 = arith.constant 0 : i32
    %c0_i32_1 = arith.constant 0 : i32
    %c0_i32_2 = arith.constant 0 : i32
    return %c0_i32, %c0_i32_0, %c0_i32_1 : i32, i32, i32
  }
  func.func @transform_6(%arg0: i32) -> (i32, i32, i32) {
    %c0_i32 = arith.constant 0 : i32
    %c0_i32_0 = arith.constant 0 : i32
    %c0_i32_1 = arith.constant 0 : i32
    %c0_i32_2 = arith.constant 0 : i32
    return %c0_i32, %c0_i32_0, %c0_i32_1 : i32, i32, i32
  }
  func.func @transform_7(%arg0: i32) -> (i32, i32) {
    %c0_i32 = arith.constant 0 : i32
    %c0_i32_0 = arith.constant 0 : i32
    %c0_i32_1 = arith.constant 0 : i32
    return %c0_i32, %c0_i32_0 : i32, i32
  }
  func.func @transform_8(%arg0: i32) -> (i32, i32) {
    %c0_i32 = arith.constant 0 : i32
    %c0_i32_0 = arith.constant 0 : i32
    %c0_i32_1 = arith.constant 0 : i32
    return %c0_i32, %c0_i32_0 : i32, i32
  }
  func.func @transform_9(%arg0: i32) -> (i32, i32) {
    %c0_i32 = arith.constant 0 : i32
    %c0_i32_0 = arith.constant 0 : i32
    return %arg0, %c0_i32 : i32, i32
  }
}

</mosaic_0001>

<bundles_post_ra>
// kernel: tpu_custom_call.1
= control target key start
LH: loop header
LB: loop body
LE: loop exit
PB: predicated region body
PF: predicated region fallthrough
CT: control target
= control target key end

     0   :  { %14 = vsyncpa [#allocation3], 0  ;;  %s13342_s0 = inlined_call_operand.vmem [shape: f32[128,32], index: 0, kind: input, shape index: {}]   ;;  %s13343_s1 = inlined_call_operand.vmem [shape: f32[128,16], index: 1, kind: input, shape index: {}]   ;;  %s13344_s2 = inlined_call_operand.vmem [shape: f32[16,128], index: 2, kind: input, shape index: {}]   ;;  %s13345_s3 = inlined_call_operand.vmem [shape: f32[32,32], index: 3, kind: input, shape index: {}]   ;;  %s13346_s4 = inlined_call_operand.vmem [shape: f32[1,32], index: 4, kind: input, shape index: {}]   ;;  %s13347_s5 = inlined_call_operand.vmem [shape: f32[2,32,32], index: 5, kind: input, shape index: {}]   ;;  %s13348_s6 = inlined_call_operand.vmem [shape: f32[2,32,128], index: 6, kind: input, shape index: {}]   ;;  %s13349_s7 = inlined_call_operand.vmem [shape: f32[32,128], index: 7, kind: input, shape index: {}]   ;;  %s13350_s8 = inlined_call_operand.vmem [shape: f32[1,128], index: 8, kind: input, shape index: {}]   ;;  %s13351_s9 = inlined_call_operand.hbm [shape: f32[128,128], index: 9, kind: output, shape index: {}]  }
   0x1   :  { %16 = vsyncpa [#allocation3 + $0x1], 0  ;;  %s11670_s30 = smov 0   ;;  %s11672_s10 = smov 0  }
   0x2   :  { %s11674_s11 = smov 0   ;;  %s11676_s12 = smov 0  }
   0x3 LB: > { %s11691_s13 = sadd.s32 4294967295, %s11615_s12   ;;  %s8637_s14 = sadd.s32 4294967294, %s11615_s12   ;;  %s11615_s12 = sphi %s11676_s12, %s13464_s12   ;;  %s11611_s11 = sphi %s11674_s11, %s13463_s11   ;;  %s11607_s10 = sphi %s11672_s10, %s13462_s10   ;;  %s11603_s30 = sphi %s11670_s30, %s13461_s30  }
   0x4   : > { %s11695_s15 = sadd.s32 1, %s11615_s12   ;;  %s218_s16 = sadd.s32 1, %s11611_s11 }
   0x5   : > { %s215_s17 = ssub.s32 %s11615_s12, %s11695_s15  ;;  %p228_p0 = scmp.ne.s32.totalorder %s11611_s11, %s11607_s10 }
   0x6   : > { %p216_p1 = scmp.eq.s32.totalorder %s215_s17, 0  ;;  %p229_p2 = scmp.eq.s32.totalorder %s11691_s13, 1 }
   0x7   : > { %p234_p3 = scmp.ne.s32.totalorder %s11607_s10, %s11603_s30  ;;  %p235_p4 = scmp.eq.s32.totalorder %s8637_s14, 1 }
   0x8   : > { %s11706_s18 = scalar_select %p216_p1, %s11611_s11, %s218_s16  }
   0x9   : > { %p11708_p5 = por %p229_p2, %p228_p0  ;;  %p11712_p6 = por %p235_p4, %p234_p3 }
   0xa   : > { %p8639_p7 = scmp.ge.s32.totalorder %s11615_s12, 1  ;;  %p280_p8 = scmp.lt.s32.totalorder %s11615_s12, 3 }
   0xc   : > { %p281_p9 = pnand %p8639_p7, %p280_p8 }
   0xe   : > { %284 = sbr.rel (%p281_p9) target bundleno = 2358 (0x936), region = 56 }
  0x15   : > { %v347_v0 = vld [vmem:[%s13345_s3] sm:$0xff]  ;;  %v348_v1 = vld [vmem:[%s13345_s3 + $0x8] sm:$0xff]  ;;  %v11727_v2 = vld [vmem:[%s13345_s3 + $0x10] sm:$0xff]  ;;  %vm351_vm0 = vcmask 261120   ;;  %s8641_s23 = sshll.u32 %s11691_s13, 6  ;;  %vm4380_vm2 = vcmask 130048  }
  0x16   : > { %v401_v3 = vand.u32 4294901760, %v347_v0  ;;  %v404_v4 = vand.u32 4294901760, %v348_v1  ;;  %v11732_v5 = vld [vmem:[%s13345_s3 + $0x18] sm:$0xff]  ;;  %v407_v6 = vand.u32 4294901760, %v11727_v2  ;;  %v313_v7 = vld [vmem:[%s13342_s0] sm:$0xff]  ;;  %v314_v12 = vld [vmem:[%s13342_s0 + $0x8] sm:$0xff]  ;;  %s12241_s28 = scalar_lea.vmem %s13342_s0, %s8641_s23  ;;  %s12761_s24 = scalar_lea.vmem %s13343_s1, %s8641_s23 }
  0x17   : > { %v317_v8 = vld [vmem:[%s13342_s0 + $0x20] sm:$0xff]  ;;  %v410_v9 = vand.u32 4294901760, %v11732_v5  ;;  %v353_v10 = vsel %vm351_vm0, %v313_v7, 0  ;;  %v318_v13 = vld [vmem:[%s13342_s0 + $0x28] sm:$0xff]  ;;  %v356_v17 = vsel %vm351_vm0, %v314_v12, 0  ;;  %v315_v18 = vld [vmem:[%s13342_s0 + $0x10] sm:$0xff] }
  0x18   : > { %v365_v11 = vsel %vm351_vm0, %v317_v8, 0  ;;  %v11750_v14 = vpack.c.bf16 %v404_v4, %v401_v3  ;;  %v11752_v15 = vand.u32 4294901760, %v353_v10  ;;  %v319_v19 = vld [vmem:[%s13342_s0 + $0x30] sm:$0xff]  ;;  %v316_v20 = vld [vmem:[%s13342_s0 + $0x18] sm:$0xff]  ;;  %v11772_v22 = vand.u32 4294901760, %v356_v17  ;;  %v321_v54 = vld [vmem:[%s13342_s0 + $0x40] sm:$0xff] }
  0x19   : > { %v11754_v16 = vand.u32 4294901760, %v365_v11  ;;  %v11770_v21 = vpack.c.bf16 %v410_v9, %v407_v6  ;;  %v368_v23 = vsel %vm351_vm0, %v318_v13, 0  ;;  %v11775_v24 = vsub.f32 %v347_v0, %v401_v3  ;;  %v320_v33 = vld [vmem:[%s13342_s0 + $0x38] sm:$0xff]  ;;  %v322_v59 = vld [vmem:[%s13342_s0 + $0x48] sm:$0xff]  ;;  %s308_s17 = sand.u32 1, %s11607_s10   ;;  %s8657_s25 = sshll.u32 %s11691_s13, 10 }
  0x1a   : > { %10513 = vmatprep.subr.bf16.mxu0 %v11750_v14  ;;  %11088 = vmatprep.subr.bf16.mxu1 %v11750_v14  ;;  %v11780_v25 = vsub.f32 %v353_v10, %v11752_v15  ;;  %v11785_v27 = vand.u32 4294901760, %v368_v23  ;;  %v11787_v28 = vsub.f32 %v348_v1, %v404_v4  ;;  %v11792_v29 = vsub.f32 %v356_v17, %v11772_v22  ;;  %v325_v17 = vld [vmem:[%s13342_s0 + $0x60] sm:$0xff]  ;;  %s8640_s21 = sshll.u32 %s308_s17, 6  ;;  %s13295_s29 = scalar_lea.hbm %s13351_s9, %s8657_s25 }
  0x1b   : > { %v11783_v26 = vsub.f32 %v365_v11, %v11754_v16  ;;  %10515 = vmatpush3.bf16.msra.mxu0 %v11750_v14  ;;  %11090 = vmatpush3.bf16.msra.mxu1 %v11750_v14  ;;  %v359_v30 = vsel %vm351_vm0, %v315_v18, 0  ;;  %v371_v31 = vsel %vm351_vm0, %v319_v19, 0  ;;  %v362_v32 = vsel %vm351_vm0, %v316_v20, 0  ;;  %v326_v18 = vld [vmem:[%s13342_s0 + $0x68] sm:$0xff]  ;;  %s310_s23 = scalar_lea.vmem [#allocation2], %s8640_s21  ;;  %s13301_s13 = scalar_lea.sflag [#allocation3], %s308_s17 }
  0x1c   : > { %10517 = vmatprep.subr.bf16.mxu0 %v11770_v21  ;;  %11089 = vmatprep.subr.bf16.mxu1 %v11770_v21  ;;  %v471_v34 = vand.u32 4294901760, %v11780_v25  ;;  %v11805_v36 = vsub.f32 %v368_v23, %v11785_v27  ;;  %v10528_v37 = vpack.c.bf16 %v11787_v28, %v11775_v24  ;;  %v481_v38 = vand.u32 4294901760, %v11792_v29  ;;  %s8583_s26 = sshll.u32 %s310_s23, 4  ;;  %s11617_s16 = smov [#allocation2]   ;;  %s13297_s26 = int_to_ptr.vmem [resolvable:$true] %s8583_s26 }
  0x1d   : > { %v511_v35 = vand.u32 4294901760, %v11783_v26  ;;  %v11810_v39 = vand.u32 4294901760, %v359_v30  ;;  %v11812_v40 = vand.u32 4294901760, %v371_v31  ;;  %v11814_v41 = vand.u32 4294901760, %v362_v32  ;;  %s11553_s14 = scalar_lea.vmem %s13297_s26, 1024  ;;  %s11557_s21 = sshll.u32 %s11617_s16, 4  ;;  %s11558_s21 = int_to_ptr.vmem [resolvable:$false] %s11557_s21 }
  0x1e   : > { %v472_v42 = vsub.f32 %v11780_v25, %v471_v34  ;;  %v521_v44 = vand.u32 4294901760, %v11805_v36  ;;  %v374_v45 = vsel %vm351_vm0, %v320_v33, 0  ;;  %v482_v46 = vsub.f32 %v11792_v29, %v481_v38  ;;  %p11554_p10 = scmp.ne.s32.totalorder %s13297_s26, %s11553_s14  ;;  %s11559_s22 = scalar_lea.vmem %s11558_s21, 2048 }
  0x1f   : > { %v512_v43 = vsub.f32 %v11783_v26, %v511_v35  ;;  %10519 = vmatpush3.bf16.msra.mxu0 %v11770_v21  ;;  %11091 = vmatpush3.bf16.msra.mxu1 %v11770_v21  ;;  %v11830_v47 = vsub.f32 %v359_v30, %v11810_v39  ;;  %v11833_v48 = vsub.f32 %v371_v31, %v11812_v40  ;;  %v11835_v49 = vand.u32 4294901760, %v374_v45  ;;  %p11560_p13 = scmp.lt.s32.totalorder %s13297_s26, %s11558_s21  ;;  %p11561_p0 = scmp.lt.s32.totalorder %s11559_s22, %s11553_s14 }
  0x20   : > { %v473_v50 = vand.u32 4294901760, %v472_v42  ;;  %v522_v52 = vsub.f32 %v11805_v36, %v521_v44  ;;  %10529 = vmatprep.subr.bf16.mxu0 %v10528_v37  ;;  %v11841_v53 = vsub.f32 %v362_v32, %v11814_v41  ;;  %v483_v55 = vand.u32 4294901760, %v482_v46  ;;  %p11555_p11 = pnand %p11554_p10, %p11708_p5 }
  0x21   : > { %v513_v51 = vand.u32 4294901760, %v512_v43  ;;  %v491_v56 = vand.u32 4294901760, %v11830_v47  ;;  %v531_v57 = vand.u32 4294901760, %v11833_v48  ;;  %v11849_v58 = vsub.f32 %v374_v45, %v11835_v49  ;;  %p11562_p1 = por %p11561_p0, %p11560_p13 }
  0x22   : > { %9350 = vmatprep.mubr.f32.mxu0 %v473_v50  ;;  %v523_v60 = vand.u32 4294901760, %v522_v52  ;;  %v501_v61 = vand.u32 4294901760, %v11841_v53  ;;  %v11858_v62 = vsub.f32 %v11727_v2, %v407_v6  ;;  %v11863_v63 = vsub.f32 %v11732_v5, %v410_v9  ;;  %v323_v2 = vld [vmem:[%s13342_s0 + $0x50] sm:$0xff]  ;;  %v324_v5 = vld [vmem:[%s13342_s0 + $0x58] sm:$0xff]  ;;  %p11556_p12 = pneg %p11555_p11 }
  0x23   : > { %9356 = vmatprep.mubr.f32.mxu1 %v513_v51  ;;  %9351 = vmatmul.mubr.f32.vlgmr.msra.gmra.mrb[0].mxu0 %v483_v55  ;;  %v492_v0 = vsub.f32 %v11830_v47, %v491_v56  ;;  %v532_v1 = vsub.f32 %v11833_v48, %v531_v57  ;;  %v541_v3 = vand.u32 4294901760, %v11849_v58  ;;  %v377_v4 = vsel %vm351_vm0, %v321_v54, 0 }
  0x24   : > { %9357 = vmatmul.mubr.f32.vlgmr.msra.gmra.mrb[0].mxu1 %v523_v60  ;;  %10531 = vmatpush3.bf16.msra.mxu0 %v10528_v37  ;;  %v502_v6 = vsub.f32 %v11841_v53, %v501_v61  ;;  %v10532_v7 = vpack.c.bf16 %v11863_v63, %v11858_v62  ;;  %v11884_v8 = vand.u32 4294901760, %v377_v4  ;;  %v380_v9 = vsel %vm351_vm0, %v322_v59, 0  ;;  %p11563_p2 = pnand %p11562_p1, %p11556_p12 }
  0x25   : > { %v493_v10 = vand.u32 4294901760, %v492_v0  ;;  %v533_v11 = vand.u32 4294901760, %v532_v1  ;;  %v542_v12 = vsub.f32 %v11849_v58, %v541_v3  ;;  %v11890_v13 = vand.u32 4294901760, %v380_v9 }
  0x26   : > { %v503_v19 = vand.u32 4294901760, %v502_v6  ;;  %10533 = vmatprep.subr.bf16.mxu0 %v10532_v7  ;;  %v11899_v20 = vsub.f32 %v377_v4, %v11884_v8  ;;  %v383_v23 = vsel %vm351_vm0, %v323_v2, 0  ;;  %v386_v30 = vsel %vm351_vm0, %v324_v5, 0  ;;  %v327_v6 = vld [vmem:[%s13342_s0 + $0x70] sm:$0xff] }
  0x27   : > { %9353 = vmatprep.mubr.f32.mxu0 %v493_v10  ;;  %9359 = vmatprep.mubr.f32.mxu1 %v533_v11  ;;  %v543_v31 = vand.u32 4294901760, %v542_v12  ;;  %v11904_v32 = vsub.f32 %v380_v9, %v11890_v13  ;;  %v11906_v33 = vand.u32 4294901760, %v383_v23  ;;  %v11908_v37 = vand.u32 4294901760, %v386_v30 }
  0x28   : > { %9354 = vmatmul.mubr.f32.gmra.mrb[2].mxu0 %v503_v19  ;;  %v551_v42 = vand.u32 4294901760, %v11899_v20  ;;  %v389_v43 = vsel %vm351_vm0, %v325_v17, 0  ;;  %v392_v45 = vsel %vm351_vm0, %v326_v18, 0  ;;  %v632_v46 = vand.u32 4294901760, %v11775_v24 }
  0x29   : > { %9360 = vmatmul.mubr.f32.gmra.mrb[2].mxu1 %v543_v31  ;;  %10535 = vmatpush3.bf16.msra.mxu0 %v10532_v7  ;;  %v561_v50 = vand.u32 4294901760, %v11904_v32  ;;  %v11916_v51 = vsub.f32 %v383_v23, %v11906_v33  ;;  %v11919_v52 = vsub.f32 %v386_v30, %v11908_v37  ;;  %v11921_v54 = vand.u32 4294901760, %v389_v43 }
  0x2a   : > { %v552_v55 = vsub.f32 %v11899_v20, %v551_v42  ;;  %9414 = vmatprep.mubr.f32.mxu0 %v11780_v25  ;;  %10537 = vmatprep.subr.bf16.mxu0 %v11750_v14  ;;  %v11928_v59 = vand.u32 4294901760, %v392_v45  ;;  %v633_v60 = vsub.f32 %v11775_v24, %v632_v46  ;;  %v639_v0 = vand.u32 4294901760, %v11787_v28  ;;  %v328_v24 = vld [vmem:[%s13342_s0 + $0x78] sm:$0xff] }
  0x2b   : > { %v562_v1 = vsub.f32 %v11904_v32, %v561_v50  ;;  %v571_v4 = vand.u32 4294901760, %v11916_v51  ;;  %v581_v2 = vand.u32 4294901760, %v11919_v52  ;;  %v11938_v5 = vsub.f32 %v389_v43, %v11921_v54 }
  0x2c   : > { %v553_v7 = vand.u32 4294901760, %v552_v55  ;;  %9415 = vmatmul.mubr.f32.vlgmr.msra.gmra.mrb[4].mxu0 %v11792_v29  ;;  %v11948_v9 = vsub.f32 %v392_v45, %v11928_v59  ;;  %v634_v10 = vand.u32 4294901760, %v633_v60  ;;  %v640_v11 = vsub.f32 %v11787_v28, %v639_v0 }
  0x2d   : > { %v563_v12 = vand.u32 4294901760, %v562_v1  ;;  %v572_v17 = vsub.f32 %v11916_v51, %v571_v4  ;;  %9417 = vmatprep.mubr.f32.mxu0 %v11830_v47  ;;  %10539 = vmatpush3.bf16.msra.mxu0 %v11750_v14  ;;  %v582_v18 = vsub.f32 %v11919_v52, %v581_v2  ;;  %v13352_v19 = vand.u32 4294901760, %v11938_v5 }
  0x2e   : > { %9362 = vmatprep.mubr.f32.mxu1 %v553_v7  ;;  %v601_v23 = vand.u32 4294901760, %v11948_v9  ;;  %v641_v30 = vand.u32 4294901760, %v640_v11  ;;  %v395_v28 = vsel %vm351_vm0, %v327_v6, 0  ;;  %v398_v31 = vsel %vm351_vm0, %v328_v24, 0  ;;  %10541 = vmatprep.subr.bf16.mxu0 %v11770_v21 }
  0x2f   : > { %9363 = vmatmul.mubr.f32.gmra.mrb[4].mxu1 %v563_v12  ;;  %v573_v43 = vand.u32 4294901760, %v572_v17  ;;  %v583_v45 = vand.u32 4294901760, %v582_v18  ;;  %v592_v55 = vsub.f32 %v11938_v5, %v13352_v19  ;;  %v11967_v60 = vand.u32 4294901760, %v395_v28 }
  0x30   : > { %9418 = vmatmul.mubr.f32.gmra.mrb[6].mxu0 %v11841_v53  ;;  %v602_v1 = vsub.f32 %v11948_v9, %v601_v23  ;;  %v10520_v6 = vpack.c.bf16 %v641_v30, %v634_v10  ;;  %v11973_v7 = vand.u32 4294901760, %v398_v31  ;;  %v646_v24 = vand.u32 4294901760, %v11858_v62 }
  0x31   : > { %9365 = vmatprep.mubr.f32.mxu1 %v573_v43  ;;  %v593_v11 = vand.u32 4294901760, %v592_v55  ;;  %9420 = vmatprep.mubr.f32.mxu0 %v11783_v26  ;;  %v11978_v12 = vsub.f32 %v395_v28, %v11967_v60  ;;  %v653_v17 = vand.u32 4294901760, %v11863_v63  ;;  %v10544_v18 = vpack.c.bf16 %v639_v0, %v632_v46 }
  0x32   : > { %10521 = vmatprep.subr.bf16.mxu1 %v10520_v6  ;;  %v11982_v19 = vsub.f32 %v398_v31, %v11973_v7  ;;  %v647_v10 = vsub.f32 %v11858_v62, %v646_v24  ;;  %10543 = vmatpush3.bf16.msra.mxu0 %v11770_v21  ;;  %v603_v30 = vand.u32 4294901760, %v602_v1  ;;  %v13403_v25 = vand.u32 4294901760, %v11938_v5 }
  0x33   : > { %9366 = vmatmul.mubr.f32.gmra.mrb[6].mxu1 %v583_v45  ;;  %v611_v43 = vand.u32 4294901760, %v11978_v12  ;;  %v654_v55 = vsub.f32 %v11863_v63, %v653_v17  ;;  %10545 = vmatprep.subr.bf16.mxu0 %v10544_v18 }
  0x34   : > { %9368 = vmatprep.mubr.f32.mxu1 %v593_v11  ;;  %9421 = vmatmul.mubr.f32.gmra.mrb[8].mxu0 %v11805_v36  ;;  %v621_v46 = vand.u32 4294901760, %v11982_v19  ;;  %v648_v0 = vand.u32 4294901760, %v647_v10 }
  0x35   : > { %10523 = vmatpush3.bf16.msra.mxu1 %v10520_v6  ;;  %v612_v62 = vsub.f32 %v11978_v12, %v611_v43  ;;  %9423 = vmatprep.mubr.f32.mxu0 %v11833_v48  ;;  %v655_v28 = vand.u32 4294901760, %v654_v55  ;;  %v10548_v6 = vpack.c.bf16 %v653_v17, %v646_v24 }
  0x36   : > { %v622_v31 = vsub.f32 %v11982_v19, %v621_v46 }
  0x37   : > { %9369 = vmatmul.mubr.f32.gmra.mrb[8].mxu1 %v603_v30  ;;  %v613_v45 = vand.u32 4294901760, %v612_v62  ;;  %v10524_v63 = vpack.c.bf16 %v655_v28, %v648_v0 }
  0x38   : > { %v623_v1 = vand.u32 4294901760, %v622_v31  ;;  %9424 = vmatmul.mubr.f32.gmra.mrb[10].mxu0 %v11849_v58 }
  0x39   : > { %9371 = vmatprep.mubr.f32.mxu1 %v613_v45  ;;  %10525 = vmatprep.subr.bf16.mxu1 %v10524_v63 }
  0x3a   : > { %10527 = vmatpush3.bf16.msra.mxu1 %v10524_v63  ;;  %9426 = vmatprep.mubr.f32.mxu0 %v11899_v20 }
  0x3b   : > { %9372 = vmatmul.mubr.f32.gmra.mrb[10].mxu1 %v623_v1 }
  0x3c   : > { %9382 = vmatprep.mubr.f32.mxu1 %v11752_v15  ;;  %9427 = vmatmul.mubr.f32.gmra.mrb[12].mxu0 %v11904_v32 }
  0x3d   : > { %9429 = vmatprep.mubr.f32.mxu0 %v11916_v51 }
  0x3f   : > { %9383 = vmatmul.mubr.f32.vlgmr.msra.gmra.mrb[12].mxu1 %v11772_v22 }
  0x40   : > { %9385 = vmatprep.mubr.f32.mxu1 %v11810_v39  ;;  %9430 = vmatmul.mubr.f32.gmra.mrb[14].mxu0 %v11919_v52 }
  0x41   : > { %9432 = vmatprep.mubr.f32.mxu0 %v11938_v5 }
  0x43   : > { %9386 = vmatmul.mubr.f32.gmra.mrb[14].mxu1 %v11814_v41 }
  0x44   : > { %9433 = vmatmul.mubr.f32.gmra.mrb[16].mxu0 %v11948_v9  ;;  %9388 = vmatprep.mubr.f32.mxu1 %v11754_v16 }
  0x45   : > { %9435 = vmatprep.mubr.f32.mxu0 %v11978_v12 }
  0x47   : > { %9389 = vmatmul.mubr.f32.gmra.mrb[0].mxu1 %v11785_v27 }
  0x48   : > { %9436 = vmatmul.mubr.f32.gmra.mrb[18].mxu0 %v11982_v19  ;;  %9391 = vmatprep.mubr.f32.mxu1 %v11812_v40 }
  0x49   : > { %9446 = vmatprep.mubr.f32.mxu0 %v471_v34 }
  0x4b   : > { %9392 = vmatmul.mubr.f32.gmra.mrb[2].mxu1 %v11835_v49 }
  0x4c   : > { %9447 = vmatmul.mubr.f32.vlgmr.msra.gmra.mrb[4].mxu0 %v481_v38  ;;  %9394 = vmatprep.mubr.f32.mxu1 %v11884_v8 }
  0x4d   : > { %9449 = vmatprep.mubr.f32.mxu0 %v491_v56  ;;  %10547 = vmatpush3.bf16.msra.mxu0 %v10544_v18 }
  0x4e   : > { %10549 = vmatprep.subr.bf16.mxu0 %v10548_v6 }
  0x4f   : > { %9395 = vmatmul.mubr.f32.gmra.mrb[4].mxu1 %v11890_v13 }
  0x50   : > { %9450 = vmatmul.mubr.f32.gmra.mrb[6].mxu0 %v501_v61  ;;  %9397 = vmatprep.mubr.f32.mxu1 %v11906_v33 }
  0x51   : > { %9452 = vmatprep.mubr.f32.mxu0 %v511_v35  ;;  %10551 = vmatpush3.bf16.msra.mxu0 %v10548_v6 }
  0x52   : > { %10553 = vmatprep.subr.bf16.mxu0 %v11750_v14 }
  0x53   : > { %9398 = vmatmul.mubr.f32.gmra.mrb[6].mxu1 %v11908_v37 }
  0x54   : > { %9453 = vmatmul.mubr.f32.gmra.mrb[8].mxu0 %v521_v44  ;;  %9400 = vmatprep.mubr.f32.mxu1 %v11921_v54 }
  0x55   : > { %9455 = vmatprep.mubr.f32.mxu0 %v531_v57 }
  0x57   : > { %9401 = vmatmul.mubr.f32.gmra.mrb[8].mxu1 %v11928_v59 }
  0x58   : > { %9456 = vmatmul.mubr.f32.gmra.mrb[10].mxu0 %v541_v3  ;;  %9403 = vmatprep.mubr.f32.mxu1 %v11967_v60 }
  0x59   : > { %9458 = vmatprep.mubr.f32.mxu0 %v551_v42 }
  0x5b   : > { %9404 = vmatmul.mubr.f32.gmra.mrb[10].mxu1 %v11973_v7 }
  0x5c   : > { %9459 = vmatmul.mubr.f32.gmra.mrb[12].mxu0 %v561_v50 }
  0x5d   : > { %9461 = vmatprep.mubr.f32.mxu0 %v571_v4 }
  0x60   : > { %9462 = vmatmul.mubr.f32.gmra.mrb[14].mxu0 %v581_v2 }
  0x61   : > { %9464 = vmatprep.mubr.f32.mxu0 %v13403_v25 }
  0x64   : > { %9465 = vmatmul.mubr.f32.gmra.mrb[16].mxu0 %v601_v23 }
  0x65   : > { %9467 = vmatprep.mubr.f32.mxu0 %v611_v43 }
  0x68   : > { %9468 = vmatmul.mubr.f32.gmra.mrb[18].mxu0 %v621_v46 }
  0x69   : > { %9478 = vmatprep.mubr.f32.mxu0 %v11752_v15 }
  0x6c   : > { %9479 = vmatmul.mubr.f32.vlgmr.msra.gmra.mrb[4].mxu0 %v11772_v22 }
  0x6d   : > { %9481 = vmatprep.mubr.f32.mxu0 %v11810_v39  ;;  %10555 = vmatpush3.bf16.msra.mxu0 %v11750_v14 }
  0x6e   : > { %10557 = vmatprep.subr.bf16.mxu0 %v11770_v21 }
  0x70   : > { %9482 = vmatmul.mubr.f32.gmra.mrb[6].mxu0 %v11814_v41 }
  0x71   : > { %9484 = vmatprep.mubr.f32.mxu0 %v11754_v16  ;;  %10559 = vmatpush3.bf16.msra.mxu0 %v11770_v21 }
  0x74   : > { %9485 = vmatmul.mubr.f32.gmra.mrb[8].mxu0 %v11785_v27 }
  0x75   : > { %9487 = vmatprep.mubr.f32.mxu0 %v11812_v40 }
  0x78   : > { %9488 = vmatmul.mubr.f32.gmra.mrb[10].mxu0 %v11835_v49 }
  0x79   : > { %9490 = vmatprep.mubr.f32.mxu0 %v11884_v8 }
  0x7c   : > { %9491 = vmatmul.mubr.f32.gmra.mrb[12].mxu0 %v11890_v13 }
  0x7d   : > { %9493 = vmatprep.mubr.f32.mxu0 %v11906_v33 }
  0x80   : > { %9494 = vmatmul.mubr.f32.gmra.mrb[14].mxu0 %v11908_v37 }
  0x81   : > { %9496 = vmatprep.mubr.f32.mxu0 %v11921_v54 }
  0x84   : > { %9497 = vmatmul.mubr.f32.gmra.mrb[16].mxu0 %v11928_v59 }
  0x85   : > { %9499 = vmatprep.mubr.f32.mxu0 %v11967_v60 }
  0x88   : > { %9500 = vmatmul.mubr.f32.gmra.mrb[18].mxu0 %v11973_v7 }
  0x89   : > { %9510 = vmatprep.mubr.f32.mxu0 %v11752_v15 }
  0x8c   : > { %9511 = vmatmul.mubr.f32.vlgmr.msra.gmra.mrb[4].mxu0 %v11772_v22  ;;  %v1530_v22 = vld [vmem:[%s13344_s2] sm:$0xff] }
  0x8d   : > { %9513 = vmatprep.mubr.f32.mxu0 %v11810_v39  ;;  %v12089_v26 = vand.u32 4294901760, %v1530_v22 }
  0x90   : > { %9514 = vmatmul.mubr.f32.gmra.mrb[6].mxu0 %v11814_v41 }
  0x91   : > { %9516 = vmatprep.mubr.f32.mxu0 %v11754_v16 }
  0x94   : > { %9517 = vmatmul.mubr.f32.gmra.mrb[8].mxu0 %v11785_v27  ;;  %v12092_v27 = vsub.f32 %v1530_v22, %v12089_v26 }
  0x95   : > { %9519 = vmatprep.mubr.f32.mxu0 %v11812_v40 }
  0x96   : > { %v13355_v29 = vand.u32 4294901760, %v12092_v27 }
  0x98   : > { %9520 = vmatmul.mubr.f32.gmra.mrb[10].mxu0 %v11835_v49  ;;  %v1623_v34 = vsub.f32 %v12092_v27, %v13355_v29 }
  0x99   : > { %9522 = vmatprep.mubr.f32.mxu0 %v11884_v8 }
  0x9a   : > { %v1624_v35 = vand.u32 4294901760, %v1623_v34 }
  0x9c   : > { %9523 = vmatmul.mubr.f32.gmra.mrb[12].mxu0 %v11890_v13  ;;  %9566 = vmatprep.mubr.f32.mxu1 %v1624_v35 }
  0x9d   : > { %9525 = vmatprep.mubr.f32.mxu0 %v11906_v33 }
  0xa0   : > { %9526 = vmatmul.mubr.f32.gmra.mrb[14].mxu0 %v11908_v37  ;;  %v1531_v37 = vld [vmem:[%s13344_s2 + $0x8] sm:$0xff] }
  0xa1   : > { %9528 = vmatprep.mubr.f32.mxu0 %v11921_v54  ;;  %v12117_v52 = vand.u32 4294901760, %v1531_v37 }
  0xa3   : > { %13404 = vst [vmem:[#allocation5_spill] sm:$0xff] %v12117_v52  ;;  %v12120_v23 = vsub.f32 %v1531_v37, %v12117_v52 }
  0xa4   : > { %9529 = vmatmul.mubr.f32.gmra.mrb[16].mxu0 %v11928_v59 }
  0xa5   : > { %9531 = vmatprep.mubr.f32.mxu0 %v11967_v60  ;;  %v13353_v62 = vand.u32 4294901760, %v12120_v23 }
  0xa8   : > { %9532 = vmatmul.mubr.f32.gmra.mrb[18].mxu0 %v11973_v7 }
  0xf6   : > { %v9352_v14 = vpop.f32.mrb[0].mxu0 }
  0xf7   : > { %v475_v15 = vpop.f32.mrb[1].mxu0 }
  0xfb   : > { %v9355_v16 = vpop.f32.mrb[2].mxu0 }
  0xfc   : > { %v495_v21 = vpop.f32.mrb[3].mxu0 }
 0x112   : > { %v9384_v36 = vpop.f32.mrb[12].mxu1 }
 0x113   : > { %v723_v38 = vadd.f32 %v9384_v36, %v9352_v14  ;;  %v716_v39 = vpop.f32.mrb[13].mxu1 }
 0x114   : > { %v717_v40 = vadd.f32 %v716_v39, %v475_v15  ;;  %v12140_v39 = vsub.f32 %v12120_v23, %v13353_v62 }
 0x116   : > { %v9387_v41 = vpop.f32.mrb[14].mxu1 }
 0x117   : > { %v735_v44 = vadd.f32 %v9387_v41, %v9355_v16  ;;  %v728_v47 = vpop.f32.mrb[15].mxu1 }
 0x118   : > { %v729_v48 = vadd.f32 %v728_v47, %v495_v21 }
 0x11a   : > { %v9390_v49 = vpop.f32.mrb[0].mxu1 }
 0x11b   : > { %v740_v53 = vpop.f32.mrb[1].mxu1 }
 0x11e   : > { %v9393_v56 = vpop.f32.mrb[2].mxu1 }
 0x11f   : > { %v752_v57 = vpop.f32.mrb[3].mxu1 }
 0x122   : > { %v12098_v58 = vpop.f32.mrb[4].mxu1 }
 0x123   : > { %v12100_v61 = vpop.f32.mrb[5].mxu1 }
 0x126   : > { %v12102_v3 = vpop.f32.mrb[6].mxu1 }
 0x127   : > { %v12104_v8 = vpop.f32.mrb[7].mxu1 }
 0x12a   : > { %v12106_v13 = vpop.f32.mrb[8].mxu1 }
 0x12b   : > { %v12108_v20 = vpop.f32.mrb[9].mxu1 }
 0x12e   : > { %v12110_v32 = vpop.f32.mrb[10].mxu1 }
 0x12f   : > { %v12112_v33 = vpop.f32.mrb[11].mxu1 }
 0x15f   : > { %v9512_v42 = vpop.f32.mrb[4].mxu0 }
 0x160   : > { %v11093_v50 = vadd.f32 %v9512_v42, %v723_v38  ;;  %v1436_v51 = vpop.f32.mrb[5].mxu0 }
 0x161   : > { %v11095_v54 = vadd.f32 %v1436_v51, %v717_v40 }
 0x162   : > { %v1543_v59 = vand.u32 4294901760, %v11093_v50 }
 0x163   : > { %v1540_v4 = vand.u32 4294901760, %v11095_v54  ;;  %v9515_v2 = vpop.f32.mrb[6].mxu0 }
 0x164   : > { %v1649_v5 = vsub.f32 %v11093_v50, %v1543_v59  ;;  %v11097_v9 = vadd.f32 %v9515_v2, %v735_v44  ;;  %v1448_v19 = vpop.f32.mrb[7].mxu0 }
 0x165   : > { %v12122_v60 = vpack.c.bf16 %v1543_v59, %v1540_v4  ;;  %v1642_v7 = vsub.f32 %v11095_v54, %v1540_v4  ;;  %v11099_v24 = vadd.f32 %v1448_v19, %v729_v48 }
 0x166   : > { %v1650_v11 = vand.u32 4294901760, %v1649_v5  ;;  %v1549_v12 = vand.u32 4294901760, %v11097_v9 }
 0x167   : > { %v1643_v17 = vand.u32 4294901760, %v1642_v7  ;;  %v1546_v18 = vand.u32 4294901760, %v11099_v24  ;;  %v9518_v10 = vpop.f32.mrb[8].mxu0  ;;  %10561 = vmatprep.subr.bf16.mxu1 %v12122_v60  ;;  %v12125_v30 = vpack.c.bf16 %v1649_v5, %v1642_v7 }
 0x168   : > { %v1663_v43 = vsub.f32 %v11097_v9, %v1549_v12  ;;  %v11100_v55 = vadd.f32 %v9518_v10, %v9390_v49  ;;  %v1460_v46 = vpop.f32.mrb[9].mxu0  ;;  %10563 = vmatpush3.bf16.msra.mxu1 %v12122_v60  ;;  %v1651_v0 = vsub.f32 %v1649_v5, %v1650_v11 }
 0x169   : > { %v12129_v28 = vpack.c.bf16 %v1549_v12, %v1546_v18  ;;  %v1656_v31 = vsub.f32 %v11099_v24, %v1546_v18  ;;  %v11101_v45 = vadd.f32 %v1460_v46, %v740_v53  ;;  %v1644_v63 = vsub.f32 %v1642_v7, %v1643_v17 }
 0x16a   : > { %v1664_v1 = vand.u32 4294901760, %v1663_v43  ;;  %v1555_v6 = vand.u32 4294901760, %v11100_v55  ;;  %v1652_v25 = vand.u32 4294901760, %v1651_v0  ;;  %v12131_v14 = vpack.c.bf16 %v1650_v11, %v1643_v17 }
 0x16b   : > { %v1657_v15 = vand.u32 4294901760, %v1656_v31  ;;  %v1552_v16 = vand.u32 4294901760, %v11101_v45  ;;  %v9521_v21 = vpop.f32.mrb[10].mxu0  ;;  %10565 = vmatprep.subr.bf16.mxu1 %v12129_v28  ;;  %v1645_v22 = vand.u32 4294901760, %v1644_v63  ;;  %v12134_v34 = vpack.c.bf16 %v1663_v43, %v1656_v31 }
 0x16c   : > { %v1677_v35 = vsub.f32 %v11100_v55, %v1555_v6  ;;  %v11102_v36 = vadd.f32 %v9521_v21, %v9393_v56  ;;  %v1472_v38 = vpop.f32.mrb[11].mxu0  ;;  %10567 = vmatpush3.bf16.msra.mxu1 %v12129_v28  ;;  %v1665_v40 = vsub.f32 %v1663_v43, %v1664_v1 }
 0x16d   : > { %v12142_v41 = vpack.c.bf16 %v1555_v6, %v1552_v16  ;;  %v1670_v44 = vsub.f32 %v11101_v45, %v1552_v16  ;;  %v11103_v47 = vadd.f32 %v1472_v38, %v752_v57  ;;  %v12144_v48 = vpack.c.bf16 %v1652_v25, %v1645_v22 }
 0x16e   : > { %v1678_v49 = vand.u32 4294901760, %v1677_v35  ;;  %v1561_v53 = vand.u32 4294901760, %v11102_v36  ;;  %v1658_v37 = vsub.f32 %v1656_v31, %v1657_v15  ;;  %v1666_v42 = vand.u32 4294901760, %v1665_v40 }
 0x16f   : > { %v1671_v56 = vand.u32 4294901760, %v1670_v44  ;;  %v1558_v50 = vand.u32 4294901760, %v11103_v47  ;;  %v9524_v51 = vpop.f32.mrb[12].mxu0  ;;  %10569 = vmatprep.subr.bf16.mxu1 %v12142_v41  ;;  %v12147_v54 = vpack.c.bf16 %v1677_v35, %v1670_v44  ;;  %v12149_v59 = vpack.c.bf16 %v1664_v1, %v1657_v15 }
 0x170   : > { %v1691_v4 = vsub.f32 %v11102_v36, %v1561_v53  ;;  %v11104_v2 = vadd.f32 %v9524_v51, %v12098_v58  ;;  %v1484_v5 = vpop.f32.mrb[13].mxu0  ;;  %10571 = vmatpush3.bf16.msra.mxu1 %v12142_v41  ;;  %v1659_v57 = vand.u32 4294901760, %v1658_v37  ;;  %v1679_v9 = vsub.f32 %v1677_v35, %v1678_v49 }
 0x171   : > { %v12153_v19 = vpack.c.bf16 %v1561_v53, %v1558_v50  ;;  %v1684_v7 = vsub.f32 %v11103_v47, %v1558_v50  ;;  %v11105_v24 = vadd.f32 %v1484_v5, %v12100_v61  ;;  %v1672_v11 = vsub.f32 %v1670_v44, %v1671_v56 }
 0x172   : > { %v1692_v12 = vand.u32 4294901760, %v1691_v4  ;;  %v1567_v17 = vand.u32 4294901760, %v11104_v2  ;;  %v12156_v18 = vpack.c.bf16 %v1666_v42, %v1659_v57  ;;  %v1680_v10 = vand.u32 4294901760, %v1679_v9 }
 0x173   : > { %v1685_v43 = vand.u32 4294901760, %v1684_v7  ;;  %v1564_v55 = vand.u32 4294901760, %v11105_v24  ;;  %v9527_v46 = vpop.f32.mrb[14].mxu0  ;;  %10573 = vmatprep.subr.bf16.mxu1 %v12153_v19  ;;  %v1673_v58 = vand.u32 4294901760, %v1672_v11  ;;  %v12159_v0 = vpack.c.bf16 %v1691_v4, %v1684_v7 }
 0x174   : > { %v1705_v31 = vsub.f32 %v11104_v2, %v1567_v17  ;;  %v11106_v45 = vadd.f32 %v9527_v46, %v12102_v3  ;;  %v1496_v63 = vpop.f32.mrb[15].mxu0  ;;  %10575 = vmatpush3.bf16.msra.mxu1 %v12153_v19  ;;  %v1693_v61 = vsub.f32 %v1691_v4, %v1692_v12  ;;  %v12163_v1 = vpack.c.bf16 %v1678_v49, %v1671_v56 }
 0x175   : > { %v12165_v6 = vpack.c.bf16 %v1567_v17, %v1564_v55  ;;  %v1698_v25 = vsub.f32 %v11105_v24, %v1564_v55  ;;  %v11107_v15 = vadd.f32 %v1496_v63, %v12104_v8  ;;  %v12168_v16 = vpack.c.bf16 %v1680_v10, %v1673_v58 }
 0x176   : > { %v1706_v21 = vand.u32 4294901760, %v1705_v31  ;;  %v1573_v22 = vand.u32 4294901760, %v11106_v45  ;;  %v1686_v35 = vsub.f32 %v1684_v7, %v1685_v43  ;;  %v1694_v36 = vand.u32 4294901760, %v1693_v61 }
 0x177   : > { %v1699_v38 = vand.u32 4294901760, %v1698_v25  ;;  %v1570_v40 = vand.u32 4294901760, %v11107_v15  ;;  %v9530_v3 = vpop.f32.mrb[16].mxu0  ;;  %10577 = vmatprep.subr.bf16.mxu1 %v12165_v6  ;;  %v12171_v44 = vpack.c.bf16 %v1705_v31, %v1698_v25  ;;  %v12173_v47 = vpack.c.bf16 %v1692_v12, %v1685_v43 }
 0x178   : > { %v1719_v49 = vsub.f32 %v11106_v45, %v1573_v22  ;;  %v11108_v53 = vadd.f32 %v9530_v3, %v12106_v13  ;;  %v1508_v37 = vpop.f32.mrb[17].mxu0  ;;  %10579 = vmatpush3.bf16.msra.mxu1 %v12165_v6  ;;  %v1687_v8 = vand.u32 4294901760, %v1686_v35  ;;  %v1707_v42 = vsub.f32 %v1705_v31, %v1706_v21 }
 0x179   : > { %v12177_v56 = vpack.c.bf16 %v1573_v22, %v1570_v40  ;;  %v1712_v50 = vsub.f32 %v11107_v15, %v1570_v40  ;;  %v11109_v51 = vadd.f32 %v1508_v37, %v12108_v20  ;;  %v1700_v4 = vsub.f32 %v1698_v25, %v1699_v38 }
 0x17a   : > { %v1720_v2 = vand.u32 4294901760, %v1719_v49  ;;  %v1579_v5 = vand.u32 4294901760, %v11108_v53  ;;  %v10604_v57 = vpack.c.bf16 %v1694_v36, %v1687_v8  ;;  %v1708_v9 = vand.u32 4294901760, %v1707_v42 }
 0x17b   : > { %v1713_v7 = vand.u32 4294901760, %v1712_v50  ;;  %v1576_v24 = vand.u32 4294901760, %v11109_v51  ;;  %v9533_v11 = vpop.f32.mrb[18].mxu0  ;;  %10581 = vmatprep.subr.bf16.mxu1 %v12177_v56  ;;  %v1701_v13 = vand.u32 4294901760, %v1700_v4  ;;  %v12181_v12 = vpack.c.bf16 %v1719_v49, %v1712_v50 }
 0x17c   : > { %v1733_v17 = vsub.f32 %v11108_v53, %v1579_v5  ;;  %v11110_v10 = vadd.f32 %v9533_v11, %v12110_v32  ;;  %v1520_v43 = vpop.f32.mrb[19].mxu0  ;;  %10583 = vmatpush3.bf16.msra.mxu1 %v12177_v56  ;;  %v1721_v20 = vsub.f32 %v1719_v49, %v1720_v2  ;;  %v12185_v55 = vpack.c.bf16 %v1706_v21, %v1699_v38 }
 0x17d   : > { %v12187_v46 = vpack.c.bf16 %v1579_v5, %v1576_v24  ;;  %v1726_v58 = vsub.f32 %v11109_v51, %v1576_v24  ;;  %v11111_v31 = vadd.f32 %v1520_v43, %v12112_v33  ;;  %v10608_v45 = vpack.c.bf16 %v1708_v9, %v1701_v13 }
 0x17e   : > { %v1734_v63 = vand.u32 4294901760, %v1733_v17  ;;  %v1585_v61 = vand.u32 4294901760, %v11110_v10  ;;  %v1714_v25 = vsub.f32 %v1712_v50, %v1713_v7  ;;  %v1722_v15 = vand.u32 4294901760, %v1721_v20  ;;  %v330_v20 = vld [vmem:[%s12241_s28] sm:$0xff] }
 0x17f   : > { %v1727_v22 = vand.u32 4294901760, %v1726_v58  ;;  %v1582_v35 = vand.u32 4294901760, %v11111_v31  ;;  %10585 = vmatprep.subr.bf16.mxu1 %v12187_v46  ;;  %v12191_v32 = vpack.c.bf16 %v1733_v17, %v1726_v58  ;;  %v12193_v36 = vpack.c.bf16 %v1720_v2, %v1713_v7 }
 0x180   : > { %v1747_v21 = vsub.f32 %v11110_v10, %v1585_v61  ;;  %10587 = vmatpush3.bf16.msra.mxu1 %v12187_v46  ;;  %v1715_v38 = vand.u32 4294901760, %v1714_v25  ;;  %v1735_v40 = vsub.f32 %v1733_v17, %v1734_v63  ;;  %v1634_v51 = vand.u32 4294901760, %v12140_v39  ;;  %v12233_v10 = vld [vmem:[%s13349_s7 + $0x18] sm:$0xff] }
 0x181   : > { %v12196_v3 = vpack.c.bf16 %v1585_v61, %v1582_v35  ;;  %v1740_v33 = vsub.f32 %v11111_v31, %v1582_v35  ;;  %v1728_v49 = vsub.f32 %v1726_v58, %v1727_v22  ;;  %v12198_v53 = vpack.c.bf16 %v1734_v63, %v1727_v22  ;;  %v331_v58 = vld [vmem:[%s12241_s28 + $0x8] sm:$0xff]  ;;  %v332_v31 = vld [vmem:[%s12241_s28 + $0x10] sm:$0xff]  ;;  %v334_v22 = vld [vmem:[%s12241_s28 + $0x20] sm:$0xff] }
 0x182   : > { %v1748_v37 = vand.u32 4294901760, %v1747_v21  ;;  %v10612_v8 = vpack.c.bf16 %v1722_v15, %v1715_v38  ;;  %v1736_v42 = vand.u32 4294901760, %v1735_v40  ;;  %v2235_v63 = vsel %vm351_vm0, %v330_v20, 0  ;;  %v333_v15 = vld [vmem:[%s12241_s28 + $0x18] sm:$0xff]  ;;  %v335_v35 = vld [vmem:[%s12241_s28 + $0x28] sm:$0xff] }
 0x183   : > { %v1741_v50 = vand.u32 4294901760, %v1740_v33  ;;  %10589 = vmatprep.subr.bf16.mxu1 %v12196_v3  ;;  %v1729_v4 = vand.u32 4294901760, %v1728_v49  ;;  %v12202_v2 = vpack.c.bf16 %v1747_v21, %v1740_v33  ;;  %v2238_v61 = vsel %vm351_vm0, %v331_v58, 0 }
 0x184   : > { %10591 = vmatpush3.bf16.msra.mxu1 %v12196_v3  ;;  %v1749_v5 = vsub.f32 %v1747_v21, %v1748_v37  ;;  %v2241_v25 = vsel %vm351_vm0, %v332_v31, 0  ;;  %v12262_v38 = vand.u32 4294901760, %v2235_v63  ;;  %v12264_v40 = vand.u32 4294901760, %v2238_v61 }
 0x185   : > { %10593 = vmatprep.subr.bf16.mxu1 %v12144_v48  ;;  %v10616_v9 = vpack.c.bf16 %v1736_v42, %v1729_v4  ;;  %v1742_v7 = vsub.f32 %v1740_v33, %v1741_v50  ;;  %v12206_v24 = vpack.c.bf16 %v1748_v37, %v1741_v50  ;;  %v12266_v33 = vand.u32 4294901760, %v2241_v25 }
 0x186   : > { %v1750_v11 = vand.u32 4294901760, %v1749_v5  ;;  %v2244_v49 = vsel %vm351_vm0, %v333_v15, 0  ;;  %v2247_v37 = vsel %vm351_vm0, %v334_v22, 0  ;;  %v12278_v50 = vsub.f32 %v2235_v63, %v12262_v38 }
 0x187   : > { %9567 = vmatmul.mubr.f32.vlgmr.msra.gmra.mrb[16].mxu1 %v1634_v51  ;;  %v1743_v13 = vand.u32 4294901760, %v1742_v7  ;;  %v12281_v51 = vsub.f32 %v2238_v61, %v12264_v40  ;;  %v12286_v4 = vand.u32 4294901760, %v2244_v49  ;;  %v12289_v5 = vand.u32 4294901760, %v2247_v37 }
 0x188   : > { %10595 = vmatpush3.bf16.msra.mxu1 %v12144_v48  ;;  %9601 = vmatprep.mubr.f32.mxu1 %v12089_v26  ;;  %v2223_v48 = vld [vmem:[%s13349_s7] sm:$0xff] }
 0x189   : > { %10597 = vmatprep.subr.bf16.mxu1 %v12156_v18  ;;  %v10620_v39 = vpack.c.bf16 %v1750_v11, %v1743_v13  ;;  %v12297_v13 = vand.u32 4294901760, %v12278_v50  ;;  %v12310_v20 = vsub.f32 %v2247_v37, %v12289_v5  ;;  %v337_v37 = vld [vmem:[%s12241_s28 + $0x38] sm:$0xff] }
 0x18b   : > { %13405 = vst [vmem:[#allocation6_spill] sm:$0xff] %v12297_v13  ;;  %v12332_v15 = vand.u32 4294901760, %v12310_v20 }
 0x18c   : > { %10599 = vmatpush3.bf16.msra.mxu1 %v12156_v18  ;;  %v2224_v18 = vld [vmem:[%s13349_s7 + $0x8] sm:$0xff] }
 0x18d   : > { %10601 = vmatprep.subr.bf16.mxu1 %v12168_v16  ;;  %v2262_v17 = vand.u32 4294901760, %v2224_v18  ;;  %13409 = vst [vmem:[#allocation10_spill] sm:$0xff] %v12332_v15 }
 0x18f   : > { %v12294_v11 = vsub.f32 %v2224_v18, %v2262_v17 }
 0x190   : > { %10603 = vmatpush3.bf16.msra.mxu1 %v12168_v16  ;;  %v12225_v16 = vld [vmem:[%s13349_s7 + $0x10] sm:$0xff] }
 0x191   : > { %10605 = vmatprep.subr.bf16.mxu1 %v10604_v57  ;;  %v13357_v43 = vand.u32 4294901760, %v12225_v16  ;;  %v13358_v58 = vand.u32 4294901760, %v12294_v11 }
 0x194   : > { %10607 = vmatpush3.bf16.msra.mxu1 %v10604_v57  ;;  %v2259_v57 = vand.u32 4294901760, %v2223_v48 }
 0x195   : > { %10609 = vmatprep.subr.bf16.mxu1 %v10608_v45 }
 0x196   : > { %v12273_v42 = vsub.f32 %v2223_v48, %v2259_v57 }
 0x198   : > { %10611 = vmatpush3.bf16.msra.mxu1 %v10608_v45  ;;  %v12248_v45 = vpack.c.bf16 %v2262_v17, %v2259_v57  ;;  %v13354_v7 = vand.u32 4294901760, %v12273_v42  ;;  %v12306_v57 = vsub.f32 %v2244_v49, %v12286_v4  ;;  %v2418_v49 = vsub.f32 %v12294_v11, %v13358_v58 }
 0x199   : > { %10613 = vmatprep.subr.bf16.mxu1 %v10612_v8 }
 0x19a   : > { %10753 = vmatprep.subr.bf16.mxu0 %v12248_v45  ;;  %v2411_v17 = vsub.f32 %v12273_v42, %v13354_v7  ;;  %v12328_v61 = vand.u32 4294901760, %v12306_v57 }
 0x19b   : > { %10755 = vmatpush3.bf16.msra.mxu0 %v12248_v45 }
 0x19c   : > { %10615 = vmatpush3.bf16.msra.mxu1 %v10612_v8  ;;  %v2250_v8 = vsel %vm351_vm0, %v335_v35, 0  ;;  %13408 = vst [vmem:[#allocation9_spill] sm:$0xff] %v12328_v61  ;;  %v2412_v35 = vand.u32 4294901760, %v2411_v17  ;;  %v2360_v29 = vsub.f32 %v12306_v57, %v12328_v61  ;;  %v2419_v17 = vand.u32 4294901760, %v2418_v49 }
 0x19d   : > { %10617 = vmatprep.subr.bf16.mxu1 %v10616_v9 }
 0x19e   : > { %v10760_v49 = vpack.c.bf16 %v2419_v17, %v2412_v35 }
 0x1a0   : > { %10619 = vmatpush3.bf16.msra.mxu1 %v10616_v9  ;;  %v12291_v9 = vand.u32 4294901760, %v2250_v8 }
 0x1a1   : > { %10621 = vmatprep.subr.bf16.mxu1 %v10620_v39 }
 0x1a2   : > { %v12313_v18 = vsub.f32 %v2250_v8, %v12291_v9 }
 0x1a4   : > { %10623 = vmatpush3.bf16.msra.mxu1 %v10620_v39  ;;  %v12300_v39 = vand.u32 4294901760, %v12281_v51  ;;  %v12335_v22 = vand.u32 4294901760, %v12313_v18 }
 0x1a5   : > { %10625 = vmatprep.subr.bf16.mxu1 %v12125_v30 }
 0x1a6   : > { %13406 = vst [vmem:[#allocation7_spill] sm:$0xff] %v12300_v39  ;;  %v2340_v31 = vsub.f32 %v12281_v51, %v12300_v39  ;;  %13410 = vst [vmem:[#allocation11_spill] sm:$0xff] %v12335_v22 }
 0x1a7   : > { %9602 = vmatmul.mubr.f32.vlgmr.msra.gmra.mrb[16].mxu1 %v12117_v52 }
 0x1a8   : > { %10627 = vmatpush3.bf16.msra.mxu1 %v12125_v30  ;;  %9636 = vmatprep.mubr.f32.mxu1 %v12092_v27  ;;  %v13356_v30 = vand.u32 4294901760, %v12233_v10  ;;  %v12343_v62 = vand.u32 4294901760, %v2340_v31  ;;  %v2256_v31 = vsel %vm351_vm0, %v337_v37, 0 }
 0x1a9   : > { %10629 = vmatprep.subr.bf16.mxu1 %v12134_v34  ;;  %v12368_v52 = vand.u32 4294901760, %v2256_v31 }
 0x1aa   : > { %v12260_v21 = vpack.c.bf16 %v13356_v30, %v13357_v43  ;;  %v2370_v30 = vsub.f32 %v12310_v20, %v12332_v15 }
 0x1ab   : > { %v12384_v35 = vsub.f32 %v2256_v31, %v12368_v52 }
 0x1ac   : > { %10631 = vmatpush3.bf16.msra.mxu1 %v12134_v34  ;;  %v12284_v34 = vsub.f32 %v2241_v25, %v12266_v33  ;;  %10757 = vmatprep.subr.bf16.mxu0 %v12260_v21  ;;  %v336_v25 = vld [vmem:[%s12241_s28 + $0x30] sm:$0xff] }
 0x1ad   : > { %10633 = vmatprep.subr.bf16.mxu1 %v12147_v54  ;;  %10759 = vmatpush3.bf16.msra.mxu0 %v12260_v21  ;;  %v2253_v43 = vsel %vm351_vm0, %v336_v25, 0  ;;  %v2380_v25 = vsub.f32 %v12313_v18, %v12335_v22 }
 0x1ae   : > { %v12303_v48 = vand.u32 4294901760, %v12284_v34  ;;  %10761 = vmatprep.subr.bf16.mxu0 %v10760_v49 }
 0x1b0   : > { %13407 = vst [vmem:[#allocation8_spill] sm:$0xff] %v12303_v48  ;;  %10635 = vmatpush3.bf16.msra.mxu1 %v12147_v54  ;;  %v2330_v54 = vsub.f32 %v12278_v50, %v12297_v13  ;;  %v2350_v63 = vsub.f32 %v12284_v34, %v12303_v48 }
 0x1b1   : > { %10637 = vmatprep.subr.bf16.mxu1 %v12159_v0 }
 0x1b2   : > { %v12341_v8 = vand.u32 4294901760, %v2330_v54  ;;  %v12345_v7 = vand.u32 4294901760, %v2350_v63  ;;  %v12355_v54 = vand.u32 4294901760, %v2253_v43  ;;  %v13412_v63 = vand.u32 4294901760, %v12225_v16 }
 0x1b4   : > { %13411 = vst [vmem:[#allocation12_spill] sm:$0xff] %v12341_v8  ;;  %10639 = vmatpush3.bf16.msra.mxu1 %v12159_v0  ;;  %9752 = vmatprep.mubr.f32.mxu0 %v12341_v8  ;;  %v12361_v58 = vsub.f32 %v12225_v16, %v13412_v63  ;;  %v12364_v0 = vand.u32 4294901760, %v2360_v29  ;;  %v12371_v8 = vand.u32 4294901760, %v2370_v30  ;;  %v12374_v37 = vsub.f32 %v2253_v43, %v12355_v54 }
 0x1b5   : > { %10641 = vmatprep.subr.bf16.mxu1 %v12171_v44  ;;  %9753 = vmatmul.mubr.f32.vlgmr.msra.gmra.mrb[20].mxu0 %v12343_v62  ;;  %v13415_v63 = vand.u32 4294901760, %v12233_v10 }
 0x1b6   : > { %13413 = vst [vmem:[#allocation13_spill] sm:$0xff] %v12364_v0  ;;  %9755 = vmatprep.mubr.f32.mxu0 %v12345_v7  ;;  %13414 = vst [vmem:[#allocation14_spill] sm:$0xff] %v12371_v8  ;;  %v13363_v16 = vand.u32 4294901760, %v12361_v58  ;;  %10763 = vmatpush3.bf16.msra.mxu0 %v10760_v49  ;;  %v12388_v30 = vand.u32 4294901760, %v12374_v37 }
 0x1b7   : > { %v12380_v29 = vsub.f32 %v12233_v10, %v13415_v63  ;;  %v12395_v10 = vand.u32 4294901760, %v2380_v25 }
 0x1b8   : > { %10643 = vmatpush3.bf16.msra.mxu1 %v12171_v44  ;;  %13416 = vst [vmem:[#allocation15_spill] sm:$0xff] %v12388_v30  ;;  %v2425_v43 = vsub.f32 %v12361_v58, %v13363_v16  ;;  %v12398_v44 = vand.u32 4294901760, %v12384_v35  ;;  %v2390_v31 = vsub.f32 %v12374_v37, %v12388_v30 }
 0x1b9   : > { %10645 = vmatprep.subr.bf16.mxu1 %v12181_v12  ;;  %v2431_v17 = vand.u32 4294901760, %v12380_v29  ;;  %9756 = vmatmul.mubr.f32.gmra.mrb[22].mxu0 %v12364_v0 }
 0x1ba   : > { %13417 = vst [vmem:[#allocation16_spill] sm:$0xff] %v12398_v44  ;;  %9758 = vmatprep.mubr.f32.mxu0 %v12371_v8  ;;  %v2426_v49 = vand.u32 4294901760, %v2425_v43  ;;  %v2400_v16 = vsub.f32 %v12384_v35, %v12398_v44  ;;  %v12410_v25 = vand.u32 4294901760, %v2390_v31  ;;  %v13422_v31 = vand.u32 4294901760, %v12120_v23 }
 0x1bb   : > { %v2432_v63 = vsub.f32 %v12380_v29, %v2431_v17 }
 0x1bc   : > { %10647 = vmatpush3.bf16.msra.mxu1 %v12181_v12  ;;  %v12413_v8 = vand.u32 4294901760, %v2400_v16  ;;  %v10768_v12 = vpack.c.bf16 %v12294_v11, %v12273_v42 }
 0x1bd   : > { %10649 = vmatprep.subr.bf16.mxu1 %v12191_v32  ;;  %v2433_v0 = vand.u32 4294901760, %v2432_v63  ;;  %9759 = vmatmul.mubr.f32.gmra.mrb[24].mxu0 %v12395_v10 }
 0x1be   : > { %9761 = vmatprep.mubr.f32.mxu0 %v12410_v25 }
 0x1bf   : > { %v10764_v43 = vpack.c.bf16 %v2433_v0, %v2426_v49  ;;  %v13418_v0 = vand.u32 4294901760, %v12092_v27  ;;  %v13419_v27 = vand.u32 4294901760, %v12273_v42  ;;  %v13421_v42 = vand.u32 4294901760, %v12361_v58 }
 0x1c0   : > { %10651 = vmatpush3.bf16.msra.mxu1 %v12191_v32  ;;  %v10772_v32 = vpack.c.bf16 %v12380_v29, %v12361_v58 }
 0x1c1   : > { %10653 = vmatprep.subr.bf16.mxu1 %v12202_v2  ;;  %10765 = vmatprep.subr.bf16.mxu0 %v10764_v43 }
 0x1c2   : > { %9762 = vmatmul.mubr.f32.gmra.mrb[26].mxu0 %v12413_v8 }
 0x1c3   : > { %10767 = vmatpush3.bf16.msra.mxu0 %v10764_v43  ;;  %9772 = vmatprep.mubr.f32.mxu0 %v12262_v38 }
 0x1c4   : > { %10655 = vmatpush3.bf16.msra.mxu1 %v12202_v2  ;;  %10769 = vmatprep.subr.bf16.mxu0 %v10768_v12  ;;  %v13420_v2 = vand.u32 4294901760, %v12294_v11  ;;  %v10788_v11 = vpack.c.bf16 %v2431_v17, %v13421_v42 }
 0x1c5   : > { %10657 = vmatprep.subr.bf16.mxu1 %v12122_v60 }
 0x1c6   : > { %9773 = vmatmul.mubr.f32.vlgmr.msra.gmra.mrb[20].mxu0 %v12264_v40  ;;  %v10784_v16 = vpack.c.bf16 %v13420_v2, %v13419_v27 }
 0x1c7   : > { %9637 = vmatmul.mubr.f32.vlgmr.msra.gmra.mrb[16].mxu1 %v12120_v23  ;;  %9775 = vmatprep.mubr.f32.mxu0 %v12266_v33  ;;  %v13423_v23 = vld [vmem:[#allocation5_spill] sm:$0xff] }
 0x1c8   : > { %10659 = vmatpush3.bf16.msra.mxu1 %v12122_v60  ;;  %9671 = vmatprep.mubr.f32.mxu1 %v13418_v0 }
 0x1c9   : > { %10661 = vmatprep.subr.bf16.mxu1 %v12129_v28  ;;  %10771 = vmatpush3.bf16.msra.mxu0 %v10768_v12 }
 0x1ca   : > { %9776 = vmatmul.mubr.f32.gmra.mrb[22].mxu0 %v12286_v4  ;;  %10773 = vmatprep.subr.bf16.mxu0 %v10772_v32 }
 0x1cb   : > { %9778 = vmatprep.mubr.f32.mxu0 %v12289_v5 }
 0x1cc   : > { %10663 = vmatpush3.bf16.msra.mxu1 %v12129_v28 }
 0x1cd   : > { %10665 = vmatprep.subr.bf16.mxu1 %v12142_v41  ;;  %10775 = vmatpush3.bf16.msra.mxu0 %v10772_v32 }
 0x1ce   : > { %9779 = vmatmul.mubr.f32.gmra.mrb[24].mxu0 %v12291_v9  ;;  %10777 = vmatprep.subr.bf16.mxu0 %v12248_v45 }
 0x1cf   : > { %9781 = vmatprep.mubr.f32.mxu0 %v12355_v54 }
 0x1d0   : > { %10667 = vmatpush3.bf16.msra.mxu1 %v12142_v41 }
 0x1d1   : > { %10669 = vmatprep.subr.bf16.mxu1 %v12153_v19 }
 0x1d2   : > { %9782 = vmatmul.mubr.f32.gmra.mrb[26].mxu0 %v12368_v52 }
 0x1d3   : > { %9792 = vmatprep.mubr.f32.mxu0 %v12278_v50 }
 0x1d4   : > { %10671 = vmatpush3.bf16.msra.mxu1 %v12153_v19 }
 0x1d5   : > { %10673 = vmatprep.subr.bf16.mxu1 %v12165_v6 }
 0x1d6   : > { %9793 = vmatmul.mubr.f32.vlgmr.msra.gmra.mrb[20].mxu0 %v12281_v51 }
 0x1d7   : > { %9795 = vmatprep.mubr.f32.mxu0 %v12284_v34  ;;  %10779 = vmatpush3.bf16.msra.mxu0 %v12248_v45 }
 0x1d8   : > { %10675 = vmatpush3.bf16.msra.mxu1 %v12165_v6  ;;  %10781 = vmatprep.subr.bf16.mxu0 %v12260_v21 }
 0x1d9   : > { %10677 = vmatprep.subr.bf16.mxu1 %v12177_v56 }
 0x1da   : > { %9796 = vmatmul.mubr.f32.gmra.mrb[22].mxu0 %v12306_v57 }
 0x1db   : > { %9798 = vmatprep.mubr.f32.mxu0 %v12310_v20  ;;  %10783 = vmatpush3.bf16.msra.mxu0 %v12260_v21 }
 0x1dc   : > { %10679 = vmatpush3.bf16.msra.mxu1 %v12177_v56  ;;  %10785 = vmatprep.subr.bf16.mxu0 %v10784_v16 }
 0x1dd   : > { %10681 = vmatprep.subr.bf16.mxu1 %v12187_v46 }
 0x1de   : > { %9799 = vmatmul.mubr.f32.gmra.mrb[24].mxu0 %v12313_v18 }
 0x1df   : > { %9801 = vmatprep.mubr.f32.mxu0 %v12374_v37 }
 0x1e0   : > { %10683 = vmatpush3.bf16.msra.mxu1 %v12187_v46 }
 0x1e1   : > { %10685 = vmatprep.subr.bf16.mxu1 %v12196_v3 }
 0x1e2   : > { %9802 = vmatmul.mubr.f32.gmra.mrb[26].mxu0 %v12384_v35 }
 0x1e3   : > { %9812 = vmatprep.mubr.f32.mxu0 %v12297_v13 }
 0x1e4   : > { %10687 = vmatpush3.bf16.msra.mxu1 %v12196_v3 }
 0x1e5   : > { %10689 = vmatprep.subr.bf16.mxu1 %v12131_v14 }
 0x1e6   : > { %9813 = vmatmul.mubr.f32.vlgmr.msra.gmra.mrb[20].mxu0 %v12300_v39 }
 0x1e7   : > { %9672 = vmatmul.mubr.f32.vlgmr.msra.gmra.mrb[16].mxu1 %v13422_v31  ;;  %9815 = vmatprep.mubr.f32.mxu0 %v12303_v48 }
 0x1e8   : > { %10691 = vmatpush3.bf16.msra.mxu1 %v12131_v14  ;;  %9706 = vmatprep.mubr.f32.mxu1 %v12089_v26 }
 0x1e9   : > { %10693 = vmatprep.subr.bf16.mxu1 %v12149_v59  ;;  %10787 = vmatpush3.bf16.msra.mxu0 %v10784_v16 }
 0x1ea   : > { %9816 = vmatmul.mubr.f32.gmra.mrb[22].mxu0 %v12328_v61  ;;  %10789 = vmatprep.subr.bf16.mxu0 %v10788_v11 }
 0x1eb   : > { %9818 = vmatprep.mubr.f32.mxu0 %v12332_v15 }
 0x1ec   : > { %10695 = vmatpush3.bf16.msra.mxu1 %v12149_v59  ;;  %v4486_v59 = vld [vmem:[%s13348_s6 + $0x8] sm:$0xff] }
 0x1ed   : > { %10697 = vmatprep.subr.bf16.mxu1 %v12163_v1  ;;  %10791 = vmatpush3.bf16.msra.mxu0 %v10788_v11 }
 0x1ee   : > { %9819 = vmatmul.mubr.f32.gmra.mrb[24].mxu0 %v12335_v22  ;;  %10793 = vmatprep.subr.bf16.mxu0 %v12248_v45 }
 0x1ef   : > { %9821 = vmatprep.mubr.f32.mxu0 %v12388_v30 }
 0x1f0   : > { %10699 = vmatpush3.bf16.msra.mxu1 %v12163_v1  ;;  %v3046_v1 = vld [vmem:[%s13347_s5 + $0x10] sm:$0xff] }
 0x1f1   : > { %10701 = vmatprep.subr.bf16.mxu1 %v12173_v47 }
 0x1f2   : > { %9822 = vmatmul.mubr.f32.gmra.mrb[26].mxu0 %v12398_v44 }
 0x1f3   : > { %9832 = vmatprep.mubr.f32.mxu0 %v12262_v38 }
 0x1f4   : > { %10703 = vmatpush3.bf16.msra.mxu1 %v12173_v47  ;;  %v4493_v47 = vand.u32 4294901760, %v4486_v59 }
 0x1f5   : > { %10705 = vmatprep.subr.bf16.mxu1 %v12185_v55 }
 0x1f6   : > { %9833 = vmatmul.mubr.f32.vlgmr.msra.gmra.mrb[20].mxu0 %v12264_v40  ;;  %v4587_v43 = vsub.f32 %v4486_v59, %v4493_v47 }
 0x1f7   : > { %9835 = vmatprep.mubr.f32.mxu0 %v12266_v33  ;;  %10795 = vmatpush3.bf16.msra.mxu0 %v12248_v45 }
 0x1f8   : > { %10707 = vmatpush3.bf16.msra.mxu1 %v12185_v55  ;;  %10797 = vmatprep.subr.bf16.mxu0 %v12260_v21  ;;  %v4588_v27 = vand.u32 4294901760, %v4587_v43 }
 0x1f9   : > { %10709 = vmatprep.subr.bf16.mxu1 %v12193_v36 }
 0x1fa   : > { %9836 = vmatmul.mubr.f32.gmra.mrb[22].mxu0 %v12286_v4 }
 0x1fb   : > { %9838 = vmatprep.mubr.f32.mxu0 %v12289_v5  ;;  %10799 = vmatpush3.bf16.msra.mxu0 %v12260_v21 }
 0x1fc   : > { %10711 = vmatpush3.bf16.msra.mxu1 %v12193_v36  ;;  %v4488_v36 = vld [vmem:[%s13348_s6 + $0x18] sm:$0xff] }
 0x1fd   : > { %10713 = vmatprep.subr.bf16.mxu1 %v12198_v53 }
 0x1fe   : > { %9839 = vmatmul.mubr.f32.gmra.mrb[24].mxu0 %v12291_v9 }
 0x1ff   : > { %9841 = vmatprep.mubr.f32.mxu0 %v12355_v54 }
 0x200   : > { %10715 = vmatpush3.bf16.msra.mxu1 %v12198_v53 }
 0x201   : > { %10717 = vmatprep.subr.bf16.mxu1 %v12206_v24 }
 0x202   : > { %9842 = vmatmul.mubr.f32.gmra.mrb[26].mxu0 %v12368_v52 }
 0x203   : > { %9852 = vmatprep.mubr.f32.mxu0 %v12262_v38 }
 0x204   : > { %10719 = vmatpush3.bf16.msra.mxu1 %v12206_v24  ;;  %v4499_v24 = vand.u32 4294901760, %v4488_v36 }
 0x205   : > { %10721 = vmatprep.subr.bf16.mxu1 %v12122_v60 }
 0x206   : > { %9853 = vmatmul.mubr.f32.vlgmr.msra.gmra.mrb[20].mxu0 %v12264_v40 }
 0x207   : > { %9707 = vmatmul.mubr.f32.vlgmr.msra.gmra.mrb[16].mxu1 %v13423_v23  ;;  %9855 = vmatprep.mubr.f32.mxu0 %v12266_v33 }
 0x208   : > { %10723 = vmatpush3.bf16.msra.mxu1 %v12122_v60  ;;  %9741 = vmatprep.mubr.f32.mxu1 %v12089_v26  ;;  %v3044_v26 = vld [vmem:[%s13347_s5] sm:$0xff]  ;;  %v3045_v60 = vld [vmem:[%s13347_s5 + $0x8] sm:$0xff] }
 0x209   : > { %10725 = vmatprep.subr.bf16.mxu1 %v12129_v28  ;;  %v3055_v14 = vand.u32 4294901760, %v3044_v26 }
 0x20a   : > { %9856 = vmatmul.mubr.f32.gmra.mrb[22].mxu0 %v12286_v4 }
 0x20b   : > { %9858 = vmatprep.mubr.f32.mxu0 %v12289_v5  ;;  %v3145_v45 = vsub.f32 %v3044_v26, %v3055_v14 }
 0x20c   : > { %10727 = vmatpush3.bf16.msra.mxu1 %v12129_v28  ;;  %v4485_v28 = vld [vmem:[%s13348_s6] sm:$0xff] }
 0x20d   : > { %10729 = vmatprep.subr.bf16.mxu1 %v12142_v41  ;;  %v3146_v63 = vand.u32 4294901760, %v3145_v45 }
 0x20e   : > { %9859 = vmatmul.mubr.f32.gmra.mrb[24].mxu0 %v12291_v9 }
 0x20f   : > { %9861 = vmatprep.mubr.f32.mxu0 %v12355_v54  ;;  %v3147_v0 = vsub.f32 %v3145_v45, %v3146_v63 }
 0x210   : > { %10731 = vmatpush3.bf16.msra.mxu1 %v12142_v41  ;;  %v3058_v41 = vand.u32 4294901760, %v3045_v60 }
 0x211   : > { %10733 = vmatprep.subr.bf16.mxu1 %v12153_v19  ;;  %v3148_v26 = vand.u32 4294901760, %v3147_v0 }
 0x212   : > { %9862 = vmatmul.mubr.f32.gmra.mrb[26].mxu0 %v12368_v52  ;;  %v3152_v29 = vsub.f32 %v3045_v60, %v3058_v41  ;;  %v4589_v60 = vsub.f32 %v4587_v43, %v4588_v27 }
 0x214   : > { %10735 = vmatpush3.bf16.msra.mxu1 %v12153_v19  ;;  %v4490_v19 = vand.u32 4294901760, %v4485_v28  ;;  %v3153_v12 = vand.u32 4294901760, %v3152_v29 }
 0x215   : > { %10737 = vmatprep.subr.bf16.mxu1 %v12165_v6 }
 0x216   : > { %v12563_v21 = vpack.c.bf16 %v4493_v47, %v4490_v19  ;;  %v4580_v17 = vsub.f32 %v4485_v28, %v4490_v19  ;;  %v3154_v42 = vsub.f32 %v3152_v29, %v3153_v12  ;;  %v10832_v39 = vpack.c.bf16 %v3153_v12, %v3146_v63 }
 0x218   : > { %10739 = vmatpush3.bf16.msra.mxu1 %v12165_v6  ;;  %v3047_v6 = vld [vmem:[%s13347_s5 + $0x18] sm:$0xff]  ;;  %10873 = vmatprep.subr.bf16.mxu0 %v12563_v21  ;;  %v4581_v32 = vand.u32 4294901760, %v4580_v17  ;;  %v10888_v15 = vpack.c.bf16 %v4587_v43, %v4580_v17 }
 0x219   : > { %10741 = vmatprep.subr.bf16.mxu1 %v12177_v56  ;;  %v3064_v55 = vand.u32 4294901760, %v3047_v6  ;;  %10875 = vmatpush3.bf16.msra.mxu0 %v12563_v21 }
 0x21a   : > { %v4582_v11 = vsub.f32 %v4580_v17, %v4581_v32 }
 0x21b   : > { %v3166_v16 = vsub.f32 %v3047_v6, %v3064_v55 }
 0x21c   : > { %10743 = vmatpush3.bf16.msra.mxu1 %v12177_v56  ;;  %v3061_v56 = vand.u32 4294901760, %v3046_v1  ;;  %v4583_v59 = vand.u32 4294901760, %v4582_v11  ;;  %v10816_v11 = vpack.c.bf16 %v3152_v29, %v3145_v45 }
 0x21d   : > { %10745 = vmatprep.subr.bf16.mxu1 %v12187_v46 }
 0x21e   : > { %v12565_v58 = vpack.c.bf16 %v3064_v55, %v3061_v56  ;;  %v3159_v2 = vsub.f32 %v3046_v1, %v3061_v56  ;;  %v4590_v1 = vand.u32 4294901760, %v4589_v60  ;;  %v10904_v60 = vpack.c.bf16 %v4588_v27, %v4581_v32 }
 0x220   : > { %10747 = vmatpush3.bf16.msra.mxu1 %v12187_v46  ;;  %v4487_v46 = vld [vmem:[%s13348_s6 + $0x10] sm:$0xff]  ;;  %v3160_v28 = vand.u32 4294901760, %v3159_v2  ;;  %v10820_v61 = vpack.c.bf16 %v3166_v16, %v3159_v2 }
 0x221   : > { %10749 = vmatprep.subr.bf16.mxu1 %v12196_v3  ;;  %v4496_v53 = vand.u32 4294901760, %v4487_v46 }
 0x222   : > { %v3161_v6 = vsub.f32 %v3159_v2, %v3160_v28 }
 0x223   : > { %v12568_v49 = vpack.c.bf16 %v4499_v24, %v4496_v53  ;;  %v4594_v31 = vsub.f32 %v4487_v46, %v4496_v53  ;;  %v10880_v46 = vpack.c.bf16 %v4590_v1, %v4583_v59 }
 0x224   : > { %10751 = vmatpush3.bf16.msra.mxu1 %v12196_v3  ;;  %v12561_v3 = vpack.c.bf16 %v3058_v41, %v3055_v14  ;;  %v3167_v14 = vand.u32 4294901760, %v3166_v16  ;;  %v3155_v41 = vand.u32 4294901760, %v3154_v42 }
 0x225   : > { %10877 = vmatprep.subr.bf16.mxu0 %v12568_v49  ;;  %v4595_v19 = vand.u32 4294901760, %v4594_v31 }
 0x226   : > { %10801 = vmatprep.subr.bf16.mxu1 %v12561_v3  ;;  %10879 = vmatpush3.bf16.msra.mxu0 %v12568_v49  ;;  %v3168_v56 = vsub.f32 %v3166_v16, %v3167_v14  ;;  %v10808_v55 = vpack.c.bf16 %v3155_v41, %v3148_v26  ;;  %v12577_v13 = vpack.c.bf16 %v3167_v14, %v3160_v28  ;;  %v8642_v41 = vld [vmem:[%s13346_s4] ss:$0 sm:$0xff] }
 0x227   : > { %9742 = vmatmul.mubr.f32.vlgmr.msra.gmra.mrb[16].mxu1 %v13423_v23  ;;  %v4601_v23 = vsub.f32 %v4488_v36, %v4499_v24  ;;  %v4596_v44 = vsub.f32 %v4594_v31, %v4595_v19  ;;  %v3162_v36 = vand.u32 4294901760, %v3161_v6  ;;  %10881 = vmatprep.subr.bf16.mxu0 %v10880_v46 }
 0x228   : > { %10803 = vmatpush3.bf16.msra.mxu1 %v12561_v3  ;;  %v3169_v53 = vand.u32 4294901760, %v3168_v56 }
 0x229   : > { %10805 = vmatprep.subr.bf16.mxu1 %v12565_v58  ;;  %v4602_v47 = vand.u32 4294901760, %v4601_v23  ;;  %v4597_v24 = vand.u32 4294901760, %v4596_v44  ;;  %v10892_v48 = vpack.c.bf16 %v4601_v23, %v4594_v31 }
 0x22a   : > { %v10812_v22 = vpack.c.bf16 %v3169_v53, %v3162_v36 }
 0x22b   : > { %v4603_v30 = vsub.f32 %v4601_v23, %v4602_v47  ;;  %v12579_v26 = vpack.c.bf16 %v4602_v47, %v4595_v19 }
 0x22c   : > { %10807 = vmatpush3.bf16.msra.mxu1 %v12565_v58 }
 0x22d   : > { %10809 = vmatprep.subr.bf16.mxu1 %v10808_v55  ;;  %v4604_v0 = vand.u32 4294901760, %v4603_v30 }
 0x22f   : > { %v10884_v42 = vpack.c.bf16 %v4604_v0, %v4597_v24 }
 0x2fa   : > { %v9743_v59 = vpop.f32.mrb[16].mxu1 }
 0x2fb   : > { %v11112_v44 = vadd.f32 %v9743_v59, %v8642_v41  ;;  %v2213_v30 = vpop.f32.mrb[17].mxu1 }
 0x2fc   : > { %v11113_v1 = vadd.f32 %v8642_v41, %v2213_v30 }
 0x2fd   : > { %v3052_v6 = vsel %vm351_vm0, %v11112_v44, 0 }
 0x2fe   : > { %v12585_v45 = vand.u32 4294901760, %v3052_v6  ;;  %v3049_v29 = vsel %vm351_vm0, %v11113_v1, 0 }
 0x2ff   : > { %v12588_v17 = vand.u32 4294901760, %v3049_v29 }
 0x300   : > { %13424 = vst [vmem:[#allocation5_spill] sm:$0xff] %v12585_v45  ;;  %v12591_v63 = vsub.f32 %v3052_v6, %v12585_v45 }
 0x301   : > { %13425 = vst [vmem:[#allocation17_spill] sm:$0xff] %v12588_v17  ;;  %v12594_v43 = vsub.f32 %v3049_v29, %v12588_v17 }
 0x302   : > { %13426 = vst [vmem:[#allocation18_spill] sm:$0xff] %v12591_v63  ;;  %v12597_v12 = vand.u32 4294901760, %v12591_v63 }
 0x303   : > { %13427 = vst [vmem:[#allocation19_spill] sm:$0xff] %v12594_v43  ;;  %v12600_v32 = vand.u32 4294901760, %v12594_v43 }
 0x304   : > { %13428 = vst [vmem:[#allocation20_spill] sm:$0xff] %v12597_v12  ;;  %v3136_v27 = vsub.f32 %v12591_v63, %v12597_v12 }
 0x305   : > { %13429 = vst [vmem:[#allocation21_spill] sm:$0xff] %v12600_v32  ;;  %v3126_v2 = vsub.f32 %v12594_v43, %v12600_v32 }
 0x306   : > { %v12608_v31 = vand.u32 4294901760, %v3136_v27 }
 0x307   : > { %v12606_v16 = vand.u32 4294901760, %v3126_v2 }
 0x308   : > { %13431 = vst [vmem:[#allocation23_spill] sm:$0xff] %v12608_v31 }
 0x309   : > { %13430 = vst [vmem:[#allocation22_spill] sm:$0xff] %v12606_v16  ;;  %9872 = vmatprep.mubr.f32.mxu1 %v12606_v16  ;;  %10034 = vmatprep.mubr.f32.mxu0 %v12606_v16 }
 0x30a   : > { %9873 = vmatmul.mubr.f32.vlgmr.msra.gmra.mrb[18].mxu1 %v12608_v31  ;;  %10035 = vmatmul.mubr.f32.vlgmr.msra.gmra.mrb[28].mxu0 %v12608_v31 }
 0x30b   : > { %10811 = vmatpush3.bf16.msra.mxu1 %v10808_v55  ;;  %9883 = vmatprep.mubr.f32.mxu1 %v12588_v17 }
 0x30c   : > { %10883 = vmatpush3.bf16.msra.mxu0 %v10880_v46  ;;  %10045 = vmatprep.mubr.f32.mxu0 %v12588_v17 }
 0x30d   : > { %10813 = vmatprep.subr.bf16.mxu1 %v10812_v22  ;;  %10885 = vmatprep.subr.bf16.mxu0 %v10884_v42 }
 0x30f   : > { %10815 = vmatpush3.bf16.msra.mxu1 %v10812_v22 }
 0x310   : > { %10887 = vmatpush3.bf16.msra.mxu0 %v10884_v42  ;;  %10817 = vmatprep.subr.bf16.mxu1 %v10816_v11 }
 0x311   : > { %10889 = vmatprep.subr.bf16.mxu0 %v10888_v15 }
 0x312   : > { %9884 = vmatmul.mubr.f32.vlgmr.msra.gmra.mrb[18].mxu1 %v12585_v45 }
 0x313   : > { %10046 = vmatmul.mubr.f32.vlgmr.msra.gmra.mrb[28].mxu0 %v12585_v45  ;;  %10819 = vmatpush3.bf16.msra.mxu1 %v10816_v11 }
 0x314   : > { %9894 = vmatprep.mubr.f32.mxu1 %v12594_v43  ;;  %10891 = vmatpush3.bf16.msra.mxu0 %v10888_v15 }
 0x315   : > { %10056 = vmatprep.mubr.f32.mxu0 %v12594_v43  ;;  %10821 = vmatprep.subr.bf16.mxu1 %v10820_v61 }
 0x316   : > { %10893 = vmatprep.subr.bf16.mxu0 %v10892_v48 }
 0x317   : > { %10823 = vmatpush3.bf16.msra.mxu1 %v10820_v61 }
 0x318   : > { %10895 = vmatpush3.bf16.msra.mxu0 %v10892_v48  ;;  %10825 = vmatprep.subr.bf16.mxu1 %v12561_v3 }
 0x319   : > { %10897 = vmatprep.subr.bf16.mxu0 %v12563_v21 }
 0x31a   : > { %9895 = vmatmul.mubr.f32.vlgmr.msra.gmra.mrb[18].mxu1 %v12591_v63 }
 0x31b   : > { %10057 = vmatmul.mubr.f32.vlgmr.msra.gmra.mrb[28].mxu0 %v12591_v63  ;;  %10827 = vmatpush3.bf16.msra.mxu1 %v12561_v3 }
 0x31c   : > { %9905 = vmatprep.mubr.f32.mxu1 %v12600_v32  ;;  %10899 = vmatpush3.bf16.msra.mxu0 %v12563_v21 }
 0x31d   : > { %10067 = vmatprep.mubr.f32.mxu0 %v12600_v32  ;;  %10829 = vmatprep.subr.bf16.mxu1 %v12565_v58 }
 0x31e   : > { %10901 = vmatprep.subr.bf16.mxu0 %v12568_v49 }
 0x31f   : > { %10831 = vmatpush3.bf16.msra.mxu1 %v12565_v58 }
 0x320   : > { %10903 = vmatpush3.bf16.msra.mxu0 %v12568_v49  ;;  %10833 = vmatprep.subr.bf16.mxu1 %v10832_v39 }
 0x321   : > { %10905 = vmatprep.subr.bf16.mxu0 %v10904_v60 }
 0x322   : > { %9906 = vmatmul.mubr.f32.vlgmr.msra.gmra.mrb[18].mxu1 %v12597_v12 }
 0x323   : > { %10068 = vmatmul.mubr.f32.vlgmr.msra.gmra.mrb[28].mxu0 %v12597_v12  ;;  %10835 = vmatpush3.bf16.msra.mxu1 %v10832_v39 }
 0x324   : > { %9916 = vmatprep.mubr.f32.mxu1 %v12588_v17  ;;  %10907 = vmatpush3.bf16.msra.mxu0 %v10904_v60 }
 0x325   : > { %10078 = vmatprep.mubr.f32.mxu0 %v12588_v17  ;;  %10837 = vmatprep.subr.bf16.mxu1 %v12577_v13 }
 0x326   : > { %10909 = vmatprep.subr.bf16.mxu0 %v12579_v26 }
 0x327   : > { %10839 = vmatpush3.bf16.msra.mxu1 %v12577_v13  ;;  %v13432_v13 = vld [vmem:[#allocation12_spill] sm:$0xff] }
 0x328   : > { %10911 = vmatpush3.bf16.msra.mxu0 %v12579_v26  ;;  %10841 = vmatprep.subr.bf16.mxu1 %v12561_v3 }
 0x329   : > { %10913 = vmatprep.subr.bf16.mxu0 %v12563_v21 }
 0x32a   : > { %9917 = vmatmul.mubr.f32.vlgmr.msra.gmra.mrb[18].mxu1 %v12585_v45 }
 0x32b   : > { %10079 = vmatmul.mubr.f32.vlgmr.msra.gmra.mrb[28].mxu0 %v12585_v45  ;;  %10843 = vmatpush3.bf16.msra.mxu1 %v12561_v3 }
 0x32c   : > { %9927 = vmatprep.mubr.f32.mxu1 %v12588_v17  ;;  %10915 = vmatpush3.bf16.msra.mxu0 %v12563_v21 }
 0x32d   : > { %10089 = vmatprep.mubr.f32.mxu0 %v12588_v17  ;;  %10845 = vmatprep.subr.bf16.mxu1 %v12565_v58 }
 0x32e   : > { %10917 = vmatprep.subr.bf16.mxu0 %v12568_v49 }
 0x32f   : > { %10847 = vmatpush3.bf16.msra.mxu1 %v12565_v58 }
 0x330   : > { %10919 = vmatpush3.bf16.msra.mxu0 %v12568_v49 }
 0x332   : > { %9928 = vmatmul.mubr.f32.vlgmr.msra.gmra.mrb[18].mxu1 %v12585_v45 }
 0x333   : > { %10090 = vmatmul.mubr.f32.vlgmr.msra.gmra.mrb[28].mxu0 %v12585_v45  ;;  %9934 = vmatprep.mubr.f32.mxu1 %v13432_v13 }
 0x405   : > { %v9929_v39 = vpop.f32.mrb[18].mxu1 }
 0x406   : > { %v3586_v48 = vsel %vm351_vm0, %v9929_v39, 0  ;;  %v10091_v61 = vpop.f32.mrb[28].mxu0  ;;  %v3572_v15 = vpop.f32.mrb[19].mxu1  ;;  %v13437_v39 = vld [vmem:[#allocation13_spill] sm:$0xff] }
 0x407   : > { %v3592_v22 = vand.u32 4294901760, %v3586_v48  ;;  %v5045_v3 = vand.u32 4294901760, %v10091_v61  ;;  %v3583_v21 = vsel %vm351_vm0, %v3572_v15, 0  ;;  %v5007_v23 = vpop.f32.mrb[29].mxu0  ;;  %v13440_v15 = vld [vmem:[#allocation7_spill] sm:$0xff] }
 0x408   : > { %v3589_v28 = vand.u32 4294901760, %v3583_v21  ;;  %v5042_v58 = vand.u32 4294901760, %v5007_v23 }
 0x409   : > { %v3744_v14 = vsub.f32 %v3586_v48, %v3592_v22  ;;  %v5197_v49 = vsub.f32 %v10091_v61, %v5045_v3  ;;  %v13438_v48 = vld [vmem:[#allocation14_spill] sm:$0xff] }
 0x40a   : > { %v12657_v19 = vpack.c.bf16 %v3592_v22, %v3589_v28  ;;  %v3737_v47 = vsub.f32 %v3583_v21, %v3589_v28  ;;  %v12659_v56 = vpack.c.bf16 %v5045_v3, %v5042_v58  ;;  %v5190_v55 = vsub.f32 %v5007_v23, %v5042_v58  ;;  %v13439_v61 = vld [vmem:[#allocation6_spill] sm:$0xff]  ;;  %v13441_v22 = vld [vmem:[#allocation8_spill] sm:$0xff]  ;;  %v13442_v3 = vld [vmem:[#allocation9_spill] sm:$0xff] }
 0x40b   : > { %v3745_v46 = vand.u32 4294901760, %v3744_v14  ;;  %v5198_v36 = vand.u32 4294901760, %v5197_v49  ;;  %v13443_v21 = vld [vmem:[#allocation10_spill] sm:$0xff]  ;;  %v8644_v23 = vld [vmem:[%s13347_s5 + $0x20] sm:$0xff]  ;;  %v13444_v58 = vld [vmem:[#allocation11_spill] sm:$0xff] }
 0x40c   : > { %13433 = vst [vmem:[#allocation12_spill] sm:$0xff] %v12659_v56  ;;  %v3738_v53 = vand.u32 4294901760, %v3737_v47  ;;  %v5191_v24 = vand.u32 4294901760, %v5190_v55  ;;  %10921 = vmatprep.subr.bf16.mxu0 %v12659_v56  ;;  %10849 = vmatprep.subr.bf16.mxu1 %v12657_v19  ;;  %v10856_v0 = vpack.c.bf16 %v3744_v14, %v3737_v47  ;;  %v12665_v59 = vpack.c.bf16 %v5197_v49, %v5190_v55  ;;  %v8645_v28 = vld [vmem:[%s13347_s5 + $0x28] sm:$0xff] }
 0x40d   : > { %v3746_v42 = vsub.f32 %v3744_v14, %v3745_v46  ;;  %v5199_v11 = vsub.f32 %v5197_v49, %v5198_v36  ;;  %10923 = vmatpush3.bf16.msra.mxu0 %v12659_v56  ;;  %10851 = vmatpush3.bf16.xpose.msra.mxu1 %v12657_v19  ;;  %v13445_v14 = vld [vmem:[#allocation15_spill] sm:$0xff]  ;;  %v5815_v49 = vand.u32 4294901760, %v8644_v23 }
 0x40e   : > { %v3739_v60 = vsub.f32 %v3737_v47, %v3738_v53  ;;  %v5192_v26 = vsub.f32 %v5190_v55, %v5191_v24  ;;  %v10864_v41 = vpack.c.bf16 %v3745_v46, %v3738_v53  ;;  %13434 = vst [vmem:[#allocation24_spill] sm:$0xff] %v12665_v59  ;;  %v12667_v1 = vpack.c.bf16 %v5198_v36, %v5191_v24  ;;  %v13446_v55 = vld [vmem:[#allocation16_spill] sm:$0xff]  ;;  %v8646_v24 = vld [vmem:[%s13347_s5 + $0x30] sm:$0xff] }
 0x40f   : > { %v5200_v44 = vand.u32 4294901760, %v5199_v11  ;;  %v3747_v30 = vand.u32 4294901760, %v3746_v42  ;;  %v5818_v47 = vand.u32 4294901760, %v8645_v28  ;;  %v5905_v36 = vsub.f32 %v8644_v23, %v5815_v49 }
 0x410   : > { %13435 = vst [vmem:[#allocation25_spill] sm:$0xff] %v12667_v1  ;;  %v5193_v6 = vand.u32 4294901760, %v5192_v26  ;;  %v3740_v29 = vand.u32 4294901760, %v3739_v60  ;;  %v5821_v11 = vand.u32 4294901760, %v8646_v24 }
 0x411   : > { %v12713_v46 = vpack.c.bf16 %v5818_v47, %v5815_v49  ;;  %v5912_v53 = vsub.f32 %v8645_v28, %v5818_v47  ;;  %v5906_v42 = vand.u32 4294901760, %v5905_v36 }
 0x412   : > { %v12669_v27 = vpack.c.bf16 %v5200_v44, %v5193_v6  ;;  %v10852_v2 = vpack.c.bf16 %v3747_v30, %v3740_v29  ;;  %v5919_v29 = vsub.f32 %v8646_v24, %v5821_v11 }
 0x413   : > { %v5907_v26 = vsub.f32 %v5905_v36, %v5906_v42 }
 0x414   : > { %13436 = vst [vmem:[#allocation26_spill] sm:$0xff] %v12669_v27  ;;  %10925 = vmatprep.subr.bf16.mxu0 %v12669_v27  ;;  %9935 = vmatmul.mubr.f32.vlgmr.msra.gmra.mrb[20].mxu1 %v12343_v62  ;;  %v5920_v28 = vand.u32 4294901760, %v5919_v29 }
 0x415   : > { %10853 = vmatprep.subr.bf16.mxu1 %v10852_v2  ;;  %9937 = vmatprep.mubr.f32.mxu1 %v12345_v7  ;;  %v5908_v30 = vand.u32 4294901760, %v5907_v26 }
 0x416   : > { %10855 = vmatpush3.bf16.xpose.msra.mxu1 %v10852_v2  ;;  %v5921_v47 = vsub.f32 %v5919_v29, %v5920_v28 }
 0x417   : > { %10857 = vmatprep.subr.bf16.mxu1 %v10856_v0 }
 0x418   : > { %9938 = vmatmul.mubr.f32.gmra.mrb[22].mxu1 %v13437_v39  ;;  %v5922_v24 = vand.u32 4294901760, %v5921_v47 }
 0x419   : > { %9940 = vmatprep.mubr.f32.mxu1 %v13438_v48 }
 0x41c   : > { %9941 = vmatmul.mubr.f32.gmra.mrb[24].mxu1 %v12395_v10 }
 0x41d   : > { %9943 = vmatprep.mubr.f32.mxu1 %v12410_v25 }
 0x420   : > { %9944 = vmatmul.mubr.f32.gmra.mrb[26].mxu1 %v12413_v8 }
 0x421   : > { %9950 = vmatprep.mubr.f32.mxu1 %v12262_v38 }
 0x424   : > { %9951 = vmatmul.mubr.f32.vlgmr.msra.gmra.mrb[20].mxu1 %v12264_v40 }
 0x425   : > { %10859 = vmatpush3.bf16.xpose.msra.mxu1 %v10856_v0  ;;  %9953 = vmatprep.mubr.f32.mxu1 %v12266_v33  ;;  %v8647_v0 = vld [vmem:[%s13347_s5 + $0x38] sm:$0xff] }
 0x426   : > { %10861 = vmatprep.subr.bf16.mxu1 %v12657_v19  ;;  %v5824_v60 = vand.u32 4294901760, %v8647_v0 }
 0x428   : > { %9954 = vmatmul.mubr.f32.gmra.mrb[22].mxu1 %v12286_v4  ;;  %v10948_v44 = vpack.c.bf16 %v5824_v60, %v5821_v11  ;;  %v5926_v2 = vsub.f32 %v8647_v0, %v5824_v60  ;;  %v10960_v60 = vpack.c.bf16 %v5912_v53, %v5905_v36 }
 0x429   : > { %9956 = vmatprep.mubr.f32.mxu1 %v12289_v5 }
 0x42a   : > { %v5927_v49 = vand.u32 4294901760, %v5926_v2 }
 0x42c   : > { %9957 = vmatmul.mubr.f32.gmra.mrb[24].mxu1 %v12291_v9  ;;  %v5928_v26 = vsub.f32 %v5926_v2, %v5927_v49 }
 0x42d   : > { %9959 = vmatprep.mubr.f32.mxu1 %v12355_v54 }
 0x42e   : > { %v5929_v0 = vand.u32 4294901760, %v5928_v26 }
 0x430   : > { %9960 = vmatmul.mubr.f32.gmra.mrb[26].mxu1 %v12368_v52  ;;  %v10956_v11 = vpack.c.bf16 %v5929_v0, %v5922_v24  ;;  %v12779_v24 = vld [vmem:[%s12761_s24 + $0x18] sm:$0xff] }
 0x431   : > { %9966 = vmatprep.mubr.f32.mxu1 %v12278_v50  ;;  %vm4367_vm5 = vcmp.gt.f32.partialorder %v12779_v24, 0.0 }
 0x434   : > { %9967 = vmatmul.mubr.f32.vlgmr.msra.gmra.mrb[20].mxu1 %v12281_v51 }
 0x435   : > { %10863 = vmatpush3.bf16.xpose.msra.mxu1 %v12657_v19  ;;  %9969 = vmatprep.mubr.f32.mxu1 %v12284_v34 }
 0x436   : > { %10865 = vmatprep.subr.bf16.mxu1 %v10864_v41 }
 0x438   : > { %9970 = vmatmul.mubr.f32.gmra.mrb[22].mxu1 %v12306_v57 }
 0x439   : > { %9972 = vmatprep.mubr.f32.mxu1 %v12310_v20 }
 0x43c   : > { %9973 = vmatmul.mubr.f32.gmra.mrb[24].mxu1 %v12313_v18 }
 0x43d   : > { %9975 = vmatprep.mubr.f32.mxu1 %v12374_v37 }
 0x440   : > { %9976 = vmatmul.mubr.f32.gmra.mrb[26].mxu1 %v12384_v35 }
 0x441   : > { %9982 = vmatprep.mubr.f32.mxu1 %v13439_v61 }
 0x444   : > { %9983 = vmatmul.mubr.f32.vlgmr.msra.gmra.mrb[20].mxu1 %v13440_v15 }
 0x445   : > { %10867 = vmatpush3.bf16.xpose.msra.mxu1 %v10864_v41  ;;  %9985 = vmatprep.mubr.f32.mxu1 %v13441_v22 }
 0x446   : > { %10869 = vmatprep.subr.bf16.mxu1 %v12657_v19 }
 0x448   : > { %9986 = vmatmul.mubr.f32.gmra.mrb[22].mxu1 %v13442_v3 }
 0x449   : > { %9988 = vmatprep.mubr.f32.mxu1 %v13443_v21 }
 0x44c   : > { %9989 = vmatmul.mubr.f32.gmra.mrb[24].mxu1 %v13444_v58 }
 0x44d   : > { %9991 = vmatprep.mubr.f32.mxu1 %v13445_v14 }
 0x450   : > { %9992 = vmatmul.mubr.f32.gmra.mrb[26].mxu1 %v13446_v55 }
 0x451   : > { %9998 = vmatprep.mubr.f32.mxu1 %v12262_v38 }
 0x454   : > { %9999 = vmatmul.mubr.f32.vlgmr.msra.gmra.mrb[20].mxu1 %v12264_v40 }
 0x455   : > { %10871 = vmatpush3.bf16.xpose.msra.mxu1 %v12657_v19  ;;  %10001 = vmatprep.mubr.f32.mxu1 %v12266_v33  ;;  %v5913_v19 = vand.u32 4294901760, %v5912_v53 }
 0x456   : > { %10945 = vmatprep.subr.bf16.mxu1 %v12713_v46 }
 0x457   : > { %v5914_v41 = vsub.f32 %v5912_v53, %v5913_v19  ;;  %v10976_v36 = vpack.c.bf16 %v5913_v19, %v5906_v42  ;;  %v10980_v53 = vpack.c.bf16 %v5927_v49, %v5920_v28  ;;  %v12764_v19 = vld [vmem:[%s12761_s24] sm:$0xff] }
 0x458   : > { %10002 = vmatmul.mubr.f32.gmra.mrb[22].mxu1 %v12286_v4  ;;  %vm4364_vm1 = vcmp.gt.f32.partialorder %v12764_v19, 0.0 }
 0x459   : > { %10004 = vmatprep.mubr.f32.mxu1 %v12289_v5  ;;  %v5915_v6 = vand.u32 4294901760, %v5914_v41  ;;  %v10964_v41 = vpack.c.bf16 %v5926_v2, %v5919_v29 }
 0x45b   : > { %v10952_v23 = vpack.c.bf16 %v5915_v6, %v5908_v30  ;;  %v12767_v6 = vld [vmem:[%s12761_s24 + $0x8] sm:$0xff] }
 0x45c   : > { %10005 = vmatmul.mubr.f32.gmra.mrb[24].mxu1 %v12291_v9  ;;  %vm4365_vm3 = vcmp.gt.f32.partialorder %v12767_v6, 0.0 }
 0x45d   : > { %10007 = vmatprep.mubr.f32.mxu1 %v12355_v54 }
 0x460   : > { %10008 = vmatmul.mubr.f32.gmra.mrb[26].mxu1 %v12368_v52 }
 0x461   : > { %10014 = vmatprep.mubr.f32.mxu1 %v12262_v38 }
 0x464   : > { %10015 = vmatmul.mubr.f32.vlgmr.msra.gmra.mrb[20].mxu1 %v12264_v40 }
 0x465   : > { %10017 = vmatprep.mubr.f32.mxu1 %v12266_v33  ;;  %10947 = vmatpush3.bf16.msra.mxu1 %v12713_v46 }
 0x466   : > { %10949 = vmatprep.subr.bf16.mxu1 %v10948_v44 }
 0x468   : > { %10018 = vmatmul.mubr.f32.gmra.mrb[22].mxu1 %v12286_v4 }
 0x469   : > { %10020 = vmatprep.mubr.f32.mxu1 %v12289_v5  ;;  %10951 = vmatpush3.bf16.msra.mxu1 %v10948_v44 }
 0x46a   : > { %10953 = vmatprep.subr.bf16.mxu1 %v10952_v23 }
 0x46c   : > { %10021 = vmatmul.mubr.f32.gmra.mrb[24].mxu1 %v12291_v9 }
 0x46d   : > { %10023 = vmatprep.mubr.f32.mxu1 %v12355_v54 }
 0x470   : > { %10024 = vmatmul.mubr.f32.gmra.mrb[26].mxu1 %v12368_v52 }
 0x471   : > { %10196 = vmatprep.mubr.f32.mxu1 %v12606_v16 }
 0x474   : > { %10197 = vmatmul.mubr.f32.vlgmr.msra.gmra.mrb[28].mxu1 %v12608_v31 }
 0x475   : > { %10955 = vmatpush3.bf16.msra.mxu1 %v10952_v23  ;;  %10207 = vmatprep.mubr.f32.mxu1 %v12588_v17  ;;  %v12771_v23 = vld [vmem:[%s12761_s24 + $0x10] sm:$0xff] }
 0x476   : > { %10957 = vmatprep.subr.bf16.mxu1 %v10956_v11  ;;  %vm4366_vm4 = vcmp.gt.f32.partialorder %v12771_v23, 0.0 }
 0x479   : > { %10959 = vmatpush3.bf16.msra.mxu1 %v10956_v11 }
 0x47a   : > { %10961 = vmatprep.subr.bf16.mxu1 %v10960_v60 }
 0x47c   : > { %10208 = vmatmul.mubr.f32.vlgmr.msra.gmra.mrb[28].mxu1 %v12585_v45 }
 0x47d   : > { %10963 = vmatpush3.bf16.msra.mxu1 %v10960_v60  ;;  %10218 = vmatprep.mubr.f32.mxu1 %v12594_v43 }
 0x47e   : > { %10965 = vmatprep.subr.bf16.mxu1 %v10964_v41 }
 0x481   : > { %10967 = vmatpush3.bf16.msra.mxu1 %v10964_v41 }
 0x482   : > { %10969 = vmatprep.subr.bf16.mxu1 %v12713_v46 }
 0x484   : > { %10219 = vmatmul.mubr.f32.vlgmr.msra.gmra.mrb[28].mxu1 %v12591_v63 }
 0x485   : > { %10971 = vmatpush3.bf16.msra.mxu1 %v12713_v46  ;;  %10229 = vmatprep.mubr.f32.mxu1 %v12600_v32 }
 0x486   : > { %10973 = vmatprep.subr.bf16.mxu1 %v10948_v44 }
 0x489   : > { %10975 = vmatpush3.bf16.msra.mxu1 %v10948_v44 }
 0x48a   : > { %10977 = vmatprep.subr.bf16.mxu1 %v10976_v36 }
 0x48c   : > { %10230 = vmatmul.mubr.f32.vlgmr.msra.gmra.mrb[28].mxu1 %v12597_v12 }
 0x48d   : > { %10979 = vmatpush3.bf16.msra.mxu1 %v10976_v36  ;;  %10240 = vmatprep.mubr.f32.mxu1 %v12588_v17 }
 0x48e   : > { %10981 = vmatprep.subr.bf16.mxu1 %v10980_v53 }
 0x491   : > { %10983 = vmatpush3.bf16.msra.mxu1 %v10980_v53  ;;  %v12789_v53 = vld [vmem:[%s12761_s24 + $0x20] sm:$0xff] }
 0x492   : > { %10985 = vmatprep.subr.bf16.mxu1 %v12713_v46  ;;  %vm4368_vm6 = vcmp.gt.f32.partialorder %v12789_v53, 0.0 }
 0x494   : > { %10241 = vmatmul.mubr.f32.vlgmr.msra.gmra.mrb[28].mxu1 %v12585_v45 }
 0x495   : > { %10987 = vmatpush3.bf16.msra.mxu1 %v12713_v46  ;;  %10251 = vmatprep.mubr.f32.mxu1 %v12588_v17 }
 0x496   : > { %10989 = vmatprep.subr.bf16.mxu1 %v10948_v44 }
 0x499   : > { %10991 = vmatpush3.bf16.msra.mxu1 %v10948_v44 }
 0x49c   : > { %10252 = vmatmul.mubr.f32.vlgmr.msra.gmra.mrb[28].mxu1 %v12585_v45 }
 0x49d   : > { %10258 = vmatprep.mubr.f32.mxu1 %v13432_v13 }
 0x537   : > { %v10016_v42 = vpop.f32.mrb[20].mxu1 }
 0x538   : > { %v4349_v46 = vmul.f32 0.2, %v10016_v42  ;;  %v4302_v30 = vpop.f32.mrb[21].mxu1 }
 0x539   : > { %v4348_v44 = vmul.f32 0.2, %v4302_v30 }
 0x53a   : > { %v4357_v13 = vmax.f32 %v10016_v42, %v4349_v46 }
 0x53b   : > { %v4356_v29 = vmax.f32 %v4302_v30, %v4348_v44  ;;  %v10019_v2 = vpop.f32.mrb[22].mxu1 }
 0x53c   : > { %v4351_v28 = vmul.f32 0.2, %v10019_v2  ;;  %v4314_v49 = vpop.f32.mrb[23].mxu1  ;;  %v12786_v36 = vsel %vm4365_vm3, %v4357_v13, -1e+30 }
 0x53d   : > { %v4350_v47 = vmul.f32 0.2, %v4314_v49  ;;  %v12776_v26 = vsel %vm4364_vm1, %v4356_v29, -1e+30  ;;  %v12797_v29 = vld [vmem:[%s12761_s24 + $0x28] sm:$0xff] }
 0x53e   : > { %v4381_v0 = vsel %vm4380_vm2, %v12776_v26, -inf  ;;  %v4359_v11 = vmax.f32 %v10019_v2, %v4351_v28  ;;  %v4384_v2 = vsel %vm4380_vm2, %v12786_v36, -inf  ;;  %vm4369_vm7 = vcmp.gt.f32.partialorder %v12797_v29, 0.0 }
 0x53f   : > { %v4358_v60 = vmax.f32 %v4314_v49, %v4350_v47  ;;  %4382 = vmax.xlane.f32.xlu0 %v4381_v0  ;;  %v10022_v41 = vpop.f32.mrb[24].mxu1 }
 0x540   : > { %v4353_v42 = vmul.f32 0.2, %v10022_v41  ;;  %v4326_v46 = vpop.f32.mrb[25].mxu1  ;;  %v12806_v0 = vsel %vm4367_vm5, %v4359_v11, -1e+30 }
 0x541   : > { %v4352_v30 = vmul.f32 0.2, %v4326_v46  ;;  %v12794_v44 = vsel %vm4366_vm4, %v4358_v60, -1e+30  ;;  %v12809_v60 = vld [vmem:[%s12761_s24 + $0x30] sm:$0xff] }
 0x542   : > { %v4387_v13 = vsel %vm4380_vm2, %v12794_v44, -inf  ;;  %v4361_v28 = vmax.f32 %v10022_v41, %v4353_v42  ;;  %v12817_v41 = vld [vmem:[%s12761_s24 + $0x38] sm:$0xff]  ;;  %v4390_v42 = vsel %vm4380_vm2, %v12806_v0, -inf  ;;  %vm4370_vm8 = vcmp.gt.f32.partialorder %v12809_v60, 0.0 }
 0x543   : > { %v4360_v49 = vmax.f32 %v4326_v46, %v4352_v30  ;;  %4385 = vmax.xlane.f32.xlu0 %v4384_v2  ;;  %4388 = vmax.xlane.f32.xlu1 %v4387_v13  ;;  %v10025_v47 = vpop.f32.mrb[26].mxu1  ;;  %13447 = vst [vmem:[#allocation13_spill] sm:$0xff] %v12817_v41  ;;  %vm4371_vm9 = vcmp.gt.f32.partialorder %v12817_v41, 0.0 }
 0x544   : > { %v4355_v12 = vmul.f32 0.2, %v10025_v47  ;;  %v4338_v32 = vpop.f32.mrb[27].mxu1  ;;  %v12826_v2 = vsel %vm4369_vm7, %v4361_v28, -1e+30 }
 0x545   : > { %v4354_v63 = vmul.f32 0.2, %v4338_v32  ;;  %v12814_v43 = vsel %vm4368_vm6, %v4360_v49, -1e+30  ;;  %v4396_v49 = vsel %vm4380_vm2, %v12826_v2, -inf }
 0x546   : > { %v4393_v11 = vsel %vm4380_vm2, %v12814_v43, -inf  ;;  %v4363_v46 = vmax.f32 %v10025_v47, %v4355_v12 }
 0x547   : > { %v4362_v30 = vmax.f32 %v4338_v32, %v4354_v63  ;;  %4391 = vmax.xlane.f32.xlu1 %v4390_v42  ;;  %4394 = vmax.xlane.f32.xlu0 %v4393_v11 }
 0x548   : > { %v12839_v63 = vsel %vm4371_vm9, %v4363_v46, -1e+30 }
 0x549   : > { %v12831_v13 = vsel %vm4370_vm8, %v4362_v30, -1e+30  ;;  %v4402_v12 = vsel %vm4380_vm2, %v12839_v63, -inf }
 0x54a   : > { %v4399_v45 = vsel %vm4380_vm2, %v12831_v13, -inf }
 0x54b   : > { %4397 = vmax.xlane.f32.xlu1 %v4396_v49  ;;  %4400 = vmax.xlane.f32.xlu0 %v4399_v45 }
 0x54f   : > { %4403 = vmax.xlane.f32.xlu1 %v4402_v12 }
 0x56f   : > { %v10253_v32 = vpop.f32.mrb[28].mxu1 }
 0x570   : > { %v6346_v28 = vsel %vm351_vm0, %v10253_v32, 0  ;;  %v6332_v47 = vpop.f32.mrb[29].mxu1 }
 0x571   : > { %v6352_v42 = vand.u32 4294901760, %v6346_v28  ;;  %v6343_v11 = vsel %vm351_vm0, %v6332_v47, 0 }
 0x572   : > { %v6349_v30 = vand.u32 4294901760, %v6343_v11 }
 0x573   : > { %v6504_v17 = vsub.f32 %v6346_v28, %v6352_v42 }
 0x574   : > { %v10992_v31 = vpack.c.bf16 %v6352_v42, %v6349_v30  ;;  %v6497_v49 = vsub.f32 %v6343_v11, %v6349_v30 }
 0x575   : > { %v6505_v45 = vand.u32 4294901760, %v6504_v17 }
 0x576   : > { %v6498_v16 = vand.u32 4294901760, %v6497_v49  ;;  %10993 = vmatprep.subr.bf16.mxu1 %v10992_v31  ;;  %v11000_v46 = vpack.c.bf16 %v6504_v17, %v6497_v49 }
 0x577   : > { %v6506_v1 = vsub.f32 %v6504_v17, %v6505_v45  ;;  %10995 = vmatpush3.bf16.xpose.msra.mxu1 %v10992_v31 }
 0x578   : > { %v6499_v56 = vsub.f32 %v6497_v49, %v6498_v16  ;;  %v11008_v59 = vpack.c.bf16 %v6505_v45, %v6498_v16 }
 0x579   : > { %v6507_v12 = vand.u32 4294901760, %v6506_v1 }
 0x57a   : > { %v6500_v27 = vand.u32 4294901760, %v6499_v56 }
 0x57c   : > { %v10996_v41 = vpack.c.bf16 %v6507_v12, %v6500_v27 }
 0x57e   : > { %10259 = vmatmul.mubr.f32.vlgmr.msra.gmra.mrb[30].mxu1 %v12343_v62  ;;  %10997 = vmatprep.subr.bf16.mxu1 %v10996_v41 }
 0x57f   : > { %10999 = vmatpush3.bf16.xpose.msra.mxu1 %v10996_v41  ;;  %10261 = vmatprep.mubr.f32.mxu1 %v12345_v7 }
 0x580   : > { %11001 = vmatprep.subr.bf16.mxu1 %v11000_v46 }
 0x582   : > { %10262 = vmatmul.mubr.f32.gmra.mrb[32].mxu1 %v13437_v39 }
 0x583   : > { %10264 = vmatprep.mubr.f32.mxu1 %v13438_v48 }
 0x586   : > { %10265 = vmatmul.mubr.f32.gmra.mrb[34].mxu1 %v12395_v10 }
 0x587   : > { %10267 = vmatprep.mubr.f32.mxu1 %v12410_v25 }
 0x58a   : > { %10268 = vmatmul.mubr.f32.gmra.mrb[36].mxu1 %v12413_v8 }
 0x58b   : > { %10274 = vmatprep.mubr.f32.mxu1 %v12262_v38 }
 0x58e   : > { %10275 = vmatmul.mubr.f32.vlgmr.msra.gmra.mrb[30].mxu1 %v12264_v40 }
 0x58f   : > { %11003 = vmatpush3.bf16.xpose.msra.mxu1 %v11000_v46  ;;  %10277 = vmatprep.mubr.f32.mxu1 %v12266_v33 }
 0x590   : > { %11005 = vmatprep.subr.bf16.mxu1 %v10992_v31 }
 0x592   : > { %10278 = vmatmul.mubr.f32.gmra.mrb[32].mxu1 %v12286_v4 }
 0x593   : > { %10280 = vmatprep.mubr.f32.mxu1 %v12289_v5 }
 0x596   : > { %10281 = vmatmul.mubr.f32.gmra.mrb[34].mxu1 %v12291_v9 }
 0x597   : > { %10283 = vmatprep.mubr.f32.mxu1 %v12355_v54 }
 0x59a   : > { %10284 = vmatmul.mubr.f32.gmra.mrb[36].mxu1 %v12368_v52 }
 0x59b   : > { %10290 = vmatprep.mubr.f32.mxu1 %v12278_v50 }
 0x59e   : > { %10291 = vmatmul.mubr.f32.vlgmr.msra.gmra.mrb[30].mxu1 %v12281_v51 }
 0x59f   : > { %11007 = vmatpush3.bf16.xpose.msra.mxu1 %v10992_v31  ;;  %10293 = vmatprep.mubr.f32.mxu1 %v12284_v34 }
 0x5a0   : > { %11009 = vmatprep.subr.bf16.mxu1 %v11008_v59 }
 0x5a2   : > { %10294 = vmatmul.mubr.f32.gmra.mrb[32].mxu1 %v12306_v57 }
 0x5a3   : > { %10296 = vmatprep.mubr.f32.mxu1 %v12310_v20 }
 0x5a6   : > { %10297 = vmatmul.mubr.f32.gmra.mrb[34].mxu1 %v12313_v18 }
 0x5a7   : > { %10299 = vmatprep.mubr.f32.mxu1 %v12374_v37 }
 0x5aa   : > { %10300 = vmatmul.mubr.f32.gmra.mrb[36].mxu1 %v12384_v35 }
 0x5ab   : > { %10306 = vmatprep.mubr.f32.mxu1 %v13439_v61 }
 0x5ae   : > { %10307 = vmatmul.mubr.f32.vlgmr.msra.gmra.mrb[30].mxu1 %v13440_v15 }
 0x5af   : > { %11011 = vmatpush3.bf16.xpose.msra.mxu1 %v11008_v59  ;;  %10309 = vmatprep.mubr.f32.mxu1 %v13441_v22 }
 0x5b0   : > { %11013 = vmatprep.subr.bf16.mxu1 %v10992_v31 }
 0x5b2   : > { %10310 = vmatmul.mubr.f32.gmra.mrb[32].mxu1 %v13442_v3 }
 0x5b3   : > { %10312 = vmatprep.mubr.f32.mxu1 %v13443_v21 }
 0x5b6   : > { %10313 = vmatmul.mubr.f32.gmra.mrb[34].mxu1 %v13444_v58 }
 0x5b7   : > { %10315 = vmatprep.mubr.f32.mxu1 %v13445_v14 }
 0x5ba   : > { %10316 = vmatmul.mubr.f32.gmra.mrb[36].mxu1 %v13446_v55 }
 0x5bb   : > { %10322 = vmatprep.mubr.f32.mxu1 %v12262_v38 }
 0x5be   : > { %10323 = vmatmul.mubr.f32.vlgmr.msra.gmra.mrb[30].mxu1 %v12264_v40 }
 0x5bf   : > { %11015 = vmatpush3.bf16.xpose.msra.mxu1 %v10992_v31  ;;  %10325 = vmatprep.mubr.f32.mxu1 %v12266_v33 }
 0x5c2   : > { %10326 = vmatmul.mubr.f32.gmra.mrb[32].mxu1 %v12286_v4 }
 0x5c3   : > { %10328 = vmatprep.mubr.f32.mxu1 %v12289_v5 }
 0x5c6   : > { %10329 = vmatmul.mubr.f32.gmra.mrb[34].mxu1 %v12291_v9 }
 0x5c7   : > { %10331 = vmatprep.mubr.f32.mxu1 %v12355_v54 }
 0x5ca   : > { %10332 = vmatmul.mubr.f32.gmra.mrb[36].mxu1 %v12368_v52 }
 0x5cb   : > { %10338 = vmatprep.mubr.f32.mxu1 %v12262_v38 }
 0x5cc   : > { %v4383_v62 = vpop.xlane.xlu0 %4382 }
 0x5cd   : > { %v4405_v50 = vsub.f32 %v12776_v26, %v4383_v62 }
 0x5ce   : > { %10339 = vmatmul.mubr.f32.vlgmr.msra.gmra.mrb[30].mxu1 %v12264_v40 }
 0x5cf   : > { %v4413_v51 = vmul.f32 1.442695, %v4405_v50  ;;  %10341 = vmatprep.mubr.f32.mxu1 %v12266_v33 }
 0x5d0   : > { %v4386_v34 = vpop.xlane.xlu0 %4385  ;;  %v4389_v7 = vpop.xlane.xlu1 %4388 }
 0x5d1   : > { %11489 = vpow2.f32 %v4413_v51  ;;  %v4406_v57 = vsub.f32 %v12786_v36, %v4386_v34  ;;  %v4407_v20 = vsub.f32 %v12794_v44, %v4389_v7 }
 0x5d2   : > { %10342 = vmatmul.mubr.f32.gmra.mrb[32].mxu1 %v12286_v4 }
 0x5d3   : > { %v4415_v18 = vmul.f32 1.442695, %v4406_v57  ;;  %v4417_v8 = vmul.f32 1.442695, %v4407_v20  ;;  %10344 = vmatprep.mubr.f32.mxu1 %v12289_v5 }
 0x5d4   : > { %v4392_v38 = vpop.xlane.xlu1 %4391  ;;  %v4395_v37 = vpop.xlane.xlu0 %4394 }
 0x5d5   : > { %11491 = vpow2.f32 %v4415_v18  ;;  %v4408_v40 = vsub.f32 %v12806_v0, %v4392_v38  ;;  %v4409_v33 = vsub.f32 %v12814_v43, %v4395_v37 }
 0x5d6   : > { %11493 = vpow2.f32 %v4417_v8  ;;  %10345 = vmatmul.mubr.f32.gmra.mrb[34].mxu1 %v12291_v9 }
 0x5d7   : > { %v4419_v35 = vmul.f32 1.442695, %v4408_v40  ;;  %v4421_v10 = vmul.f32 1.442695, %v4409_v33  ;;  %10347 = vmatprep.mubr.f32.mxu1 %v12355_v54 }
 0x5d8   : > { %v4398_v25 = vpop.xlane.xlu1 %4397  ;;  %v4401_v4 = vpop.xlane.xlu0 %4400 }
 0x5d9   : > { %11495 = vpow2.f32 %v4419_v35  ;;  %v4410_v17 = vsub.f32 %v12826_v2, %v4398_v25  ;;  %v4411_v5 = vsub.f32 %v12831_v13, %v4401_v4 }
 0x5da   : > { %11497 = vpow2.f32 %v4421_v10  ;;  %10348 = vmatmul.mubr.f32.gmra.mrb[36].mxu1 %v12368_v52 }
 0x5db   : > { %v11490_v16 = vpop.eup %11489  ;;  %v4423_v31 = vmul.f32 1.442695, %v4410_v17  ;;  %v4425_v43 = vmul.f32 1.442695, %v4411_v5 }
 0x5dc   : > { %v4404_v56 = vpop.xlane.xlu1 %4403  ;;  %v4429_v9 = vmul.f32 %v11490_v16, %v12764_v19 }
 0x5dd   : > { %11499 = vpow2.f32 %v4423_v31  ;;  %v4412_v59 = vsub.f32 %v12839_v63, %v4404_v56  ;;  %v13448_v63 = vld [vmem:[#allocation13_spill] sm:$0xff] }
 0x5de   : > { %11501 = vpow2.f32 %v4425_v43  ;;  %v4437_v54 = vsel %vm4380_vm2, %v4429_v9, 0.0 }
 0x5df   : > { %v11492_v1 = vpop.eup %11491  ;;  %v4427_v27 = vmul.f32 1.442695, %v4412_v59  ;;  %4438 = vadd.xlane.f32.xlu0 %v4437_v54 }
 0x5e0   : > { %v11494_v39 = vpop.eup %11493  ;;  %v4430_v48 = vmul.f32 %v11492_v1, %v12767_v6 }
 0x5e1   : > { %11503 = vpow2.f32 %v4427_v27  ;;  %v4431_v52 = vmul.f32 %v11494_v39, %v12771_v23 }
 0x5e2   : > { %v4440_v61 = vsel %vm4380_vm2, %v4430_v48, 0.0 }
 0x5e3   : > { %v11496_v15 = vpop.eup %11495  ;;  %4441 = vadd.xlane.f32.xlu1 %v4440_v61  ;;  %v4443_v22 = vsel %vm4380_vm2, %v4431_v52, 0.0 }
 0x5e4   : > { %v11498_v3 = vpop.eup %11497  ;;  %4444 = vadd.xlane.f32.xlu0 %v4443_v22  ;;  %v4432_v21 = vmul.f32 %v11496_v15, %v12779_v24 }
 0x5e5   : > { %v4433_v58 = vmul.f32 %v11498_v3, %v12789_v53 }
 0x5e6   : > { %v4446_v14 = vsel %vm4380_vm2, %v4432_v21, 0.0 }
 0x5e7   : > { %v11500_v55 = vpop.eup %11499  ;;  %4447 = vadd.xlane.f32.xlu1 %v4446_v14  ;;  %v4449_v26 = vsel %vm4380_vm2, %v4433_v58, 0.0 }
 0x5e8   : > { %v11502_v36 = vpop.eup %11501  ;;  %4450 = vadd.xlane.f32.xlu0 %v4449_v26  ;;  %v12911_v44 = vmul.f32 %v11500_v55, %v12797_v29 }
 0x5e9   : > { %v12914_v0 = vmul.f32 %v11502_v36, %v12809_v60 }
 0x5ea   : > { %v4452_v41 = vsel %vm4380_vm2, %v12911_v44, 0.0 }
 0x5eb   : > { %v11504_v2 = vpop.eup %11503  ;;  %4453 = vadd.xlane.f32.xlu1 %v4452_v41  ;;  %v4455_v13 = vsel %vm4380_vm2, %v12914_v0, 0.0 }
 0x5ec   : > { %4456 = vadd.xlane.f32.xlu0 %v4455_v13  ;;  %v12921_v32 = vmul.f32 %v11504_v2, %v13448_v63 }
 0x5ee   : > { %v4458_v28 = vsel %vm4380_vm2, %v12921_v32, 0.0 }
 0x5ef   : > { %4459 = vadd.xlane.f32.xlu1 %v4458_v28 }
 0x66c   : > { %v4439_v47 = vpop.xlane.xlu0 %4438 }
 0x66d   : > { %v4461_v42 = vmax.f32 %v4439_v47, 1e-20 }
 0x66f   : > { %11505 = vrcp.f32 %v4461_v42 }
 0x670   : > { %v4442_v11 = vpop.xlane.xlu1 %4441 }
 0x671   : > { %v4462_v30 = vmax.f32 %v4442_v11, 1e-20  ;;  %v4445_v49 = vpop.xlane.xlu0 %4444 }
 0x672   : > { %v4463_v45 = vmax.f32 %v4445_v49, 1e-20 }
 0x673   : > { %11507 = vrcp.f32 %v4462_v30 }
 0x674   : > { %11509 = vrcp.f32 %v4463_v45  ;;  %v4448_v46 = vpop.xlane.xlu1 %4447 }
 0x675   : > { %v4464_v12 = vmax.f32 %v4448_v46, 1e-20  ;;  %v4451_v62 = vpop.xlane.xlu0 %4450 }
 0x676   : > { %v4465_v50 = vmax.f32 %v4451_v62, 1e-20 }
 0x677   : > { %11511 = vrcp.f32 %v4464_v12 }
 0x678   : > { %11513 = vrcp.f32 %v4465_v50  ;;  %v4454_v51 = vpop.xlane.xlu1 %4453  ;;  %v13449_v50 = vld [vmem:[#allocation26_spill] sm:$0xff] }
 0x679   : > { %v11506_v34 = vpop.eup %11505  ;;  %v4466_v7 = vmax.f32 %v4454_v51, 1e-20  ;;  %v4457_v57 = vpop.xlane.xlu0 %4456 }
 0x67a   : > { %v4467_v20 = vmax.f32 %v4457_v57, 1e-20  ;;  %v4470_v18 = vmul.f32 %v11506_v34, %v4429_v9 }
 0x67b   : > { %11515 = vrcp.f32 %v4466_v7  ;;  %v13450_v7 = vld [vmem:[#allocation24_spill] sm:$0xff] }
 0x67c   : > { %11517 = vrcp.f32 %v4467_v20  ;;  %v4460_v8 = vpop.xlane.xlu1 %4459  ;;  %v5018_v38 = vsel %vm4380_vm2, %v4470_v18, 0 }
 0x67d   : > { %v11508_v37 = vpop.eup %11507  ;;  %v4468_v40 = vmax.f32 %v4460_v8, 1e-20  ;;  %v12926_v33 = vand.u32 4294901760, %v5018_v38 }
 0x67e   : > { %v11510_v35 = vpop.eup %11509  ;;  %v4472_v10 = vmul.f32 %v11508_v37, %v4430_v48 }
 0x67f   : > { %11519 = vrcp.f32 %v4468_v40  ;;  %v12929_v25 = vsub.f32 %v5018_v38, %v12926_v33  ;;  %v4474_v4 = vmul.f32 %v11510_v35, %v4431_v52 }
 0x680   : > { %v5021_v17 = vsel %vm4380_vm2, %v4472_v10, 0 }
 0x681   : > { %v11512_v5 = vpop.eup %11511  ;;  %v5110_v16 = vand.u32 4294901760, %v12929_v25  ;;  %v12933_v31 = vand.u32 4294901760, %v5021_v17  ;;  %v5024_v43 = vsel %vm4380_vm2, %v4474_v4, 0 }
 0x682   : > { %v11514_v56 = vpop.eup %11513  ;;  %v12936_v9 = vand.u32 4294901760, %v5024_v43  ;;  %v4476_v59 = vmul.f32 %v11512_v5, %v4432_v21 }
 0x683   : > { %v5111_v54 = vsub.f32 %v12929_v25, %v5110_v16  ;;  %v12942_v1 = vsub.f32 %v5021_v17, %v12933_v31  ;;  %v4478_v27 = vmul.f32 %v11514_v56, %v4433_v58  ;;  %v13451_v56 = vld [vmem:[#allocation12_spill] sm:$0xff] }
 0x684   : > { %v12945_v39 = vsub.f32 %v5024_v43, %v12936_v9  ;;  %v5027_v48 = vsel %vm4380_vm2, %v4476_v59, 0 }
 0x685   : > { %v11516_v52 = vpop.eup %11515  ;;  %v5112_v61 = vand.u32 4294901760, %v5111_v54  ;;  %v5120_v15 = vand.u32 4294901760, %v12942_v1  ;;  %v12949_v22 = vand.u32 4294901760, %v5027_v48  ;;  %v5030_v3 = vsel %vm4380_vm2, %v4478_v27, 0 }
 0x686   : > { %v11518_v21 = vpop.eup %11517  ;;  %v5130_v14 = vand.u32 4294901760, %v12945_v39  ;;  %v12953_v55 = vand.u32 4294901760, %v5030_v3  ;;  %v4480_v58 = vmul.f32 %v11516_v52, %v12911_v44 }
 0x687   : > { %10096 = vmatprep.mubr.f32.mxu0 %v5112_v61  ;;  %v5121_v26 = vsub.f32 %v12942_v1, %v5120_v15  ;;  %v12960_v36 = vsub.f32 %v5027_v48, %v12949_v22  ;;  %v4482_v41 = vmul.f32 %v11518_v21, %v12914_v0 }
 0x688   : > { %v5131_v2 = vsub.f32 %v12945_v39, %v5130_v14  ;;  %v12967_v13 = vsub.f32 %v5030_v3, %v12953_v55  ;;  %v5033_v28 = vsel %vm4380_vm2, %v4480_v58, 0 }
 0x689   : > { %v11520_v44 = vpop.eup %11519  ;;  %v5122_v47 = vand.u32 4294901760, %v5121_v26  ;;  %v5140_v42 = vand.u32 4294901760, %v12960_v36  ;;  %v12971_v11 = vand.u32 4294901760, %v5033_v28  ;;  %v5036_v30 = vsel %vm4380_vm2, %v4482_v41, 0 }
 0x68a   : > { %v5132_v49 = vand.u32 4294901760, %v5131_v2  ;;  %v5150_v0 = vand.u32 4294901760, %v12967_v13  ;;  %v12975_v45 = vand.u32 4294901760, %v5036_v30  ;;  %v4484_v46 = vmul.f32 %v11520_v44, %v12921_v32 }
 0x68b   : > { %10097 = vmatmul.mubr.f32.vlgmr.msra.gmra.mrb[20].mxu0 %v5122_v47  ;;  %v5141_v12 = vsub.f32 %v12960_v36, %v5140_v42  ;;  %v12982_v62 = vsub.f32 %v5033_v28, %v12971_v11 }
 0x68c   : > { %10927 = vmatpush3.bf16.msra.mxu0 %v13449_v50  ;;  %10099 = vmatprep.mubr.f32.mxu0 %v5132_v49  ;;  %v5151_v51 = vsub.f32 %v12967_v13, %v5150_v0  ;;  %v12989_v34 = vsub.f32 %v5036_v30, %v12975_v45  ;;  %v5039_v32 = vsel %vm4380_vm2, %v4484_v46, 0 }
 0x68d   : > { %10929 = vmatprep.subr.bf16.mxu0 %v13450_v7  ;;  %v5142_v57 = vand.u32 4294901760, %v5141_v12  ;;  %v5160_v20 = vand.u32 4294901760, %v12982_v62  ;;  %v12994_v18 = vand.u32 4294901760, %v5039_v32 }
 0x68e   : > { %v5152_v8 = vand.u32 4294901760, %v5151_v51  ;;  %v5170_v38 = vand.u32 4294901760, %v12989_v34 }
 0x68f   : > { %10100 = vmatmul.mubr.f32.gmra.mrb[22].mxu0 %v5142_v57  ;;  %v5161_v37 = vsub.f32 %v12982_v62, %v5160_v20  ;;  %v13001_v40 = vsub.f32 %v5039_v32, %v12994_v18 }
 0x690   : > { %10102 = vmatprep.mubr.f32.mxu0 %v5152_v8  ;;  %v5171_v35 = vsub.f32 %v12989_v34, %v5170_v38 }
 0x691   : > { %v5162_v10 = vand.u32 4294901760, %v5161_v37  ;;  %v5180_v4 = vand.u32 4294901760, %v13001_v40 }
 0x692   : > { %v5172_v17 = vand.u32 4294901760, %v5171_v35  ;;  %v13452_v35 = vld [vmem:[#allocation25_spill] sm:$0xff] }
 0x693   : > { %10103 = vmatmul.mubr.f32.gmra.mrb[24].mxu0 %v5162_v10  ;;  %v5181_v5 = vsub.f32 %v13001_v40, %v5180_v4 }
 0x694   : > { %10105 = vmatprep.mubr.f32.mxu0 %v5172_v17 }
 0x695   : > { %v5182_v43 = vand.u32 4294901760, %v5181_v5 }
 0x697   : > { %10106 = vmatmul.mubr.f32.gmra.mrb[26].mxu0 %v5182_v43 }
 0x698   : > { %10112 = vmatprep.mubr.f32.mxu0 %v12926_v33 }
 0x69b   : > { %10113 = vmatmul.mubr.f32.vlgmr.msra.gmra.mrb[20].mxu0 %v12933_v31 }
 0x69c   : > { %10931 = vmatpush3.bf16.msra.mxu0 %v13450_v7  ;;  %10115 = vmatprep.mubr.f32.mxu0 %v12936_v9 }
 0x69d   : > { %10933 = vmatprep.subr.bf16.mxu0 %v13451_v56 }
 0x69f   : > { %10116 = vmatmul.mubr.f32.gmra.mrb[22].mxu0 %v12949_v22 }
 0x6a0   : > { %10118 = vmatprep.mubr.f32.mxu0 %v12953_v55 }
 0x6a1   : > { %v10340_v59 = vpop.f32.mrb[30].mxu1 }
 0x6a2   : > { %v7109_v54 = vmul.f32 0.2, %v10340_v59  ;;  %v7062_v27 = vpop.f32.mrb[31].mxu1 }
 0x6a3   : > { %v7108_v48 = vmul.f32 0.2, %v7062_v27  ;;  %10119 = vmatmul.mubr.f32.gmra.mrb[24].mxu0 %v12971_v11 }
 0x6a4   : > { %v7117_v52 = vmax.f32 %v10340_v59, %v7109_v54  ;;  %10121 = vmatprep.mubr.f32.mxu0 %v12975_v45 }
 0x6a5   : > { %v7116_v61 = vmax.f32 %v7062_v27, %v7108_v48  ;;  %v10343_v3 = vpop.f32.mrb[32].mxu1 }
 0x6a6   : > { %v7111_v21 = vmul.f32 0.2, %v10343_v3  ;;  %v7074_v58 = vpop.f32.mrb[33].mxu1  ;;  %v13021_v26 = vsel %vm4365_vm3, %v7117_v52, -1e+30 }
 0x6a7   : > { %v7110_v41 = vmul.f32 0.2, %v7074_v58  ;;  %10122 = vmatmul.mubr.f32.gmra.mrb[26].mxu0 %v12994_v18  ;;  %v7135_v2 = vsel %vm4380_vm2, %v13021_v26, -inf  ;;  %v13028_v28 = vsel %vm4364_vm1, %v7116_v61, -1e+30 }
 0x6a8   : > { %v7119_v44 = vmax.f32 %v10343_v3, %v7111_v21  ;;  %7136 = vmax.xlane.f32.xlu1 %v7135_v2  ;;  %10128 = vmatprep.mubr.f32.mxu0 %v12929_v25  ;;  %v7132_v47 = vsel %vm4380_vm2, %v13028_v28, -inf  ;;  %v8648_v25 = vld [vmem:[%s13348_s6 + $0x20] sm:$0xff] }
 0x6a9   : > { %v7118_v30 = vmax.f32 %v7074_v58, %v7110_v41  ;;  %v10346_v49 = vpop.f32.mrb[34].mxu1  ;;  %7133 = vmax.xlane.f32.xlu0 %v7132_v47 }
 0x6aa   : > { %v7113_v46 = vmul.f32 0.2, %v10346_v49  ;;  %v7086_v12 = vpop.f32.mrb[35].mxu1  ;;  %v13035_v50 = vsel %vm4367_vm5, %v7119_v44, -1e+30 }
 0x6ab   : > { %v7112_v51 = vmul.f32 0.2, %v7086_v12  ;;  %10129 = vmatmul.mubr.f32.vlgmr.msra.gmra.mrb[20].mxu0 %v12942_v1  ;;  %v7141_v32 = vsel %vm4380_vm2, %v13035_v50, -inf  ;;  %v13042_v7 = vsel %vm4366_vm4, %v7118_v30, -1e+30  ;;  %v7242_v1 = vand.u32 4294901760, %v8648_v25 }
 0x6ac   : > { %v7121_v57 = vmax.f32 %v10346_v49, %v7113_v46  ;;  %10935 = vmatpush3.bf16.msra.mxu0 %v13451_v56  ;;  %7142 = vmax.xlane.f32.xlu1 %v7141_v32  ;;  %v7138_v8 = vsel %vm4380_vm2, %v13042_v7, -inf }
 0x6ad   : > { %v7120_v37 = vmax.f32 %v7086_v12, %v7112_v51  ;;  %10131 = vmatprep.mubr.f32.mxu0 %v12945_v39  ;;  %10937 = vmatprep.subr.bf16.mxu0 %v13452_v35  ;;  %v10349_v10 = vpop.f32.mrb[36].mxu1  ;;  %v13453_v51 = vld [vmem:[#allocation22_spill] sm:$0xff] }
 0x6ae   : > { %v7115_v17 = vmul.f32 0.2, %v10349_v10  ;;  %7139 = vmax.xlane.f32.xlu0 %v7138_v8  ;;  %v7098_v5 = vpop.f32.mrb[37].mxu1  ;;  %v13051_v43 = vsel %vm4369_vm7, %v7121_v57, -1e+30  ;;  %v13454_v57 = vld [vmem:[#allocation23_spill] sm:$0xff] }
 0x6af   : > { %v7114_v59 = vmul.f32 0.2, %v7098_v5  ;;  %10132 = vmatmul.mubr.f32.gmra.mrb[22].mxu0 %v12960_v36  ;;  %v7147_v54 = vsel %vm4380_vm2, %v13051_v43, -inf  ;;  %v13058_v27 = vsel %vm4368_vm6, %v7120_v37, -1e+30  ;;  %v13459_v37 = vld [vmem:[#allocation21_spill] sm:$0xff] }
 0x6b0   : > { %v7123_v48 = vmax.f32 %v10349_v10, %v7115_v17  ;;  %7148 = vmax.xlane.f32.xlu1 %v7147_v54  ;;  %10134 = vmatprep.mubr.f32.mxu0 %v12967_v13  ;;  %v7144_v52 = vsel %vm4380_vm2, %v13058_v27, -inf  ;;  %v8650_v13 = vld [vmem:[%s13348_s6 + $0x30] sm:$0xff]  ;;  %v13460_v17 = vld [vmem:[#allocation20_spill] sm:$0xff] }
 0x6b1   : > { %v7122_v61 = vmax.f32 %v7098_v5, %v7114_v59 }
 0x6b2   : > { %7145 = vmax.xlane.f32.xlu0 %v7144_v52  ;;  %v13065_v3 = vsel %vm4371_vm9, %v7123_v48, -1e+30 }
 0x6b3   : > { %10135 = vmatmul.mubr.f32.gmra.mrb[24].mxu0 %v12982_v62  ;;  %v7153_v21 = vsel %vm4380_vm2, %v13065_v3, -inf  ;;  %v13072_v58 = vsel %vm4370_vm8, %v7122_v61, -1e+30 }
 0x6b4   : > { %7154 = vmax.xlane.f32.xlu1 %v7153_v21  ;;  %10137 = vmatprep.mubr.f32.mxu0 %v12989_v34  ;;  %v7150_v41 = vsel %vm4380_vm2, %v13072_v58, -inf  ;;  %v7248_v34 = vand.u32 4294901760, %v8650_v13 }
 0x6b6   : > { %7151 = vmax.xlane.f32.xlu0 %v7150_v41  ;;  %v7346_v44 = vsub.f32 %v8650_v13, %v7248_v34 }
 0x6b7   : > { %10138 = vmatmul.mubr.f32.gmra.mrb[26].mxu0 %v13001_v40 }
 0x6b8   : > { %10144 = vmatprep.mubr.f32.mxu0 %v5110_v16  ;;  %v8649_v16 = vld [vmem:[%s13348_s6 + $0x28] sm:$0xff]  ;;  %v7347_v49 = vand.u32 4294901760, %v7346_v44 }
 0x6b9   : > { %v7245_v39 = vand.u32 4294901760, %v8649_v16 }
 0x6bb   : > { %10145 = vmatmul.mubr.f32.vlgmr.msra.gmra.mrb[20].mxu0 %v5120_v15  ;;  %v13103_v15 = vpack.c.bf16 %v7245_v39, %v7242_v1  ;;  %v7339_v36 = vsub.f32 %v8649_v16, %v7245_v39 }
 0x6bc   : > { %10939 = vmatpush3.bf16.msra.mxu0 %v13452_v35  ;;  %10147 = vmatprep.mubr.f32.mxu0 %v5130_v14  ;;  %v7332_v14 = vsub.f32 %v8648_v25, %v7242_v1 }
 0x6bd   : > { %10941 = vmatprep.subr.bf16.mxu0 %v13451_v56  ;;  %v7340_v62 = vand.u32 4294901760, %v7339_v36 }
 0x6bf   : > { %10148 = vmatmul.mubr.f32.gmra.mrb[22].mxu0 %v5140_v42  ;;  %v8651_v42 = vld [vmem:[%s13348_s6 + $0x38] sm:$0xff]  ;;  %v7341_v40 = vsub.f32 %v7339_v36, %v7340_v62 }
 0x6c0   : > { %10150 = vmatprep.mubr.f32.mxu0 %v5150_v0  ;;  %v7333_v0 = vand.u32 4294901760, %v7332_v14 }
 0x6c1   : > { %v7342_v2 = vand.u32 4294901760, %v7341_v40 }
 0x6c2   : > { %v11048_v35 = vpack.c.bf16 %v7340_v62, %v7333_v0 }
 0x6c3   : > { %10151 = vmatmul.mubr.f32.gmra.mrb[24].mxu0 %v5160_v20  ;;  %v7251_v20 = vand.u32 4294901760, %v8651_v42 }
 0x6c4   : > { %10153 = vmatprep.mubr.f32.mxu0 %v5170_v38  ;;  %v7334_v38 = vsub.f32 %v7332_v14, %v7333_v0 }
 0x6c5   : > { %v7353_v47 = vsub.f32 %v8651_v42, %v7251_v20 }
 0x6c7   : > { %10154 = vmatmul.mubr.f32.gmra.mrb[26].mxu0 %v5180_v4  ;;  %v11020_v4 = vpack.c.bf16 %v7251_v20, %v7248_v34  ;;  %v7354_v46 = vand.u32 4294901760, %v7353_v47  ;;  %v11036_v8 = vpack.c.bf16 %v7353_v47, %v7346_v44 }
 0x6c8   : > { %10160 = vmatprep.mubr.f32.mxu0 %v12926_v33 }
 0x6c9   : > { %v7355_v12 = vsub.f32 %v7353_v47, %v7354_v46  ;;  %v11052_v10 = vpack.c.bf16 %v7354_v46, %v7347_v49 }
 0x6cb   : > { %10161 = vmatmul.mubr.f32.vlgmr.msra.gmra.mrb[20].mxu0 %v12933_v31 }
 0x6cc   : > { %10943 = vmatpush3.bf16.msra.mxu0 %v13451_v56  ;;  %10163 = vmatprep.mubr.f32.mxu0 %v12936_v9  ;;  %v7335_v56 = vand.u32 4294901760, %v7334_v38 }
 0x6cd   : > { %11017 = vmatprep.subr.bf16.mxu0 %v13103_v15 }
 0x6ce   : > { %v11024_v30 = vpack.c.bf16 %v7342_v2, %v7335_v56 }
 0x6cf   : > { %10164 = vmatmul.mubr.f32.gmra.mrb[22].mxu0 %v12949_v22 }
 0x6d0   : > { %10166 = vmatprep.mubr.f32.mxu0 %v12953_v55 }
 0x6d3   : > { %10167 = vmatmul.mubr.f32.gmra.mrb[24].mxu0 %v12971_v11 }
 0x6d4   : > { %10169 = vmatprep.mubr.f32.mxu0 %v12975_v45 }
 0x6d7   : > { %10170 = vmatmul.mubr.f32.gmra.mrb[26].mxu0 %v12994_v18 }
 0x6d8   : > { %10176 = vmatprep.mubr.f32.mxu0 %v12926_v33  ;;  %v7348_v33 = vsub.f32 %v7346_v44, %v7347_v49 }
 0x6db   : > { %10177 = vmatmul.mubr.f32.vlgmr.msra.gmra.mrb[20].mxu0 %v12933_v31  ;;  %v7349_v31 = vand.u32 4294901760, %v7348_v33 }
 0x6dc   : > { %10179 = vmatprep.mubr.f32.mxu0 %v12936_v9  ;;  %11019 = vmatpush3.bf16.msra.mxu0 %v13103_v15  ;;  %v7356_v9 = vand.u32 4294901760, %v7355_v12 }
 0x6dd   : > { %11021 = vmatprep.subr.bf16.mxu0 %v11020_v4 }
 0x6de   : > { %v11028_v32 = vpack.c.bf16 %v7356_v9, %v7349_v31 }
 0x6df   : > { %10180 = vmatmul.mubr.f32.gmra.mrb[22].mxu0 %v12949_v22  ;;  %v13455_v22 = vld [vmem:[#allocation17_spill] sm:$0xff] }
 0x6e0   : > { %10182 = vmatprep.mubr.f32.mxu0 %v12953_v55  ;;  %11023 = vmatpush3.bf16.msra.mxu0 %v11020_v4  ;;  %v11032_v55 = vpack.c.bf16 %v7339_v36, %v7332_v14 }
 0x6e1   : > { %11025 = vmatprep.subr.bf16.mxu0 %v11024_v30 }
 0x6e3   : > { %10183 = vmatmul.mubr.f32.gmra.mrb[24].mxu0 %v12971_v11  ;;  %v13456_v11 = vld [vmem:[#allocation5_spill] sm:$0xff] }
 0x6e4   : > { %10185 = vmatprep.mubr.f32.mxu0 %v12975_v45  ;;  %v13457_v45 = vld [vmem:[#allocation19_spill] sm:$0xff] }
 0x6e7   : > { %10186 = vmatmul.mubr.f32.gmra.mrb[26].mxu0 %v12994_v18  ;;  %v13458_v18 = vld [vmem:[#allocation18_spill] sm:$0xff] }
 0x6e8   : > { %10358 = vmatprep.mubr.f32.mxu0 %v13453_v51 }
 0x6eb   : > { %10359 = vmatmul.mubr.f32.vlgmr.msra.gmra.mrb[30].mxu0 %v13454_v57 }
 0x6ec   : > { %11027 = vmatpush3.bf16.msra.mxu0 %v11024_v30  ;;  %10369 = vmatprep.mubr.f32.mxu0 %v13455_v22 }
 0x6ed   : > { %11029 = vmatprep.subr.bf16.mxu0 %v11028_v32 }
 0x6f0   : > { %11031 = vmatpush3.bf16.msra.mxu0 %v11028_v32 }
 0x6f1   : > { %11033 = vmatprep.subr.bf16.mxu0 %v11032_v55 }
 0x6f3   : > { %10370 = vmatmul.mubr.f32.vlgmr.msra.gmra.mrb[30].mxu0 %v13456_v11 }
 0x6f4   : > { %11035 = vmatpush3.bf16.msra.mxu0 %v11032_v55  ;;  %10380 = vmatprep.mubr.f32.mxu0 %v13457_v45 }
 0x6f5   : > { %11037 = vmatprep.subr.bf16.mxu0 %v11036_v8 }
 0x6f8   : > { %11039 = vmatpush3.bf16.msra.mxu0 %v11036_v8 }
 0x6f9   : > { %11041 = vmatprep.subr.bf16.mxu0 %v13103_v15 }
 0x6fb   : > { %10381 = vmatmul.mubr.f32.vlgmr.msra.gmra.mrb[30].mxu0 %v13458_v18 }
 0x6fc   : > { %11043 = vmatpush3.bf16.msra.mxu0 %v13103_v15  ;;  %10391 = vmatprep.mubr.f32.mxu0 %v13459_v37 }
 0x6fd   : > { %11045 = vmatprep.subr.bf16.mxu0 %v11020_v4 }
 0x700   : > { %11047 = vmatpush3.bf16.msra.mxu0 %v11020_v4 }
 0x701   : > { %11049 = vmatprep.subr.bf16.mxu0 %v11048_v35 }
 0x703   : > { %10392 = vmatmul.mubr.f32.vlgmr.msra.gmra.mrb[30].mxu0 %v13460_v17 }
 0x704   : > { %11051 = vmatpush3.bf16.msra.mxu0 %v11048_v35  ;;  %10402 = vmatprep.mubr.f32.mxu0 %v13455_v22 }
 0x705   : > { %11053 = vmatprep.subr.bf16.mxu0 %v11052_v10 }
 0x708   : > { %11055 = vmatpush3.bf16.msra.mxu0 %v11052_v10 }
 0x709   : > { %11057 = vmatprep.subr.bf16.mxu0 %v13103_v15 }
 0x70b   : > { %10403 = vmatmul.mubr.f32.vlgmr.msra.gmra.mrb[30].mxu0 %v13456_v11 }
 0x70c   : > { %11059 = vmatpush3.bf16.msra.mxu0 %v13103_v15  ;;  %10413 = vmatprep.mubr.f32.mxu0 %v13455_v22 }
 0x70d   : > { %11061 = vmatprep.subr.bf16.mxu0 %v11020_v4 }
 0x710   : > { %11063 = vmatpush3.bf16.msra.mxu0 %v11020_v4 }
 0x713   : > { %10414 = vmatmul.mubr.f32.vlgmr.msra.gmra.mrb[30].mxu0 %v13456_v11 }
 0x735   : > { %v7137_v5 = vpop.xlane.xlu1 %7136 }
 0x736   : > { %v7157_v59 = vsub.f32 %v13021_v26, %v7137_v5  ;;  %v7134_v54 = vpop.xlane.xlu0 %7133 }
 0x737   : > { %v7156_v48 = vsub.f32 %v13028_v28, %v7134_v54 }
 0x738   : > { %v7166_v52 = vmul.f32 1.442695, %v7157_v59 }
 0x739   : > { %v7164_v61 = vmul.f32 1.442695, %v7156_v48  ;;  %v7143_v21 = vpop.xlane.xlu1 %7142 }
 0x73a   : > { %11521 = vpow2.f32 %v7166_v52  ;;  %v7159_v41 = vsub.f32 %v13035_v50, %v7143_v21 }
 0x73b   : > { %11523 = vpow2.f32 %v7164_v61  ;;  %v7140_v25 = vpop.xlane.xlu0 %7139 }
 0x73c   : > { %v7170_v16 = vmul.f32 1.442695, %v7159_v41  ;;  %v7158_v1 = vsub.f32 %v13042_v7, %v7140_v25 }
 0x73d   : > { %v7149_v39 = vpop.xlane.xlu1 %7148 }
 0x73e   : > { %11525 = vpow2.f32 %v7170_v16  ;;  %v7168_v15 = vmul.f32 1.442695, %v7158_v1  ;;  %v7161_v14 = vsub.f32 %v13051_v43, %v7149_v39 }
 0x73f   : > { %v7146_v26 = vpop.xlane.xlu0 %7145 }
 0x740   : > { %11527 = vpow2.f32 %v7168_v15  ;;  %v7174_v36 = vmul.f32 1.442695, %v7161_v14  ;;  %v7160_v28 = vsub.f32 %v13058_v27, %v7146_v26 }
 0x741   : > { %v7155_v13 = vpop.xlane.xlu1 %7154 }
 0x742   : > { %11529 = vpow2.f32 %v7174_v36  ;;  %v7172_v42 = vmul.f32 1.442695, %v7160_v28  ;;  %v7163_v50 = vsub.f32 %v13065_v3, %v7155_v13 }
 0x743   : > { %v7152_v0 = vpop.xlane.xlu0 %7151 }
 0x744   : > { %v11522_v62 = vpop.eup %11521  ;;  %11531 = vpow2.f32 %v7172_v42  ;;  %v7178_v34 = vmul.f32 1.442695, %v7163_v50  ;;  %v7162_v7 = vsub.f32 %v13072_v58, %v7152_v0 }
 0x745   : > { %v11524_v20 = vpop.eup %11523  ;;  %v7181_v38 = vmul.f32 %v11522_v62, %v12767_v6 }
 0x746   : > { %11533 = vpow2.f32 %v7178_v34  ;;  %v7176_v43 = vmul.f32 1.442695, %v7162_v7  ;;  %v7180_v40 = vmul.f32 %v11524_v20, %v12764_v19 }
 0x747   : > { %v7191_v27 = vsel %vm4380_vm2, %v7181_v38, 0.0 }
 0x748   : > { %v11526_v4 = vpop.eup %11525  ;;  %11535 = vpow2.f32 %v7176_v43  ;;  %7192 = vadd.xlane.f32.xlu1 %v7191_v27  ;;  %v7188_v3 = vsel %vm4380_vm2, %v7180_v40, 0.0 }
 0x749   : > { %7189 = vadd.xlane.f32.xlu0 %v7188_v3  ;;  %v7183_v56 = vmul.f32 %v11526_v4, %v12779_v24 }
 0x74a   : > { %v11528_v2 = vpop.eup %11527 }
 0x74b   : > { %v7197_v58 = vsel %vm4380_vm2, %v7183_v56, 0.0  ;;  %v7182_v44 = vmul.f32 %v11528_v2, %v12771_v23 }
 0x74c   : > { %v11530_v6 = vpop.eup %11529  ;;  %7198 = vadd.xlane.f32.xlu1 %v7197_v58 }
 0x74d   : > { %v7194_v47 = vsel %vm4380_vm2, %v7182_v44, 0.0  ;;  %v13162_v19 = vmul.f32 %v11530_v6, %v12797_v29 }
 0x74e   : > { %v11532_v30 = vpop.eup %11531  ;;  %7195 = vadd.xlane.f32.xlu0 %v7194_v47 }
 0x74f   : > { %v7203_v49 = vsel %vm4380_vm2, %v13162_v19, 0.0  ;;  %v13167_v46 = vmul.f32 %v11532_v30, %v12789_v53 }
 0x750   : > { %v11534_v24 = vpop.eup %11533  ;;  %7204 = vadd.xlane.f32.xlu1 %v7203_v49 }
 0x751   : > { %v7200_v23 = vsel %vm4380_vm2, %v13167_v46, 0.0  ;;  %v13172_v33 = vmul.f32 %v11534_v24, %v13448_v63 }
 0x752   : > { %v11536_v12 = vpop.eup %11535  ;;  %7201 = vadd.xlane.f32.xlu0 %v7200_v23 }
 0x753   : > { %v7209_v29 = vsel %vm4380_vm2, %v13172_v33, 0.0  ;;  %v13177_v31 = vmul.f32 %v11536_v12, %v12809_v60 }
 0x754   : > { %7210 = vadd.xlane.f32.xlu1 %v7209_v29 }
 0x755   : > { %v7206_v53 = vsel %vm4380_vm2, %v13177_v31, 0.0 }
 0x756   : > { %7207 = vadd.xlane.f32.xlu0 %v7206_v53 }
 0x7d5   : > { %v7193_v9 = vpop.xlane.xlu1 %7192 }
 0x7d6   : > { %v7213_v51 = vmax.f32 %v7193_v9, 1e-20  ;;  %v7190_v32 = vpop.xlane.xlu0 %7189 }
 0x7d7   : > { %v7212_v57 = vmax.f32 %v7190_v32, 1e-20 }
 0x7d8   : > { %11537 = vrcp.f32 %v7213_v51 }
 0x7d9   : > { %11539 = vrcp.f32 %v7212_v57  ;;  %v7199_v63 = vpop.xlane.xlu1 %7198 }
 0x7da   : > { %v7215_v22 = vmax.f32 %v7199_v63, 1e-20 }
 0x7db   : > { %v7196_v55 = vpop.xlane.xlu0 %7195 }
 0x7dc   : > { %11541 = vrcp.f32 %v7215_v22  ;;  %v7214_v8 = vmax.f32 %v7196_v55, 1e-20 }
 0x7dd   : > { %v7205_v11 = vpop.xlane.xlu1 %7204 }
 0x7de   : > { %11543 = vrcp.f32 %v7214_v8  ;;  %v7217_v60 = vmax.f32 %v7205_v11, 1e-20 }
 0x7df   : > { %v7202_v45 = vpop.xlane.xlu0 %7201 }
 0x7e0   : > { %11545 = vrcp.f32 %v7217_v60  ;;  %v7216_v18 = vmax.f32 %v7202_v45, 1e-20 }
 0x7e1   : > { %v7211_v37 = vpop.xlane.xlu1 %7210 }
 0x7e2   : > { %v11538_v35 = vpop.eup %11537  ;;  %11547 = vrcp.f32 %v7216_v18  ;;  %v7219_v10 = vmax.f32 %v7211_v37, 1e-20 }
 0x7e3   : > { %v11540_v17 = vpop.eup %11539  ;;  %v7223_v5 = vmul.f32 %v11538_v35, %v7181_v38  ;;  %v7208_v59 = vpop.xlane.xlu0 %7207 }
 0x7e4   : > { %11549 = vrcp.f32 %v7219_v10  ;;  %v7218_v54 = vmax.f32 %v7208_v59, 1e-20  ;;  %v7221_v48 = vmul.f32 %v11540_v17, %v7180_v40 }
 0x7e5   : > { %v7773_v52 = vsel %vm4380_vm2, %v7223_v5, 0 }
 0x7e6   : > { %v11542_v61 = vpop.eup %11541  ;;  %11551 = vrcp.f32 %v7218_v54  ;;  %v10415_v21 = vpop.f32.mrb[30].mxu0  ;;  %v7770_v41 = vsel %vm4380_vm2, %v7221_v48, 0  ;;  %v13183_v25 = vand.u32 4294901760, %v7773_v52 }
 0x7e7   : > { %v7797_v16 = vand.u32 4294901760, %v10415_v21  ;;  %v7759_v1 = vpop.f32.mrb[31].mxu0  ;;  %v13185_v39 = vand.u32 4294901760, %v7770_v41  ;;  %v7227_v15 = vmul.f32 %v11542_v61, %v7183_v56 }
 0x7e8   : > { %v11544_v14 = vpop.eup %11543  ;;  %v7794_v26 = vand.u32 4294901760, %v7759_v1  ;;  %v13188_v36 = vsub.f32 %v7773_v52, %v13183_v25 }
 0x7e9   : > { %v7949_v28 = vsub.f32 %v10415_v21, %v7797_v16  ;;  %v13191_v13 = vsub.f32 %v7770_v41, %v13185_v39  ;;  %v7225_v42 = vmul.f32 %v11544_v14, %v7182_v44  ;;  %v7779_v50 = vsel %vm4380_vm2, %v7227_v15, 0 }
 0x7ea   : > { %v11546_v0 = vpop.eup %11545  ;;  %v13194_v62 = vpack.c.bf16 %v7797_v16, %v7794_v26  ;;  %v7942_v34 = vsub.f32 %v7759_v1, %v7794_v26  ;;  %v7872_v7 = vand.u32 4294901760, %v13188_v36  ;;  %v13197_v20 = vand.u32 4294901760, %v7779_v50 }
 0x7eb   : > { %v7950_v38 = vand.u32 4294901760, %v7949_v28  ;;  %v7862_v43 = vand.u32 4294901760, %v13191_v13  ;;  %v7776_v40 = vsel %vm4380_vm2, %v7225_v42, 0  ;;  %v7231_v27 = vmul.f32 %v11546_v0, %v13162_v19 }
 0x7ec   : > { %v11548_v4 = vpop.eup %11547  ;;  %v7943_v3 = vand.u32 4294901760, %v7942_v34  ;;  %11065 = vmatprep.subr.bf16.mxu0 %v13194_v62  ;;  %v7873_v56 = vsub.f32 %v13188_v36, %v7872_v7  ;;  %v13206_v2 = vand.u32 4294901760, %v7776_v40  ;;  %v13209_v58 = vsub.f32 %v7779_v50, %v13197_v20 }
 0x7ed   : > { %v7951_v44 = vsub.f32 %v7949_v28, %v7950_v38  ;;  %11067 = vmatpush3.bf16.msra.mxu0 %v13194_v62  ;;  %v7863_v6 = vsub.f32 %v13191_v13, %v7862_v43  ;;  %v11072_v47 = vpack.c.bf16 %v7949_v28, %v7942_v34  ;;  %v7229_v19 = vmul.f32 %v11548_v4, %v13167_v46 }
 0x7ee   : > { %v11550_v30 = vpop.eup %11549  ;;  %v7944_v49 = vsub.f32 %v7942_v34, %v7943_v3  ;;  %v7874_v24 = vand.u32 4294901760, %v7873_v56  ;;  %v13217_v23 = vsub.f32 %v7776_v40, %v13206_v2  ;;  %v7892_v12 = vand.u32 4294901760, %v13209_v58 }
 0x7ef   : > { %v7235_v29 = vmul.f32 %v11550_v30, %v13172_v33  ;;  %v7864_v53 = vand.u32 4294901760, %v7863_v6  ;;  %v7952_v9 = vand.u32 4294901760, %v7951_v44  ;;  %v7782_v51 = vsel %vm4380_vm2, %v7229_v19, 0 }
 0x7f0   : > { %v11552_v32 = vpop.eup %11551  ;;  %v7945_v57 = vand.u32 4294901760, %v7944_v49  ;;  %v7882_v63 = vand.u32 4294901760, %v13217_v23  ;;  %v7893_v46 = vsub.f32 %v13209_v58, %v7892_v12  ;;  %v13226_v22 = vand.u32 4294901760, %v7782_v51 }
 0x7f1   : > { %v7233_v55 = vmul.f32 %v11552_v32, %v13177_v31  ;;  %10420 = vmatprep.mubr.f32.mxu0 %v7864_v53  ;;  %v7785_v8 = vsel %vm4380_vm2, %v7231_v27, 0  ;;  %v7791_v33 = vsel %vm4380_vm2, %v7235_v29, 0  ;;  %v11080_v11 = vpack.c.bf16 %v7950_v38, %v7943_v3 }
 0x7f2   : > { %10421 = vmatmul.mubr.f32.vlgmr.msra.gmra.mrb[20].mxu0 %v7874_v24  ;;  %v11068_v60 = vpack.c.bf16 %v7952_v9, %v7945_v57  ;;  %v7883_v45 = vsub.f32 %v13217_v23, %v7882_v63  ;;  %v7901_v18 = vsub.f32 %v7782_v51, %v13226_v22  ;;  %v13235_v37 = vand.u32 4294901760, %v7785_v8 }
 0x7f3   : > { %v7788_v35 = vsel %vm4380_vm2, %v7233_v55, 0  ;;  %v13238_v10 = vand.u32 4294901760, %v7791_v33  ;;  %v7894_v59 = vand.u32 4294901760, %v7893_v46 }
 0x7f4   : > { %11069 = vmatprep.subr.bf16.mxu0 %v11068_v60  ;;  %v7884_v31 = vand.u32 4294901760, %v7883_v45  ;;  %v7902_v17 = vand.u32 4294901760, %v7901_v18  ;;  %v13240_v5 = vand.u32 4294901760, %v7788_v35  ;;  %v7911_v54 = vsub.f32 %v7785_v8, %v13235_v37 }
 0x7f5   : > { %11071 = vmatpush3.bf16.msra.mxu0 %v11068_v60  ;;  %v7931_v48 = vsub.f32 %v7791_v33, %v13238_v10 }
 0x7f6   : > { %10423 = vmatprep.mubr.f32.mxu0 %v7884_v31  ;;  %11073 = vmatprep.subr.bf16.mxu0 %v11072_v47  ;;  %v7903_v52 = vsub.f32 %v7901_v18, %v7902_v17  ;;  %v7921_v61 = vsub.f32 %v7788_v35, %v13240_v5  ;;  %v7912_v21 = vand.u32 4294901760, %v7911_v54 }
 0x7f7   : > { %10424 = vmatmul.mubr.f32.gmra.mrb[22].mxu0 %v7894_v59  ;;  %v7932_v41 = vand.u32 4294901760, %v7931_v48 }
 0x7f8   : > { %v7904_v16 = vand.u32 4294901760, %v7903_v52  ;;  %v7922_v1 = vand.u32 4294901760, %v7921_v61  ;;  %v7913_v15 = vsub.f32 %v7911_v54, %v7912_v21 }
 0x7f9   : > { %v7933_v28 = vsub.f32 %v7931_v48, %v7932_v41 }
 0x7fa   : > { %10426 = vmatprep.mubr.f32.mxu0 %v7904_v16  ;;  %v7923_v14 = vsub.f32 %v7921_v61, %v7922_v1  ;;  %v7914_v26 = vand.u32 4294901760, %v7913_v15 }
 0x7fb   : > { %v7934_v50 = vand.u32 4294901760, %v7933_v28 }
 0x7fc   : > { %v7924_v42 = vand.u32 4294901760, %v7923_v14  ;;  %10427 = vmatmul.mubr.f32.gmra.mrb[24].mxu0 %v7914_v26 }
 0x7fe   : > { %10429 = vmatprep.mubr.f32.mxu0 %v7924_v42 }
 0x800   : > { %10430 = vmatmul.mubr.f32.gmra.mrb[26].mxu0 %v7934_v50 }
 0x801   : > { %10436 = vmatprep.mubr.f32.mxu0 %v13185_v39 }
 0x804   : > { %10437 = vmatmul.mubr.f32.vlgmr.msra.gmra.mrb[20].mxu0 %v13183_v25 }
 0x805   : > { %11075 = vmatpush3.bf16.msra.mxu0 %v11072_v47  ;;  %10439 = vmatprep.mubr.f32.mxu0 %v13206_v2 }
 0x806   : > { %11077 = vmatprep.subr.bf16.mxu0 %v13194_v62 }
 0x808   : > { %10440 = vmatmul.mubr.f32.gmra.mrb[22].mxu0 %v13197_v20 }
 0x809   : > { %10442 = vmatprep.mubr.f32.mxu0 %v13226_v22 }
 0x80c   : > { %10443 = vmatmul.mubr.f32.gmra.mrb[24].mxu0 %v13235_v37 }
 0x80d   : > { %10445 = vmatprep.mubr.f32.mxu0 %v13240_v5 }
 0x810   : > { %10446 = vmatmul.mubr.f32.gmra.mrb[26].mxu0 %v13238_v10 }
 0x811   : > { %10452 = vmatprep.mubr.f32.mxu0 %v13191_v13 }
 0x814   : > { %10453 = vmatmul.mubr.f32.vlgmr.msra.gmra.mrb[20].mxu0 %v13188_v36 }
 0x815   : > { %11079 = vmatpush3.bf16.msra.mxu0 %v13194_v62  ;;  %10455 = vmatprep.mubr.f32.mxu0 %v13217_v23 }
 0x816   : > { %11081 = vmatprep.subr.bf16.mxu0 %v11080_v11 }
 0x818   : > { %10456 = vmatmul.mubr.f32.gmra.mrb[22].mxu0 %v13209_v58 }
 0x819   : > { %10458 = vmatprep.mubr.f32.mxu0 %v7901_v18 }
 0x81c   : > { %10459 = vmatmul.mubr.f32.gmra.mrb[24].mxu0 %v7911_v54 }
 0x81d   : > { %10461 = vmatprep.mubr.f32.mxu0 %v7921_v61 }
 0x820   : > { %10462 = vmatmul.mubr.f32.gmra.mrb[26].mxu0 %v7931_v48 }
 0x821   : > { %10468 = vmatprep.mubr.f32.mxu0 %v7862_v43 }
 0x824   : > { %10469 = vmatmul.mubr.f32.vlgmr.msra.gmra.mrb[20].mxu0 %v7872_v7 }
 0x825   : > { %11083 = vmatpush3.bf16.msra.mxu0 %v11080_v11  ;;  %10471 = vmatprep.mubr.f32.mxu0 %v7882_v63 }
 0x826   : > { %11085 = vmatprep.subr.bf16.mxu0 %v13194_v62 }
 0x828   : > { %10472 = vmatmul.mubr.f32.gmra.mrb[22].mxu0 %v7892_v12 }
 0x829   : > { %10474 = vmatprep.mubr.f32.mxu0 %v7902_v17 }
 0x82c   : > { %10475 = vmatmul.mubr.f32.gmra.mrb[24].mxu0 %v7912_v21 }
 0x82d   : > { %10477 = vmatprep.mubr.f32.mxu0 %v7922_v1 }
 0x830   : > { %10478 = vmatmul.mubr.f32.gmra.mrb[26].mxu0 %v7932_v41 }
 0x831   : > { %10484 = vmatprep.mubr.f32.mxu0 %v13185_v39 }
 0x834   : > { %10485 = vmatmul.mubr.f32.vlgmr.msra.gmra.mrb[20].mxu0 %v13183_v25 }
 0x835   : > { %11087 = vmatpush3.bf16.msra.mxu0 %v13194_v62  ;;  %10487 = vmatprep.mubr.f32.mxu0 %v13206_v2 }
 0x838   : > { %10488 = vmatmul.mubr.f32.gmra.mrb[22].mxu0 %v13197_v20 }
 0x839   : > { %10490 = vmatprep.mubr.f32.mxu0 %v13226_v22 }
 0x83c   : > { %10491 = vmatmul.mubr.f32.gmra.mrb[24].mxu0 %v13235_v37 }
 0x83d   : > { %10493 = vmatprep.mubr.f32.mxu0 %v13240_v5 }
 0x840   : > { %10494 = vmatmul.mubr.f32.gmra.mrb[26].mxu0 %v13238_v10 }
 0x841   : > { %10500 = vmatprep.mubr.f32.mxu0 %v13185_v39  ;;  %v8643_v39 = vld [vmem:[%s13350_s8] ss:$0 sm:$0xff] }
 0x844   : > { %10501 = vmatmul.mubr.f32.vlgmr.msra.gmra.mrb[20].mxu0 %v13183_v25 }
 0x845   : > { %10503 = vmatprep.mubr.f32.mxu0 %v13206_v2 }
 0x848   : > { %10504 = vmatmul.mubr.f32.gmra.mrb[22].mxu0 %v13197_v20 }
 0x849   : > { %10506 = vmatprep.mubr.f32.mxu0 %v13226_v22 }
 0x84c   : > { %10507 = vmatmul.mubr.f32.gmra.mrb[24].mxu0 %v13235_v37 }
 0x84d   : > { %10509 = vmatprep.mubr.f32.mxu0 %v13240_v5 }
 0x850   : > { %10510 = vmatmul.mubr.f32.gmra.mrb[26].mxu0 %v13238_v10 }
 0x917   : > { %v10502_v25 = vpop.f32.mrb[20].mxu0 }
 0x918   : > { %v11114_v36 = vadd.f32 %v10502_v25, %v8643_v39  ;;  %v8507_v13 = vpop.f32.mrb[21].mxu0 }
 0x919   : > { %v11115_v0 = vadd.f32 %v8643_v39, %v8507_v13 }
 0x91a   : > { %8562 = vst [vmem:[%s310_s23 + $0x8] sm:$0xff] %v11114_v36 }
 0x91b   : > { %8561 = vst [vmem:[%s310_s23] sm:$0xff] %v11115_v0  ;;  %v10505_v62 = vpop.f32.mrb[22].mxu0 }
 0x91c   : > { %v11116_v34 = vadd.f32 %v10505_v62, %v8643_v39  ;;  %v8519_v7 = vpop.f32.mrb[23].mxu0 }
 0x91d   : > { %v11117_v20 = vadd.f32 %v8643_v39, %v8519_v7 }
 0x91e   : > { %8564 = vst [vmem:[%s310_s23 + $0x18] sm:$0xff] %v11116_v34 }
 0x91f   : > { %8563 = vst [vmem:[%s310_s23 + $0x10] sm:$0xff] %v11117_v20  ;;  %v10508_v38 = vpop.f32.mrb[24].mxu0 }
 0x920   : > { %v11118_v43 = vadd.f32 %v10508_v38, %v8643_v39  ;;  %v8531_v40 = vpop.f32.mrb[25].mxu0 }
 0x921   : > { %v11119_v27 = vadd.f32 %v8643_v39, %v8531_v40 }
 0x922   : > { %8566 = vst [vmem:[%s310_s23 + $0x28] sm:$0xff] %v11118_v43 }
 0x923   : > { %8565 = vst [vmem:[%s310_s23 + $0x20] sm:$0xff] %v11119_v27  ;;  %v10511_v4 = vpop.f32.mrb[26].mxu0 }
 0x924   : > { %v11120_v3 = vadd.f32 %v10511_v4, %v8643_v39  ;;  %v8543_v56 = vpop.f32.mrb[27].mxu0 }
 0x925   : > { %v11121_v2 = vadd.f32 %v8643_v39, %v8543_v56 }
 0x926   : > { %8568 = vst [vmem:[%s310_s23 + $0x38] sm:$0xff] %v11120_v3 }
 0x927   : > { %8567 = vst [vmem:[%s310_s23 + $0x30] sm:$0xff] %v11121_v2 }
 0x928   : > { %11566 = shalt.err (!%p11563_p2)
}
 0x929   : > { %s11567_s17 = scalar_lea.hbm %s13295_s29, 1024  ;;  %s11571_s25 = scalar_lea.hbm %s13351_s9, 2048 }
 0x92a   : > { %p11568_p3 = scmp.ne.s32.totalorder %s13295_s29, %s11567_s17  ;;  %p11572_p8 = scmp.lt.u32.totalorder %s13295_s29, %s13351_s9 }
 0x92b   : > { %p11573_p9 = scmp.lt.u32.totalorder %s11571_s25, %s11567_s17  ;;  %p11575_p11 = scmp.lt.u32.totalorder %s11567_s17, %s13295_s29 }
 0x92c   : > { %p11569_p4 = pnand %p11568_p3, %p11708_p5 }
 0x92d   : > { %p11574_p10 = por %p11573_p9, %p11572_p8 }
 0x92e   : > { %p11570_p7 = pneg %p11569_p4 }
 0x92f   : > { %p11576_p12 = por %p11575_p11, %p11574_p10 }
 0x931   : > { %p11577_p13 = pnand %p11576_p12, %p11570_p7 }
 0x933   : > { %11580 = shalt.err (!%p11577_p13)
}
 0x934   : > { %s11618_s14 = smov 128   ;;  %s11619_s16 = smov 8  }
 0x935   : > { %11448 = dma.vmem_to_hbm [thread:$0]  (%p11708_p5), %s13297_s26, 1024, %s13295_s29, %s13301_s13, %s11618_s14, %s11618_s14, %s11619_s16  }
 0x936 PF: > { %p11454_p0 = scmp.ge.s32.totalorder %s11615_s12, 2  ;;  %s8598_s21 = sand.u32 1, %s11603_s30  }
 0x937   : > { %s8599_s22 = scalar_lea.sflag [#allocation3], %s8598_s21 }
 0x938   : > { %p11451_p1 = pnand %p11454_p0, %p11712_p6 }
 0x93a   : > { %11598 = dma.done.wait (!%p11451_p1), %s8599_s22, 1024  }
 0x93b   : > { %11600 = vsyncadd (!%p11451_p1), %s8599_s22, 4294966272  ;;  %p19_p2 = scmp.ge.s32.totalorder %s11695_s15, 4   ;;  %s13461_s30 = smov %s11607_s10 }
 0x93c   : > { %s13462_s10 = smov %s11611_s11  ;;  %s13463_s11 = smov %s11706_s18 }
 0x93d   : > { %s13464_s12 = smov %s11695_s15  ;;  %21 = sbr.rel (!%p19_p2) target bundleno = 3 (0x3), region = 92 }
 0x944   :  { %8604 = vsyncpa [#allocation3], 1 }
 0x945   :  { %8606 = vsyncpa [#allocation3 + $0x1], 1 }

</bundles_post_ra>
